<compile_context>
chip_gen: v7x
topology: tpu7x:2x2x1
jax: 0.10.0
libtpu: 0.0.40
codegen_flags: <defaults>
</compile_context>

<pallas_src>
import functools
import math

import jax
import jax.numpy as jnp
from jax.experimental import pallas as pl
from jax.experimental.pallas import tpu as pltpu


def _self_attention_kernel(x_ref, wqkv_ref, wp_ref, bp_ref, out_ref, *,
                           num_heads, seq_len, pack, matmul_dtype=None):
    # x_ref:    (G*T, C)        rows are (slice g, time t), row-major (g, t)
    # wqkv_ref: (C, 3H)         fused [Wq^T * (1/sqrt(d)) | Wk^T | Wv^T]
    # wp_ref:   (H, H)          Wp^T
    # bp_ref:   (1, H)          f32 bias
    # out_ref:  (G*T/pack, pack*H)  lane-dense packed output rows
    GT = x_ref.shape[0]
    H = wp_ref.shape[0]
    d = H // num_heads
    T = seq_len
    G = GT // T

    cast = (lambda a: a) if matmul_dtype is None else (
        lambda a: a.astype(matmul_dtype))

    # ---- fused Q/K/V projection: one MXU matmul, 3H output lanes ----
    qkv = jnp.dot(cast(x_ref[...]), cast(wqkv_ref[...]),
                  preferred_element_type=jnp.float32)            # (G*T, 3H) f32

    wp_full = wp_ref[...]                                        # load once

    # ---- per-head attention + per-head projection accumulation ----
    # The output projection's contraction dim H is split head-wise so the
    # narrow (GT, d) head outputs are never lane-concatenated; the per-head
    # contribution rides the f32 accumulator instead.
    y = jnp.zeros((GT, H), jnp.float32)
    for h in range(num_heads):                    # static, tiny head count
        qh = qkv[:, 0 * H + h * d:0 * H + (h + 1) * d].reshape(G, T, d)
        kh = qkv[:, 1 * H + h * d:1 * H + (h + 1) * d].reshape(G, T, d)
        vh = qkv[:, 2 * H + h * d:2 * H + (h + 1) * d].reshape(G, T, d)

        # NOTE: the implicit per-slice K transpose inside this contraction is
        # left to Mosaic; at T=16, d=8 hoisting it is a marginal XLU saving.
        e = jnp.einsum('gqd,gkd->gqk', cast(qh), cast(kh),
                       preferred_element_type=jnp.float32)       # (G, T, T)
        # 1/sqrt(d) already folded into Wq columns (wrapper).
        # Softmax kept in f32 (also required on v5e: no bf16 VPU/EUP there).
        e = e - jnp.max(e, axis=-1, keepdims=True)
        p = jnp.exp(e)
        p = p * pl.reciprocal(jnp.sum(p, axis=-1, keepdims=True), approx=True)

        oh = jnp.einsum('gqk,gkd->gqd', cast(p), cast(vh),
                        preferred_element_type=jnp.float32)      # (G, T, d)

        y = y + jnp.dot(cast(oh.reshape(GT, d)),
                        cast(wp_full[h * d:(h + 1) * d, :]),
                        preferred_element_type=jnp.float32)      # (GT, H)

    # bias once after the loop; dropout == identity (eval mode)
    y = y + bp_ref[...]

    # ---- lane-dense store ----
    # Pack `pack` consecutive rows into the lane axis so every store is a full
    # unmasked 128-lane vst.  Row-major packing means the wrapper's plain
    # reshape back to (B, N, T, H) recovers the original layout.
    if pack == 1:
        out_ref[...] = y.astype(out_ref.dtype)
    else:
        R = GT // pack
        y3 = y.reshape(R, pack, H)                  # leading-dim regroup only
        y_dense = jnp.concatenate([y3[:, p_, :] for p_ in range(pack)],
                                  axis=-1)          # (R, pack*H) == (R, 128k)
        out_ref[...] = y_dense.astype(out_ref.dtype)


def _detect_tpu():
    """Best-effort (generation, physical VMEM bytes); never raises."""
    gen, vmem = None, None
    try:
        kind = jax.devices()[0].device_kind.lower()
        for g in (7, 6, 5):
            if str(g) in kind:
                gen = g
                break
    except Exception:
        pass
    try:
        info = pltpu.get_tpu_info()
        vmem = getattr(info, "vmem_capacity_bytes", None)
    except Exception:
        pass
    return gen, vmem


def _vmem_policy(gen, vmem_phys):
    """Per-step working-set budget and scoped-VMEM limit per TPU generation."""
    if gen == 7:      # v7x: 64 MiB physical per TensorCore, 32 MiB scoped default
        budget, limit = 20 << 20, 40 << 20
    elif gen == 6:    # v6e: 128 MiB physical, 32 MiB scoped default
        budget, limit = 40 << 20, 96 << 20
    elif gen == 5:    # v5e: 128 MiB physical, 16 MiB scoped default
        budget, limit = 28 << 20, 64 << 20
    else:             # unknown generation: stay conservative, don't set limit
        budget, limit = 16 << 20, None
    if vmem_phys:
        budget = min(budget, max(vmem_phys // 4, 4 << 20))
        cap = int(vmem_phys * 3 // 4)               # leave headroom
        limit = cap if limit is None else min(limit, cap)
    return budget, limit


def _choose_group(total, cap, seq_len, pack):
    """Largest divisor G of `total` with G <= cap whose blocks satisfy the TPU
    (8,128) second-minor constraint for the (G*T, C) input block and the
    packed (G*T/pack, pack*H) output block (or G == total: full-array block).
    Returns None if no divisor <= cap works."""
    cap = max(1, min(total, cap))
    for g in range(cap, 0, -1):
        if total % g != 0:
            continue
        if g == total or (g * seq_len) % (8 * pack) == 0:
            return g
    return None


def self_attention_pallas(x, wq, wk, wv, wp, bp, *, num_heads=4,
                          matmul_dtype=jnp.bfloat16):
    """x: (B, N, T, C); weights in PyTorch nn.Linear layout (out, in).

    matmul_dtype: dtype fed to the MXU (default bf16; pass None for full f32).
    Accumulation and softmax math always stay float32.
    """
    B, N, T, C = x.shape
    H = wq.shape[0]
    assert H % num_heads == 0
    d = H // num_heads
    scale = 1.0 / math.sqrt(d)

    # Fold the softmax 1/sqrt(d) into the Wq columns and fuse the three
    # projection weights into one (C, 3H) operand (one matmul, one DMA).
    w_qkv = jnp.concatenate([(wq * scale).T, wk.T, wv.T], axis=1)    # (C, 3H)
    wp_t = wp.T                                                      # (H, H)
    bp2 = bp.reshape(1, H).astype(jnp.float32)

    # Flatten (B, N, T) into one row axis: plain dense 2-D tiles.
    x_flat = x.reshape(B * N * T, C)

    if matmul_dtype is not None:
        # Wrapper-side cast: shrinks the HBM->VMEM DMA bytes, not just the
        # in-kernel MXU operands.
        x_flat = x_flat.astype(matmul_dtype)
        w_qkv = w_qkv.astype(matmul_dtype)
        wp_t = wp_t.astype(matmul_dtype)

    out_dtype = x.dtype

    # Lane-dense output packing factor: smallest `pack` with pack*H % 128 == 0.
    if H % 128 == 0:
        pack = 1
    else:
        pack = 128 // math.gcd(H, 128)
    if pack > 1 and (B * N * T) % pack != 0:
        pack = 1
    # TODO(synk): for general (odd) T, pad T to a multiple of 8 and mask the
    #             padded keys before softmax instead of collapsing G / pack.

    # Batch as many (B, N) slices per grid step as the per-generation VMEM
    # budget allows (per-step pipeline overhead ~0.35us dominates tiny tiles).
    in_item = 2 if matmul_dtype is not None else 4
    out_item = jnp.dtype(out_dtype).itemsize
    bytes_per_slice = (2 * T * C * in_item            # x block, double-buffered
                       + 2 * T * H * out_item         # out block, double-buffered
                       + 4 * (3 * T * H               # fused qkv (f32)
                              + num_heads * T * T     # energies (conservative)
                              + 2 * T * H))           # f32 accumulator + repack

    gen, vmem_phys = _detect_tpu()
    vmem_budget, vmem_limit = _vmem_policy(gen, vmem_phys)

    cap = max(1, vmem_budget // max(bytes_per_slice, 1))
    G = _choose_group(B * N, cap, T, pack)
    if G is None and pack > 1:
        pack = 1
        G = _choose_group(B * N, cap, T, pack)
    if G is None:
        G = B * N    # single step, full-array blocks (always legal)

    # Only v7x has 2 TensorCores; keep >=2 parallel grid steps there when the
    # problem is large enough to amortize the extra per-step overhead.
    if gen == 7 and B * N > 1 and (B * N) // G < 2 \
            and bytes_per_slice * (B * N) > (1 << 20):
        half = _choose_group(B * N, (B * N + 1) // 2, T, pack)
        if half is not None and (B * N <= 2 or half * 4 >= B * N):
            G = half
        # TODO(synk): pad B*N to even for a clean 2-way megacore split when it
        #             is prime (divisor-based split would degenerate to G=1).

    grid = (B * N // G,)
    rows = G * T

    kernel = functools.partial(_self_attention_kernel, num_heads=num_heads,
                               seq_len=T, pack=pack, matmul_dtype=matmul_dtype)

    cp_kwargs = dict(dimension_semantics=("parallel",))
    if vmem_limit is not None:
        cp_kwargs["vmem_limit_bytes"] = int(vmem_limit)

    out = pl.pallas_call(
        kernel,
        out_shape=jax.ShapeDtypeStruct((B * N * T // pack, pack * H),
                                       out_dtype),
        grid_spec=pltpu.PrefetchScalarGridSpec(
            num_scalar_prefetch=0,
            grid=grid,
            in_specs=[
                pl.BlockSpec((rows, C), lambda i: (i, 0)),        # x rows
                pl.BlockSpec((C, 3 * H), lambda i: (0, 0)),       # [Wq|Wk|Wv]^T
                pl.BlockSpec((H, H), lambda i: (0, 0)),           # Wp^T
                pl.BlockSpec((1, H), lambda i: (0, 0)),           # bias
            ],
            out_specs=pl.BlockSpec((rows // pack, pack * H),
                                   lambda i: (i, 0)),             # lane-dense
        ),
        compiler_params=pltpu.CompilerParams(**cp_kwargs),
    )(x_flat, w_qkv, wp_t, bp2)

    # Row-major un-pack: the packed slab flattens back to (B*N*T, H) exactly.
    return out.reshape(B, N, T, H)


def ref_forward(x, wq, wk, wv, wp, bp, num_heads):
    """Pure-JAX transcription of the PyTorch forward (dropout = identity)."""
    q = x @ wq.T
    k = x @ wk.T
    v = x @ wv.T
    q = jnp.concatenate(jnp.split(q, num_heads, axis=-1), axis=0)
    k = jnp.concatenate(jnp.split(k, num_heads, axis=-1), axis=0)
    v = jnp.concatenate(jnp.split(v, num_heads, axis=-1), axis=0)
    d = v.shape[-1]
    energy = jnp.matmul(q, jnp.swapaxes(k, -1, -2)) / (d ** 0.5)
    score = jax.nn.softmax(energy, axis=-1)
    head_out = jnp.matmul(score, v)
    out = jnp.concatenate(jnp.split(head_out, num_heads, axis=0), axis=-1)
    return out @ wp.T + bp


if __name__ == "__main__":
    B, N, T, C = 2, 4, 16, 16         # input (B, N, T, C)
    H, num_heads = 32, 4              # hidden_size, num_heads (in_dim=C)

    key = jax.random.PRNGKey(0)
    ks = jax.random.split(key, 6)
    x = jax.random.normal(ks[0], (B, N, T, C), jnp.float32)
    # deterministic synthetic parameters (nn.Linear layouts: (out, in))
    wq = jax.random.normal(ks[1], (H, C), jnp.float32) * 0.1
    wk = jax.random.normal(ks[2], (H, C), jnp.float32) * 0.1
    wv = jax.random.normal(ks[3], (H, C), jnp.float32) * 0.1
    wp = jax.random.normal(ks[4], (H, H), jnp.float32) * 0.1
    bp = jax.random.normal(ks[5], (H,), jnp.float32) * 0.1

    ref = ref_forward(x, wq, wk, wv, wp, bp, num_heads)

    # 1) Full-f32 MXU path: tight check (only the approx EUP reciprocal in the
    #    softmax denominator differs from the pure-JAX reference).
    out_f32 = self_attention_pallas(x, wq, wk, wv, wp, bp,
                                    num_heads=num_heads, matmul_dtype=None)
    out_f32 = jax.block_until_ready(out_f32)
    assert out_f32.shape == (B, N, T, H), out_f32.shape
    err_f32 = float(jnp.max(jnp.abs(out_f32 - ref)))
    assert jnp.allclose(out_f32, ref, atol=5e-3, rtol=5e-3), err_f32

    # 2) Default bf16-operand path (f32 accumulation / softmax): validates the
    #    production configuration at a tolerance appropriate for bf16 inputs.
    out_bf16 = self_attention_pallas(x, wq, wk, wv, wp, bp,
                                     num_heads=num_heads)
    out_bf16 = jax.block_until_ready(out_bf16)
    assert out_bf16.shape == (B, N, T, H), out_bf16.shape
    err_bf16 = float(jnp.max(jnp.abs(out_bf16 - ref)))
    assert jnp.allclose(out_bf16, ref, atol=3e-2, rtol=3e-2), err_bf16

    print("KERNEL_OK")
</pallas_src>

<mosaic_0001>
module attributes {stable_mosaic.version = 11 : i64} {
  func.func @_self_attention_kernel(%arg0: i32, %arg1: memref<128x16xf32, #tpu.memory_space<vmem>>, %arg2: memref<16x96xf32, #tpu.memory_space<vmem>>, %arg3: memref<32x32xf32, #tpu.memory_space<vmem>>, %arg4: memref<1x32xf32, #tpu.memory_space<vmem>>, %arg5: memref<32x128xf32, #tpu.memory_space<vmem>>) attributes {dimension_semantics = [#tpu.dimension_semantics<parallel>], iteration_bounds = array<i64: 1>, scalar_prefetch = 0 : i64, scratch_operands = 0 : i64, tpu.core_type = #tpu.core_type<tc>, window_params = [{transform_indices = @transform_0, window_bounds = array<i64: 128, 16>}, {pipeline_mode = #tpu.pipeline_mode<synchronous>, transform_indices = @transform_1, window_bounds = array<i64: 16, 96>}, {pipeline_mode = #tpu.pipeline_mode<synchronous>, transform_indices = @transform_2, window_bounds = array<i64: 32, 32>}, {pipeline_mode = #tpu.pipeline_mode<synchronous>, transform_indices = @transform_3, window_bounds = array<i64: 1, 32>}, {transform_indices = @transform_4, window_bounds = array<i64: 32, 128>}]} {
    %c0 = arith.constant 0 : index
    %c0_0 = arith.constant 0 : index
    %0 = vector.load %arg1[%c0, %c0_0] : memref<128x16xf32, #tpu.memory_space<vmem>>, vector<128x16xf32>
    %c0_1 = arith.constant 0 : index
    %c0_2 = arith.constant 0 : index
    %1 = vector.load %arg2[%c0_1, %c0_2] : memref<16x96xf32, #tpu.memory_space<vmem>>, vector<16x96xf32>
    %cst = arith.constant dense<0.000000e+00> : vector<128x96xf32>
    %2 = tpu.matmul %0, %1, %cst {dimension_numbers = #tpu.dot_dimension_numbers<[1], [0], [0], [1], [0, 0, 1, 1], [], []>} : vector<128x16xf32>, vector<16x96xf32>, vector<128x96xf32> -> vector<128x96xf32>
    %c0_3 = arith.constant 0 : index
    %c0_4 = arith.constant 0 : index
    %3 = vector.load %arg3[%c0_3, %c0_4] : memref<32x32xf32, #tpu.memory_space<vmem>>, vector<32x32xf32>
    %cst_5 = arith.constant 0.000000e+00 : f32
    %4 = vector.broadcast %cst_5 : f32 to vector<128x32xf32>
    %5 = vector.extract_strided_slice %2 {offsets = [0, 0], sizes = [128, 8], strides = [1, 1]} : vector<128x96xf32> to vector<128x8xf32>
    %6 = vector.shape_cast %5 : vector<128x8xf32> to vector<8x16x8xf32>
    %7 = vector.extract_strided_slice %2 {offsets = [0, 32], sizes = [128, 8], strides = [1, 1]} : vector<128x96xf32> to vector<128x8xf32>
    %8 = vector.shape_cast %7 : vector<128x8xf32> to vector<8x16x8xf32>
    %9 = vector.extract_strided_slice %2 {offsets = [0, 64], sizes = [128, 8], strides = [1, 1]} : vector<128x96xf32> to vector<128x8xf32>
    %10 = vector.shape_cast %9 : vector<128x8xf32> to vector<8x16x8xf32>
    "tpu.trace_start"() <{level = 10 : i32, message = "gqd,gkd->gqk"}> : () -> ()
    %cst_6 = arith.constant dense<0.000000e+00> : vector<8x16x16xf32>
    %11 = tpu.matmul %6, %8, %cst_6 {dimension_numbers = #tpu.dot_dimension_numbers<[2], [2], [1], [1], [0, 0, 0, 1, 1, 1], [0], [0]>} : vector<8x16x8xf32>, vector<8x16x8xf32>, vector<8x16x16xf32> -> vector<8x16x16xf32>
    "tpu.trace_stop"() : () -> ()
    %cst_7 = arith.constant dense<0xFF800000> : vector<8x16xf32>
    %12 = vector.multi_reduction <maximumf>, %11, %cst_7 [2] : vector<8x16x16xf32> to vector<8x16xf32>
    %13 = vector.shape_cast %12 : vector<8x16xf32> to vector<8x16x1xf32>
    %14 = vector.broadcast %13 : vector<8x16x1xf32> to vector<8x16x16xf32>
    %15 = arith.subf %11, %14 : vector<8x16x16xf32>
    %16 = math.exp %15 : vector<8x16x16xf32>
    %cst_8 = arith.constant dense<0.000000e+00> : vector<8x16xf32>
    %17 = vector.multi_reduction <add>, %16, %cst_8 [2] : vector<8x16x16xf32> to vector<8x16xf32>
    %18 = vector.shape_cast %17 : vector<8x16xf32> to vector<8x16x1xf32>
    %19 = tpu.reciprocal %18 {approx = true} : vector<8x16x1xf32> -> vector<8x16x1xf32>
    %20 = vector.broadcast %19 : vector<8x16x1xf32> to vector<8x16x16xf32>
    %21 = arith.mulf %16, %20 : vector<8x16x16xf32>
    "tpu.trace_start"() <{level = 10 : i32, message = "gqk,gkd->gqd"}> : () -> ()
    %cst_9 = arith.constant dense<0.000000e+00> : vector<8x16x8xf32>
    %22 = tpu.matmul %21, %10, %cst_9 {dimension_numbers = #tpu.dot_dimension_numbers<[2], [1], [1], [2], [0, 0, 0, 1, 1, 2], [0], [0]>} : vector<8x16x16xf32>, vector<8x16x8xf32>, vector<8x16x8xf32> -> vector<8x16x8xf32>
    "tpu.trace_stop"() : () -> ()
    %23 = vector.shape_cast %22 : vector<8x16x8xf32> to vector<128x8xf32>
    %24 = vector.extract_strided_slice %3 {offsets = [0, 0], sizes = [8, 32], strides = [1, 1]} : vector<32x32xf32> to vector<8x32xf32>
    %cst_10 = arith.constant dense<0.000000e+00> : vector<128x32xf32>
    %25 = tpu.matmul %23, %24, %cst_10 {dimension_numbers = #tpu.dot_dimension_numbers<[1], [0], [0], [1], [0, 0, 1, 1], [], []>} : vector<128x8xf32>, vector<8x32xf32>, vector<128x32xf32> -> vector<128x32xf32>
    %26 = arith.addf %4, %25 : vector<128x32xf32>
    %27 = vector.extract_strided_slice %2 {offsets = [0, 8], sizes = [128, 8], strides = [1, 1]} : vector<128x96xf32> to vector<128x8xf32>
    %28 = vector.shape_cast %27 : vector<128x8xf32> to vector<8x16x8xf32>
    %29 = vector.extract_strided_slice %2 {offsets = [0, 40], sizes = [128, 8], strides = [1, 1]} : vector<128x96xf32> to vector<128x8xf32>
    %30 = vector.shape_cast %29 : vector<128x8xf32> to vector<8x16x8xf32>
    %31 = vector.extract_strided_slice %2 {offsets = [0, 72], sizes = [128, 8], strides = [1, 1]} : vector<128x96xf32> to vector<128x8xf32>
    %32 = vector.shape_cast %31 : vector<128x8xf32> to vector<8x16x8xf32>
    "tpu.trace_start"() <{level = 10 : i32, message = "gqd,gkd->gqk"}> : () -> ()
    %cst_11 = arith.constant dense<0.000000e+00> : vector<8x16x16xf32>
    %33 = tpu.matmul %28, %30, %cst_11 {dimension_numbers = #tpu.dot_dimension_numbers<[2], [2], [1], [1], [0, 0, 0, 1, 1, 1], [0], [0]>} : vector<8x16x8xf32>, vector<8x16x8xf32>, vector<8x16x16xf32> -> vector<8x16x16xf32>
    "tpu.trace_stop"() : () -> ()
    %cst_12 = arith.constant dense<0xFF800000> : vector<8x16xf32>
    %34 = vector.multi_reduction <maximumf>, %33, %cst_12 [2] : vector<8x16x16xf32> to vector<8x16xf32>
    %35 = vector.shape_cast %34 : vector<8x16xf32> to vector<8x16x1xf32>
    %36 = vector.broadcast %35 : vector<8x16x1xf32> to vector<8x16x16xf32>
    %37 = arith.subf %33, %36 : vector<8x16x16xf32>
    %38 = math.exp %37 : vector<8x16x16xf32>
    %cst_13 = arith.constant dense<0.000000e+00> : vector<8x16xf32>
    %39 = vector.multi_reduction <add>, %38, %cst_13 [2] : vector<8x16x16xf32> to vector<8x16xf32>
    %40 = vector.shape_cast %39 : vector<8x16xf32> to vector<8x16x1xf32>
    %41 = tpu.reciprocal %40 {approx = true} : vector<8x16x1xf32> -> vector<8x16x1xf32>
    %42 = vector.broadcast %41 : vector<8x16x1xf32> to vector<8x16x16xf32>
    %43 = arith.mulf %38, %42 : vector<8x16x16xf32>
    "tpu.trace_start"() <{level = 10 : i32, message = "gqk,gkd->gqd"}> : () -> ()
    %cst_14 = arith.constant dense<0.000000e+00> : vector<8x16x8xf32>
    %44 = tpu.matmul %43, %32, %cst_14 {dimension_numbers = #tpu.dot_dimension_numbers<[2], [1], [1], [2], [0, 0, 0, 1, 1, 2], [0], [0]>} : vector<8x16x16xf32>, vector<8x16x8xf32>, vector<8x16x8xf32> -> vector<8x16x8xf32>
    "tpu.trace_stop"() : () -> ()
    %45 = vector.shape_cast %44 : vector<8x16x8xf32> to vector<128x8xf32>
    %46 = vector.extract_strided_slice %3 {offsets = [8, 0], sizes = [8, 32], strides = [1, 1]} : vector<32x32xf32> to vector<8x32xf32>
    %cst_15 = arith.constant dense<0.000000e+00> : vector<128x32xf32>
    %47 = tpu.matmul %45, %46, %cst_15 {dimension_numbers = #tpu.dot_dimension_numbers<[1], [0], [0], [1], [0, 0, 1, 1], [], []>} : vector<128x8xf32>, vector<8x32xf32>, vector<128x32xf32> -> vector<128x32xf32>
    %48 = arith.addf %26, %47 : vector<128x32xf32>
    %49 = vector.extract_strided_slice %2 {offsets = [0, 16], sizes = [128, 8], strides = [1, 1]} : vector<128x96xf32> to vector<128x8xf32>
    %50 = vector.shape_cast %49 : vector<128x8xf32> to vector<8x16x8xf32>
    %51 = vector.extract_strided_slice %2 {offsets = [0, 48], sizes = [128, 8], strides = [1, 1]} : vector<128x96xf32> to vector<128x8xf32>
    %52 = vector.shape_cast %51 : vector<128x8xf32> to vector<8x16x8xf32>
    %53 = vector.extract_strided_slice %2 {offsets = [0, 80], sizes = [128, 8], strides = [1, 1]} : vector<128x96xf32> to vector<128x8xf32>
    %54 = vector.shape_cast %53 : vector<128x8xf32> to vector<8x16x8xf32>
    "tpu.trace_start"() <{level = 10 : i32, message = "gqd,gkd->gqk"}> : () -> ()
    %cst_16 = arith.constant dense<0.000000e+00> : vector<8x16x16xf32>
    %55 = tpu.matmul %50, %52, %cst_16 {dimension_numbers = #tpu.dot_dimension_numbers<[2], [2], [1], [1], [0, 0, 0, 1, 1, 1], [0], [0]>} : vector<8x16x8xf32>, vector<8x16x8xf32>, vector<8x16x16xf32> -> vector<8x16x16xf32>
    "tpu.trace_stop"() : () -> ()
    %cst_17 = arith.constant dense<0xFF800000> : vector<8x16xf32>
    %56 = vector.multi_reduction <maximumf>, %55, %cst_17 [2] : vector<8x16x16xf32> to vector<8x16xf32>
    %57 = vector.shape_cast %56 : vector<8x16xf32> to vector<8x16x1xf32>
    %58 = vector.broadcast %57 : vector<8x16x1xf32> to vector<8x16x16xf32>
    %59 = arith.subf %55, %58 : vector<8x16x16xf32>
    %60 = math.exp %59 : vector<8x16x16xf32>
    %cst_18 = arith.constant dense<0.000000e+00> : vector<8x16xf32>
    %61 = vector.multi_reduction <add>, %60, %cst_18 [2] : vector<8x16x16xf32> to vector<8x16xf32>
    %62 = vector.shape_cast %61 : vector<8x16xf32> to vector<8x16x1xf32>
    %63 = tpu.reciprocal %62 {approx = true} : vector<8x16x1xf32> -> vector<8x16x1xf32>
    %64 = vector.broadcast %63 : vector<8x16x1xf32> to vector<8x16x16xf32>
    %65 = arith.mulf %60, %64 : vector<8x16x16xf32>
    "tpu.trace_start"() <{level = 10 : i32, message = "gqk,gkd->gqd"}> : () -> ()
    %cst_19 = arith.constant dense<0.000000e+00> : vector<8x16x8xf32>
    %66 = tpu.matmul %65, %54, %cst_19 {dimension_numbers = #tpu.dot_dimension_numbers<[2], [1], [1], [2], [0, 0, 0, 1, 1, 2], [0], [0]>} : vector<8x16x16xf32>, vector<8x16x8xf32>, vector<8x16x8xf32> -> vector<8x16x8xf32>
    "tpu.trace_stop"() : () -> ()
    %67 = vector.shape_cast %66 : vector<8x16x8xf32> to vector<128x8xf32>
    %68 = vector.extract_strided_slice %3 {offsets = [16, 0], sizes = [8, 32], strides = [1, 1]} : vector<32x32xf32> to vector<8x32xf32>
    %cst_20 = arith.constant dense<0.000000e+00> : vector<128x32xf32>
    %69 = tpu.matmul %67, %68, %cst_20 {dimension_numbers = #tpu.dot_dimension_numbers<[1], [0], [0], [1], [0, 0, 1, 1], [], []>} : vector<128x8xf32>, vector<8x32xf32>, vector<128x32xf32> -> vector<128x32xf32>
    %70 = arith.addf %48, %69 : vector<128x32xf32>
    %71 = vector.extract_strided_slice %2 {offsets = [0, 24], sizes = [128, 8], strides = [1, 1]} : vector<128x96xf32> to vector<128x8xf32>
    %72 = vector.shape_cast %71 : vector<128x8xf32> to vector<8x16x8xf32>
    %73 = vector.extract_strided_slice %2 {offsets = [0, 56], sizes = [128, 8], strides = [1, 1]} : vector<128x96xf32> to vector<128x8xf32>
    %74 = vector.shape_cast %73 : vector<128x8xf32> to vector<8x16x8xf32>
    %75 = vector.extract_strided_slice %2 {offsets = [0, 88], sizes = [128, 8], strides = [1, 1]} : vector<128x96xf32> to vector<128x8xf32>
    %76 = vector.shape_cast %75 : vector<128x8xf32> to vector<8x16x8xf32>
    "tpu.trace_start"() <{level = 10 : i32, message = "gqd,gkd->gqk"}> : () -> ()
    %cst_21 = arith.constant dense<0.000000e+00> : vector<8x16x16xf32>
    %77 = tpu.matmul %72, %74, %cst_21 {dimension_numbers = #tpu.dot_dimension_numbers<[2], [2], [1], [1], [0, 0, 0, 1, 1, 1], [0], [0]>} : vector<8x16x8xf32>, vector<8x16x8xf32>, vector<8x16x16xf32> -> vector<8x16x16xf32>
    "tpu.trace_stop"() : () -> ()
    %cst_22 = arith.constant dense<0xFF800000> : vector<8x16xf32>
    %78 = vector.multi_reduction <maximumf>, %77, %cst_22 [2] : vector<8x16x16xf32> to vector<8x16xf32>
    %79 = vector.shape_cast %78 : vector<8x16xf32> to vector<8x16x1xf32>
    %80 = vector.broadcast %79 : vector<8x16x1xf32> to vector<8x16x16xf32>
    %81 = arith.subf %77, %80 : vector<8x16x16xf32>
    %82 = math.exp %81 : vector<8x16x16xf32>
    %cst_23 = arith.constant dense<0.000000e+00> : vector<8x16xf32>
    %83 = vector.multi_reduction <add>, %82, %cst_23 [2] : vector<8x16x16xf32> to vector<8x16xf32>
    %84 = vector.shape_cast %83 : vector<8x16xf32> to vector<8x16x1xf32>
    %85 = tpu.reciprocal %84 {approx = true} : vector<8x16x1xf32> -> vector<8x16x1xf32>
    %86 = vector.broadcast %85 : vector<8x16x1xf32> to vector<8x16x16xf32>
    %87 = arith.mulf %82, %86 : vector<8x16x16xf32>
    "tpu.trace_start"() <{level = 10 : i32, message = "gqk,gkd->gqd"}> : () -> ()
    %cst_24 = arith.constant dense<0.000000e+00> : vector<8x16x8xf32>
    %88 = tpu.matmul %87, %76, %cst_24 {dimension_numbers = #tpu.dot_dimension_numbers<[2], [1], [1], [2], [0, 0, 0, 1, 1, 2], [0], [0]>} : vector<8x16x16xf32>, vector<8x16x8xf32>, vector<8x16x8xf32> -> vector<8x16x8xf32>
    "tpu.trace_stop"() : () -> ()
    %89 = vector.shape_cast %88 : vector<8x16x8xf32> to vector<128x8xf32>
    %90 = vector.extract_strided_slice %3 {offsets = [24, 0], sizes = [8, 32], strides = [1, 1]} : vector<32x32xf32> to vector<8x32xf32>
    %cst_25 = arith.constant dense<0.000000e+00> : vector<128x32xf32>
    %91 = tpu.matmul %89, %90, %cst_25 {dimension_numbers = #tpu.dot_dimension_numbers<[1], [0], [0], [1], [0, 0, 1, 1], [], []>} : vector<128x8xf32>, vector<8x32xf32>, vector<128x32xf32> -> vector<128x32xf32>
    %92 = arith.addf %70, %91 : vector<128x32xf32>
    %c0_26 = arith.constant 0 : index
    %c0_27 = arith.constant 0 : index
    %93 = vector.load %arg4[%c0_26, %c0_27] : memref<1x32xf32, #tpu.memory_space<vmem>>, vector<1x32xf32>
    %94 = vector.broadcast %93 : vector<1x32xf32> to vector<128x32xf32>
    %95 = arith.addf %92, %94 : vector<128x32xf32>
    %96 = vector.shape_cast %95 : vector<128x32xf32> to vector<32x4x32xf32>
    %97 = vector.extract_strided_slice %96 {offsets = [0, 0, 0], sizes = [32, 1, 32], strides = [1, 1, 1]} : vector<32x4x32xf32> to vector<32x1x32xf32>
    %98 = vector.shape_cast %97 : vector<32x1x32xf32> to vector<32x32xf32>
    %99 = vector.extract_strided_slice %96 {offsets = [0, 1, 0], sizes = [32, 1, 32], strides = [1, 1, 1]} : vector<32x4x32xf32> to vector<32x1x32xf32>
    %100 = vector.shape_cast %99 : vector<32x1x32xf32> to vector<32x32xf32>
    %101 = vector.extract_strided_slice %96 {offsets = [0, 2, 0], sizes = [32, 1, 32], strides = [1, 1, 1]} : vector<32x4x32xf32> to vector<32x1x32xf32>
    %102 = vector.shape_cast %101 : vector<32x1x32xf32> to vector<32x32xf32>
    %103 = vector.extract_strided_slice %96 {offsets = [0, 3, 0], sizes = [32, 1, 32], strides = [1, 1, 1]} : vector<32x4x32xf32> to vector<32x1x32xf32>
    %104 = vector.shape_cast %103 : vector<32x1x32xf32> to vector<32x32xf32>
    %105 = tpu.concatenate %98, %100, %102, %104 in 1 : vector<32x32xf32>, vector<32x32xf32>, vector<32x32xf32>, vector<32x32xf32> -> vector<32x128xf32>
    %c0_28 = arith.constant 0 : index
    %c0_29 = arith.constant 0 : index
    %106 = vector.load %arg5[%c0_28, %c0_29] : memref<32x128xf32, #tpu.memory_space<vmem>>, vector<32x128xf32>
    tpu.vector_store %arg5[%c0_28, %c0_29], %105 {strides = array<i32>} : memref<32x128xf32, #tpu.memory_space<vmem>>, vector<32x128xf32>,
    return
  }
  func.func @transform_0(%arg0: i32) -> (i32, i32) {
    %c0_i32 = arith.constant 0 : i32
    %c0_i32_0 = arith.constant 0 : i32
    return %arg0, %c0_i32 : i32, i32
  }
  func.func @transform_1(%arg0: i32) -> (i32, i32) {
    %c0_i32 = arith.constant 0 : i32
    %c0_i32_0 = arith.constant 0 : i32
    %c0_i32_1 = arith.constant 0 : i32
    return %c0_i32, %c0_i32_0 : i32, i32
  }
  func.func @transform_2(%arg0: i32) -> (i32, i32) {
    %c0_i32 = arith.constant 0 : i32
    %c0_i32_0 = arith.constant 0 : i32
    %c0_i32_1 = arith.constant 0 : i32
    return %c0_i32, %c0_i32_0 : i32, i32
  }
  func.func @transform_3(%arg0: i32) -> (i32, i32) {
    %c0_i32 = arith.constant 0 : i32
    %c0_i32_0 = arith.constant 0 : i32
    %c0_i32_1 = arith.constant 0 : i32
    return %c0_i32, %c0_i32_0 : i32, i32
  }
  func.func @transform_4(%arg0: i32) -> (i32, i32) {
    %c0_i32 = arith.constant 0 : i32
    %c0_i32_0 = arith.constant 0 : i32
    return %arg0, %c0_i32 : i32, i32
  }
}

</mosaic_0001>

<bundles_post_ra>
// kernel: tpu_custom_call.1
= control target key start
LH: loop header
LB: loop body
LE: loop exit
PB: predicated region body
PF: predicated region fallthrough
CT: control target
= control target key end

     0   :  { %vm36_vm0 = vcmask 130048   ;;  %s12428_s0 = inlined_call_operand.vmem [shape: f32[128,16], index: 0, kind: input, shape index: {}]   ;;  %s12429_s1 = inlined_call_operand.vmem [shape: f32[16,96], index: 1, kind: input, shape index: {}]   ;;  %s12430_s2 = inlined_call_operand.vmem [shape: f32[32,32], index: 2, kind: input, shape index: {}]   ;;  %s12431_s3 = inlined_call_operand.vmem [shape: f32[1,32], index: 3, kind: input, shape index: {}]   ;;  %s12432_s4 = inlined_call_operand.hbm [shape: f32[32,128], index: 4, kind: output, shape index: {}]  }
   0x1   :  { %v34_v0 = vld [vmem:[%s12429_s1] sm:$0xff]  ;;  %v35_v1 = vld [vmem:[%s12429_s1 + $0x8] sm:$0xff]  ;;  %v20_v5 = vld [vmem:[%s12428_s0 + $0x10] sm:$0xff] }
   0x2   :  { %v18_v2 = vld [vmem:[%s12428_s0] sm:$0xff]  ;;  %v9379_v3 = vpack.c.bf16 %v35_v1, %v34_v0  ;;  %v19_v4 = vld [vmem:[%s12428_s0 + $0x8] sm:$0xff] }
   0x3   :  { %8803 = vmatprep.mubr.msk.f32.mxu0 %vm36_vm0, %v18_v2 }
   0x4   :  { %9380 = vmatprep.subr.bf16.mxu0 %v9379_v3 }
   0x5   :  { %9382 = vmatpush3.bf16.msra.mxu0 %v9379_v3 }
   0x6   :  { %9 = vsyncpa [#allocation3], 0  ;;  %v21_v6 = vld [vmem:[%s12428_s0 + $0x18] sm:$0xff]  ;;  %v22_v7 = vld [vmem:[%s12428_s0 + $0x20] sm:$0xff]  ;;  %vm240_vm1 = vcmask 64512   ;;  %s10368_s24 = smov 96  }
   0x7   :  { %v23_v8 = vld [vmem:[%s12428_s0 + $0x28] sm:$0xff]  ;;  %v24_v9 = vld [vmem:[%s12428_s0 + $0x30] sm:$0xff]  ;;  %v25_v10 = vld [vmem:[%s12428_s0 + $0x38] sm:$0xff]  ;;  %s10370_s1 = smov 88   ;;  %s10371_s25 = smov 120   ;;  %vm7606_vm3 = vcmask 1041409  }
   0x8   :  { %8804 = vmatmul.mubr.msk.f32.vlgmr.msra.gmra.mrb[0].mxu0 %vm36_vm0, %v19_v4  ;;  %v26_v11 = vld [vmem:[%s12428_s0 + $0x40] sm:$0xff]  ;;  %v27_v12 = vld [vmem:[%s12428_s0 + $0x48] sm:$0xff]  ;;  %v28_v13 = vld [vmem:[%s12428_s0 + $0x50] sm:$0xff]  ;;  %s10372_s26 = smov 56   ;;  %s10373_s27 = smov 80   ;;  %vm7608_vm4 = vcmask 1042434  }
   0x9   :  { %8806 = vmatprep.mubr.msk.f32.mxu0 %vm36_vm0, %v20_v5  ;;  %v29_v14 = vld [vmem:[%s12428_s0 + $0x58] sm:$0xff]  ;;  %v30_v15 = vld [vmem:[%s12428_s0 + $0x60] sm:$0xff]  ;;  %v31_v16 = vld [vmem:[%s12428_s0 + $0x68] sm:$0xff]  ;;  %s10374_s28 = smov 112   ;;  %s10375_s5 = smov 48   ;;  %vm7610_vm5 = vcmask 1043459  }
   0xa   :  { %v32_v17 = vld [vmem:[%s12428_s0 + $0x70] sm:$0xff]  ;;  %v33_v18 = vld [vmem:[%s12428_s0 + $0x78] sm:$0xff]  ;;  %s10369_s0 = smov 64   ;;  %vm10572_vm2 = vmpackc.low %vm240_vm1, %vm240_vm1  ;;  %s10376_s8 = smov 72   ;;  %vm7612_vm6 = vcmask 1044484   ;;  %vm7614_vm7 = vcmask 1045509  }
   0xb   :  { %s10377_s9 = smov 104   ;;  %s10378_s12 = smov 40   ;;  %vm7616_vm8 = vcmask 1046534   ;;  %vm7618_vm9 = vcmask 1047559   ;;  %vm8149_vm10 = vcmask 261120   ;;  %vm8154_vm11 = vcmask 523264  }
   0xc   :  { %8807 = vmatmul.mubr.msk.f32.gmra.mrb[2].mxu0 %vm36_vm0, %v21_v6  ;;  %vm8159_vm12 = vcmask 785408   ;;  %s10380_s16 = smov [#allocation2]  }
   0xd   :  { %8809 = vmatprep.mubr.msk.f32.mxu0 %vm36_vm0, %v22_v7  ;;  %s8173_s17 = sshll.u32 %s10380_s16, 4  ;;  %s8174_s17 = int_to_ptr.vmem [resolvable:$true] %s8173_s17 }
   0xe   :  { %s10344_s18 = scalar_lea.vmem %s8174_s17, 512  ;;  %p10349_p1 = scmp.lt.s32.totalorder %s8174_s17, %s8174_s17 }
   0xf   :  { %p10345_p0 = scmp.ne.s32.totalorder %s8174_s17, %s10344_s18  ;;  %p10350_p2 = scmp.lt.s32.totalorder %s10344_s18, %s10344_s18 }
  0x10   :  { %8810 = vmatmul.mubr.msk.f32.gmra.mrb[4].mxu0 %vm36_vm0, %v23_v8 }
  0x11   :  { %8812 = vmatprep.mubr.msk.f32.mxu0 %vm36_vm0, %v24_v9  ;;  %p10351_p3 = por %p10350_p2, %p10349_p1 }
  0x13   :  { %p10352_p4 = pnand %p10351_p3, %p10345_p0 }
  0x14   :  { %8813 = vmatmul.mubr.msk.f32.gmra.mrb[6].mxu0 %vm36_vm0, %v25_v10 }
  0x15   :  { %8815 = vmatprep.mubr.msk.f32.mxu0 %vm36_vm0, %v26_v11 }
  0x18   :  { %8816 = vmatmul.mubr.msk.f32.gmra.mrb[8].mxu0 %vm36_vm0, %v27_v12 }
  0x19   :  { %8818 = vmatprep.mubr.msk.f32.mxu0 %vm36_vm0, %v28_v13 }
  0x1c   :  { %8819 = vmatmul.mubr.msk.f32.gmra.mrb[10].mxu0 %vm36_vm0, %v29_v14 }
  0x1d   :  { %8821 = vmatprep.mubr.msk.f32.mxu0 %vm36_vm0, %v30_v15 }
  0x20   :  { %8822 = vmatmul.mubr.msk.f32.gmra.mrb[12].mxu0 %vm36_vm0, %v31_v16 }
  0x21   :  { %8824 = vmatprep.mubr.msk.f32.mxu0 %vm36_vm0, %v32_v17 }
  0x24   :  { %8825 = vmatmul.mubr.msk.f32.gmra.mrb[14].mxu0 %vm36_vm0, %v33_v18 }
  0xdb   :  { %v10478_v19 = vpop.f32.mrb[0].mxu0 }
  0xdc   :  { %12453 = vst [vmem:[#allocation5_spill] sm:$0xff] %v10478_v19  ;;  %v10480_v20 = vpop.f32.mrb[1].mxu0 }
  0xdd   :  { %12454 = vst [vmem:[#allocation6_spill] sm:$0xff] %v10480_v20  ;;  %8831 = vmatprep.mubr.msk.f32.mxu1 %vm240_vm1, %v10480_v20  ;;  %v10486_v21 = vpack.i.bf16 %v10478_v19, %v10480_v20 }
  0xdf   :  { %9769 = vrot.lane.b32.xlu0 %v10486_v21, %s10368_s24  ;;  %v10490_v22 = vpop.f32.mrb[2].mxu0 }
  0xe0   :  { %12455 = vst [vmem:[#allocation7_spill] sm:$0xff] %v10490_v22  ;;  %v10492_v23 = vpop.f32.mrb[3].mxu0 }
  0xe1   :  { %12456 = vst [vmem:[#allocation8_spill] sm:$0xff] %v10492_v23  ;;  %v10496_v24 = vpack.i.bf16 %v10490_v22, %v10492_v23 }
  0xe3   :  { %9774 = vrot.lane.b32.xlu0 %v10496_v24, %s10368_s24  ;;  %v10500_v25 = vpop.f32.mrb[4].mxu0 }
  0xe4   :  { %12457 = vst [vmem:[#allocation9_spill] sm:$0xff] %v10500_v25  ;;  %v10502_v26 = vpop.f32.mrb[5].mxu0 }
  0xe5   :  { %12458 = vst [vmem:[#allocation10_spill] sm:$0xff] %v10502_v26  ;;  %v10506_v27 = vpack.i.bf16 %v10500_v25, %v10502_v26 }
  0xe7   :  { %9779 = vrot.lane.b32.xlu1 %v10506_v27, %s10368_s24  ;;  %v10510_v28 = vpop.f32.mrb[6].mxu0 }
  0xe8   :  { %12459 = vst [vmem:[#allocation11_spill] sm:$0xff] %v10510_v28  ;;  %v10512_v29 = vpop.f32.mrb[7].mxu0 }
  0xe9   :  { %12460 = vst [vmem:[#allocation12_spill] sm:$0xff] %v10512_v29  ;;  %v10516_v30 = vpack.i.bf16 %v10510_v28, %v10512_v29 }
  0xeb   :  { %12461 = vst [vmem:[#allocation13_spill] sm:$0xff] %v10516_v30  ;;  %9784 = vrot.lane.b32.xlu1 %v10516_v30, %s10368_s24  ;;  %v10520_v31 = vpop.f32.mrb[8].mxu0 }
  0xec   :  { %12462 = vst [vmem:[#allocation14_spill] sm:$0xff] %v10520_v31  ;;  %v10522_v32 = vpop.f32.mrb[9].mxu0 }
  0xed   :  { %12463 = vst [vmem:[#allocation15_spill] sm:$0xff] %v10522_v32  ;;  %8859 = vmatprep.mubr.msk.f32.mxu0 %vm240_vm1, %v10522_v32  ;;  %v10528_v33 = vpack.i.bf16 %v10520_v31, %v10522_v32 }
  0xef   :  { %9789 = vrot.lane.b32.xlu0 %v10528_v33, %s10368_s24  ;;  %v10532_v34 = vpop.f32.mrb[10].mxu0 }
  0xf0   :  { %12464 = vst [vmem:[#allocation16_spill] sm:$0xff] %v10532_v34  ;;  %v10534_v35 = vpop.f32.mrb[11].mxu0 }
  0xf1   :  { %12465 = vst [vmem:[#allocation17_spill] sm:$0xff] %v10534_v35  ;;  %v10538_v36 = vpack.i.bf16 %v10532_v34, %v10534_v35 }
  0xf3   :  { %v10540_v37 = vpop.f32.mrb[12].mxu0  ;;  %9794 = vrot.lane.b32.xlu1 %v10538_v36, %s10368_s24 }
  0xf4   :  { %12466 = vst [vmem:[#allocation18_spill] sm:$0xff] %v10540_v37  ;;  %v10544_v38 = vpop.f32.mrb[13].mxu0 }
  0xf5   :  { %12467 = vst [vmem:[#allocation19_spill] sm:$0xff] %v10544_v38  ;;  %v10548_v39 = vpack.i.bf16 %v10540_v37, %v10544_v38 }
  0xf7   :  { %9799 = vrot.lane.b32.xlu0 %v10548_v39, %s10368_s24  ;;  %v10552_v40 = vpop.f32.mrb[14].mxu0 }
  0xf8   :  { %12468 = vst [vmem:[#allocation20_spill] sm:$0xff] %v10552_v40  ;;  %v10554_v41 = vpop.f32.mrb[15].mxu0 }
  0xf9   :  { %12469 = vst [vmem:[#allocation21_spill] sm:$0xff] %v10554_v41  ;;  %v10558_v42 = vpack.i.bf16 %v10552_v40, %v10554_v41 }
  0xfb   :  { %12470 = vst [vmem:[#allocation22_spill] sm:$0xff] %v10558_v42  ;;  %9809 = vrot.lane.b32.xlu0 %v10486_v21, %s10369_s0  ;;  %9804 = vrot.lane.b32.xlu1 %v10558_v42, %s10368_s24 }
  0xff   :  { %9819 = vrot.lane.b32.xlu0 %v10506_v27, %s10369_s0  ;;  %9814 = vrot.lane.b32.xlu1 %v10496_v24, %s10369_s0 }
 0x103   :  { %9824 = vrot.lane.b32.xlu1 %v10516_v30, %s10369_s0 }
 0x151   :  { %v9770_v43 = vpop.permute.xlu0 %9769 }
 0x152   :  { %v9772_v44 = vunpack.i.h.bf16 %v9770_v43  ;;  %v9771_v45 = vunpack.i.l.bf16 %v9770_v43 }
 0x154   :  { %v9383_v47 = vpack.c.bf16 %v9772_v44, %v9771_v45 }
 0x155   :  { %v9775_v48 = vpop.permute.xlu0 %9774 }
 0x156   :  { %v9777_v49 = vunpack.i.h.bf16 %v9775_v48  ;;  %v9776_v50 = vunpack.i.l.bf16 %v9775_v48  ;;  %9385 = vmatprep.subr.msk.bf16.mxu1 %vm10572_vm2, %v9383_v47 }
 0x157   :  { %9388 = vmatpush3.bf16.xpose.msk.msra.mxu1 %vm10572_vm2, %v9383_v47 }
 0x158   :  { %v9389_v51 = vpack.c.bf16 %v9777_v49, %v9776_v50 }
 0x159   :  { %v9780_v52 = vpop.permute.xlu1 %9779 }
 0x15a   :  { %v9782_v53 = vunpack.i.h.bf16 %v9780_v52  ;;  %v9781_v54 = vunpack.i.l.bf16 %v9780_v52  ;;  %9391 = vmatprep.subr.msk.bf16.mxu1 %vm10572_vm2, %v9389_v51 }
 0x15c   :  { %v9395_v55 = vpack.c.bf16 %v9782_v53, %v9781_v54 }
 0x15d   :  { %v9785_v56 = vpop.permute.xlu1 %9784 }
 0x15e   :  { %8832 = vmatmul.mubr.msk.f32.vlgmr.msra.gmra.mrb[0].mxu1 %vm240_vm1, %v10478_v19  ;;  %v9787_v57 = vunpack.i.h.bf16 %v9785_v56  ;;  %v9786_v58 = vunpack.i.l.bf16 %v9785_v56 }
 0x15f   :  { %9394 = vmatpush3.bf16.xpose.msk.msra.mxu1 %vm10572_vm2, %v9389_v51  ;;  %8838 = vmatprep.mubr.msk.f32.mxu1 %vm240_vm1, %v10492_v23 }
 0x160   :  { %9397 = vmatprep.subr.msk.bf16.mxu1 %vm10572_vm2, %v9395_v55  ;;  %v9401_v62 = vpack.c.bf16 %v9787_v57, %v9786_v58 }
 0x161   :  { %v9790_v59 = vpop.permute.xlu0 %9789 }
 0x162   :  { %v9792_v60 = vunpack.i.h.bf16 %v9790_v59  ;;  %v9791_v61 = vunpack.i.l.bf16 %v9790_v59 }
 0x164   :  { %v9407_v63 = vpack.c.bf16 %v9792_v60, %v9791_v61 }
 0x165   :  { %v9795_v0 = vpop.permute.xlu1 %9794 }
 0x166   :  { %8839 = vmatmul.mubr.msk.f32.vlgmr.msra.gmra.mrb[2].mxu1 %vm240_vm1, %v10490_v22  ;;  %9409 = vmatprep.subr.msk.bf16.mxu0 %vm10572_vm2, %v9407_v63  ;;  %v9797_v1 = vunpack.i.h.bf16 %v9795_v0  ;;  %v9796_v2 = vunpack.i.l.bf16 %v9795_v0 }
 0x167   :  { %9400 = vmatpush3.bf16.xpose.msk.msra.mxu1 %vm10572_vm2, %v9395_v55  ;;  %8845 = vmatprep.mubr.msk.f32.mxu1 %vm240_vm1, %v10502_v26 }
 0x168   :  { %9412 = vmatpush3.bf16.xpose.msk.msra.mxu0 %vm10572_vm2, %v9407_v63  ;;  %9403 = vmatprep.subr.msk.bf16.mxu1 %vm10572_vm2, %v9401_v62  ;;  %v9413_v7 = vpack.c.bf16 %v9797_v1, %v9796_v2 }
 0x169   :  { %v9800_v3 = vpop.permute.xlu0 %9799 }
 0x16a   :  { %v9802_v4 = vunpack.i.h.bf16 %v9800_v3  ;;  %v9801_v5 = vunpack.i.l.bf16 %v9800_v3 }
 0x16c   :  { %v9419_v6 = vpack.c.bf16 %v9802_v4, %v9801_v5 }
 0x16d   :  { %v9810_v8 = vpop.permute.xlu0 %9809  ;;  %v9805_v9 = vpop.permute.xlu1 %9804 }
 0x16e   :  { %v9812_v10 = vunpack.i.h.bf16 %v9810_v8  ;;  %v9811_v11 = vunpack.i.l.bf16 %v9810_v8  ;;  %8846 = vmatmul.mubr.msk.f32.vlgmr.msra.gmra.mrb[4].mxu1 %vm240_vm1, %v10500_v25  ;;  %9421 = vmatprep.subr.msk.bf16.mxu0 %vm10572_vm2, %v9419_v6  ;;  %v9807_v13 = vunpack.i.h.bf16 %v9805_v9  ;;  %v9806_v14 = vunpack.i.l.bf16 %v9805_v9 }
 0x16f   :  { %8860 = vmatmul.mubr.msk.f32.vlgmr.msra.gmra.mrb[16].mxu0 %vm240_vm1, %v10520_v31  ;;  %9406 = vmatpush3.bf16.xpose.msk.msra.mxu1 %vm10572_vm2, %v9401_v62 }
 0x170   :  { %8852 = vmatprep.mubr.msk.f32.mxu1 %vm240_vm1, %v10512_v29  ;;  %9424 = vmatpush3.bf16.xpose.msk.msra.mxu0 %vm10572_vm2, %v9419_v6  ;;  %v9431_v12 = vpack.c.bf16 %v9812_v10, %v9811_v11  ;;  %v9425_v18 = vpack.c.bf16 %v9807_v13, %v9806_v14 }
 0x171   :  { %8873 = vmatprep.mubr.msk.f32.mxu0 %vm240_vm1, %v10544_v38  ;;  %v9815_v15 = vpop.permute.xlu1 %9814  ;;  %9415 = vmatprep.subr.msk.bf16.mxu1 %vm10572_vm2, %v9413_v7  ;;  %v9820_v43 = vpop.permute.xlu0 %9819 }
 0x172   :  { %9432 = vmatprep.subr.bf16.mxu0 %v9431_v12  ;;  %v9817_v16 = vunpack.i.h.bf16 %v9815_v15  ;;  %v9816_v17 = vunpack.i.l.bf16 %v9815_v15  ;;  %v9822_v45 = vunpack.i.h.bf16 %v9820_v43  ;;  %v9821_v47 = vunpack.i.l.bf16 %v9820_v43 }
 0x174   :  { %v10624_v44 = vpack.c.bf16 %v9817_v16, %v9816_v17  ;;  %v9439_v48 = vpack.c.bf16 %v9822_v45, %v9821_v47 }
 0x175   :  { %v10697_v16 = vpop.permute.xlu1 %9824 }
 0x176   :  { %8853 = vmatmul.mubr.msk.f32.vlgmr.msra.gmra.mrb[6].mxu1 %vm240_vm1, %v10510_v28 }
 0x177   :  { %8874 = vmatmul.mubr.msk.f32.vlgmr.msra.gmra.mrb[18].mxu0 %vm240_vm1, %v10540_v37  ;;  %9418 = vmatpush3.bf16.xpose.msk.msra.mxu1 %vm10572_vm2, %v9413_v7 }
 0x178   :  { %8866 = vmatprep.mubr.msk.f32.mxu1 %vm240_vm1, %v10534_v35  ;;  %9434 = vmatpush3.bf16.msra.mxu0 %v9431_v12 }
 0x179   :  { %9436 = vmatprep.subr.bf16.mxu0 %v10624_v44  ;;  %9427 = vmatprep.subr.msk.bf16.mxu1 %vm10572_vm2, %v9425_v18 }
 0x17e   :  { %8867 = vmatmul.mubr.msk.f32.vlgmr.msra.gmra.mrb[8].mxu1 %vm240_vm1, %v10532_v34 }
 0x17f   :  { %9430 = vmatpush3.bf16.xpose.msk.msra.mxu1 %vm10572_vm2, %v9425_v18  ;;  %8880 = vmatprep.mubr.msk.f32.mxu1 %vm240_vm1, %v10554_v41 }
 0x180   :  { %9440 = vmatprep.subr.bf16.mxu1 %v9439_v48 }
 0x186   :  { %8881 = vmatmul.mubr.msk.f32.vlgmr.msra.gmra.mrb[10].mxu1 %vm240_vm1, %v10552_v40 }
 0x187   :  { %9442 = vmatpush3.bf16.msra.mxu1 %v9439_v48 }
 0x231   :  { %v8833_v49 = vpop.f32.mrb[0].mxu1 }
 0x232   :  { %v315_v50 = vpop.f32.mrb[1].mxu1  ;;  %v950_v51 = vsel %vm36_vm0, %v8833_v49, -inf }
 0x233   :  { %951 = vmax.xlane.f32.xlu1 %v950_v51  ;;  %v947_v52 = vsel %vm36_vm0, %v315_v50, -inf }
 0x234   :  { %948 = vmax.xlane.f32.xlu0 %v947_v52 }
 0x239   :  { %v8840_v53 = vpop.f32.mrb[2].mxu1 }
 0x23a   :  { %v404_v54 = vpop.f32.mrb[3].mxu1  ;;  %v956_v55 = vsel %vm36_vm0, %v8840_v53, -inf }
 0x23b   :  { %957 = vmax.xlane.f32.xlu1 %v956_v55  ;;  %v953_v56 = vsel %vm36_vm0, %v404_v54, -inf }
 0x23c   :  { %954 = vmax.xlane.f32.xlu0 %v953_v56 }
 0x241   :  { %v10643_v57 = vpop.f32.mrb[4].mxu1 }
 0x242   :  { %v10645_v58 = vpop.f32.mrb[16].mxu0  ;;  %v10647_v59 = vpop.f32.mrb[5].mxu1  ;;  %v962_v60 = vsel %vm36_vm0, %v10643_v57, -inf }
 0x243   :  { %v10651_v61 = vpop.f32.mrb[17].mxu0  ;;  %963 = vmax.xlane.f32.xlu0 %v962_v60  ;;  %v974_v62 = vsel %vm36_vm0, %v10645_v58, -inf  ;;  %v959_v3 = vsel %vm36_vm0, %v10647_v59, -inf }
 0x244   :  { %v971_v6 = vsel %vm36_vm0, %v10651_v61, -inf }
 0x247   :  { %975 = vmax.xlane.f32.xlu0 %v974_v62 }
 0x249   :  { %v10655_v63 = vpop.f32.mrb[6].mxu1 }
 0x24a   :  { %v10657_v0 = vpop.f32.mrb[18].mxu0  ;;  %v10659_v1 = vpop.f32.mrb[7].mxu1  ;;  %v968_v2 = vsel %vm36_vm0, %v10655_v63, -inf }
 0x24b   :  { %v10665_v4 = vpop.f32.mrb[19].mxu0  ;;  %969 = vmax.xlane.f32.xlu1 %v968_v2  ;;  %960 = vmax.xlane.f32.xlu0 %v959_v3  ;;  %v965_v5 = vsel %vm36_vm0, %v10659_v1, -inf  ;;  %v986_v9 = vsel %vm36_vm0, %v10657_v0, -inf }
 0x24c   :  { %v983_v10 = vsel %vm36_vm0, %v10665_v4, -inf }
 0x24f   :  { %966 = vmax.xlane.f32.xlu1 %v965_v5  ;;  %972 = vmax.xlane.f32.xlu0 %v971_v6 }
 0x251   :  { %v10671_v7 = vpop.f32.mrb[8].mxu1 }
 0x252   :  { %v10673_v8 = vpop.f32.mrb[9].mxu1  ;;  %v980_v11 = vsel %vm36_vm0, %v10671_v7, -inf }
 0x253   :  { %987 = vmax.xlane.f32.xlu0 %v986_v9  ;;  %984 = vmax.xlane.f32.xlu1 %v983_v10  ;;  %v977_v14 = vsel %vm36_vm0, %v10673_v8, -inf }
 0x257   :  { %981 = vmax.xlane.f32.xlu0 %v980_v11 }
 0x259   :  { %v10681_v12 = vpop.f32.mrb[10].mxu1 }
 0x25a   :  { %v10683_v13 = vpop.f32.mrb[11].mxu1  ;;  %v992_v15 = vsel %vm36_vm0, %v10681_v12, -inf }
 0x25b   :  { %v989_v17 = vsel %vm36_vm0, %v10683_v13, -inf }
 0x264   :  { %9834 = vrot.lane.b32.xlu1 %v10538_v36, %s10369_s0 }
 0x26d   :  { %9829 = vrot.lane.b32.xlu0 %v10528_v33, %s10369_s0 }
 0x288   :  { %978 = vmax.xlane.f32.xlu1 %v977_v14 }
 0x28c   :  { %993 = vmax.xlane.f32.xlu0 %v992_v15 }
 0x299   :  { %9844 = vrot.lane.b32.xlu1 %v10558_v42, %s10369_s0 }
 0x2a2   :  { %9839 = vrot.lane.b32.xlu0 %v10548_v39, %s10369_s0 }
 0x2bd   :  { %990 = vmax.xlane.f32.xlu1 %v989_v17 }
 0x2c0   :  { %v952_v18 = vpop.xlane.xlu1 %951 }
 0x2c1   :  { %v996_v43 = vsub.f32 %v8833_v49, %v952_v18  ;;  %v949_v45 = vpop.xlane.xlu0 %948 }
 0x2c2   :  { %v995_v47 = vsub.f32 %v315_v50, %v949_v45 }
 0x2c3   :  { %v1013_v48 = vmul.f32 1.442695, %v996_v43 }
 0x2c4   :  { %v1011_v51 = vmul.f32 1.442695, %v995_v47 }
 0x2c5   :  { %10088 = vpow2.f32 %v1013_v48 }
 0x2c6   :  { %10090 = vpow2.f32 %v1011_v51 }
 0x2c8   :  { %v958_v52 = vpop.xlane.xlu1 %957 }
 0x2c9   :  { %v998_v55 = vsub.f32 %v8840_v53, %v958_v52  ;;  %v955_v56 = vpop.xlane.xlu0 %954 }
 0x2ca   :  { %v997_v60 = vsub.f32 %v404_v54, %v955_v56 }
 0x2cb   :  { %v1017_v62 = vmul.f32 1.442695, %v998_v55 }
 0x2cc   :  { %v1015_v2 = vmul.f32 1.442695, %v997_v60 }
 0x2cd   :  { %10092 = vpow2.f32 %v1017_v62 }
 0x2ce   :  { %10094 = vpow2.f32 %v1015_v2 }
 0x2cf   :  { %v10701_v3 = vpop.eup %10088 }
 0x2d0   :  { %v10703_v5 = vpop.eup %10090  ;;  %v964_v6 = vpop.xlane.xlu0 %963  ;;  %v1046_v49 = vsel %vm36_vm0, %v10701_v3, 0.0 }
 0x2d1   :  { %v1000_v50 = vsub.f32 %v10643_v57, %v964_v6  ;;  %1047 = vadd.xlane.f32.xlu0 %v1046_v49  ;;  %v1043_v53 = vsel %vm36_vm0, %v10703_v5, 0.0 }
 0x2d2   :  { %1044 = vadd.xlane.f32.xlu1 %v1043_v53 }
 0x2d3   :  { %v1021_v54 = vmul.f32 1.442695, %v1000_v50 }
 0x2d4   :  { %v976_v9 = vpop.xlane.xlu0 %975 }
 0x2d5   :  { %10096 = vpow2.f32 %v1021_v54  ;;  %v1004_v10 = vsub.f32 %v10645_v58, %v976_v9 }
 0x2d7   :  { %v10711_v11 = vpop.eup %10092  ;;  %v1029_v14 = vmul.f32 1.442695, %v1004_v10 }
 0x2d8   :  { %v970_v15 = vpop.xlane.xlu1 %969  ;;  %v961_v17 = vpop.xlane.xlu0 %960  ;;  %v1052_v18 = vsel %vm36_vm0, %v10711_v11, 0.0 }
 0x2d9   :  { %v10715_v43 = vpop.eup %10094  ;;  %10098 = vpow2.f32 %v1029_v14  ;;  %v1002_v57 = vsub.f32 %v10655_v63, %v970_v15  ;;  %v999_v45 = vsub.f32 %v10647_v59, %v961_v17  ;;  %1053 = vadd.xlane.f32.xlu1 %v1052_v18 }
 0x2da   :  { %v1049_v52 = vsel %vm36_vm0, %v10715_v43, 0.0 }
 0x2db   :  { %v1025_v47 = vmul.f32 1.442695, %v1002_v57  ;;  %v1019_v48 = vmul.f32 1.442695, %v999_v45 }
 0x2dc   :  { %v967_v51 = vpop.xlane.xlu1 %966  ;;  %v973_v58 = vpop.xlane.xlu0 %972 }
 0x2dd   :  { %10100 = vpow2.f32 %v1025_v47  ;;  %v1001_v55 = vsub.f32 %v10659_v1, %v967_v51  ;;  %v1003_v56 = vsub.f32 %v10651_v61, %v973_v58  ;;  %1050 = vadd.xlane.f32.xlu1 %v1049_v52 }
 0x2de   :  { %10102 = vpow2.f32 %v1019_v48 }
 0x2df   :  { %v10723_v60 = vpop.eup %10096  ;;  %v1023_v63 = vmul.f32 1.442695, %v1001_v55  ;;  %v1027_v62 = vmul.f32 1.442695, %v1003_v56 }
 0x2e0   :  { %v988_v59 = vpop.xlane.xlu0 %987  ;;  %v985_v2 = vpop.xlane.xlu1 %984  ;;  %v1058_v6 = vsel %vm36_vm0, %v10723_v60, 0.0 }
 0x2e1   :  { %10104 = vpow2.f32 %v1023_v63  ;;  %v1008_v49 = vsub.f32 %v10657_v0, %v988_v59  ;;  %v1007_v50 = vsub.f32 %v10665_v4, %v985_v2  ;;  %1059 = vadd.xlane.f32.xlu0 %v1058_v6 }
 0x2e2   :  { %10106 = vpow2.f32 %v1027_v62 }
 0x2e3   :  { %v10729_v1 = vpop.eup %10098  ;;  %v1037_v61 = vmul.f32 1.442695, %v1008_v49  ;;  %v1035_v53 = vmul.f32 1.442695, %v1007_v50 }
 0x2e4   :  { %v982_v54 = vpop.xlane.xlu0 %981  ;;  %v1070_v9 = vsel %vm36_vm0, %v10729_v1, 0.0  ;;  %v10775_v2 = vpop.permute.xlu1 %9834 }
 0x2e5   :  { %10108 = vpow2.f32 %v1037_v61  ;;  %v1006_v10 = vsub.f32 %v10671_v7, %v982_v54  ;;  %1071 = vadd.xlane.f32.xlu0 %v1070_v9 }
 0x2e6   :  { %10110 = vpow2.f32 %v1035_v53 }
 0x2e7   :  { %v10734_v14 = vpop.eup %10100  ;;  %v1033_v0 = vmul.f32 1.442695, %v1006_v10 }
 0x2e8   :  { %v10736_v15 = vpop.eup %10102  ;;  %v9830_v4 = vpop.permute.xlu0 %9829  ;;  %v1064_v17 = vsel %vm36_vm0, %v10734_v14, 0.0 }
 0x2e9   :  { %10112 = vpow2.f32 %v1033_v0  ;;  %v9832_v18 = vunpack.i.h.bf16 %v9830_v4  ;;  %v9831_v57 = vunpack.i.l.bf16 %v9830_v4  ;;  %v1055_v45 = vsel %vm36_vm0, %v10736_v15, 0.0  ;;  %1065 = vadd.xlane.f32.xlu1 %v1064_v17 }
 0x2ea   :  { %1056 = vadd.xlane.f32.xlu0 %v1055_v45 }
 0x2eb   :  { %v10742_v7 = vpop.eup %10104  ;;  %v10744_v47 = vpack.c.bf16 %v9832_v18, %v9831_v57 }
 0x2ec   :  { %v10746_v48 = vpop.eup %10106  ;;  %v1061_v51 = vsel %vm36_vm0, %v10742_v7, 0.0 }
 0x2ed   :  { %v1067_v58 = vsel %vm36_vm0, %v10746_v48, 0.0  ;;  %9448 = vmatprep.subr.bf16.mxu1 %v10744_v47  ;;  %1062 = vadd.xlane.f32.xlu1 %v1061_v51 }
 0x2ee   :  { %1068 = vadd.xlane.f32.xlu0 %v1067_v58 }
 0x2ef   :  { %v10753_v52 = vpop.eup %10108 }
 0x2f0   :  { %v10755_v55 = vpop.eup %10110  ;;  %v1082_v56 = vsel %vm36_vm0, %v10753_v52, 0.0 }
 0x2f1   :  { %v1079_v63 = vsel %vm36_vm0, %v10755_v55, 0.0 }
 0x2f2   :  { %1083 = vadd.xlane.f32.xlu0 %v1082_v56  ;;  %1080 = vadd.xlane.f32.xlu1 %v1079_v63 }
 0x2f3   :  { %v10761_v62 = vpop.eup %10112 }
 0x2f4   :  { %v1076_v59 = vsel %vm36_vm0, %v10761_v62, 0.0 }
 0x2f6   :  { %1077 = vadd.xlane.f32.xlu0 %v1076_v59 }
 0x303   :  { %9854 = vrot.lane.b32.xlu1 %v10496_v24, %s10370_s1 }
 0x307   :  { %1819 = vrot.lane.b32.xlu1 %v10480_v20, %s10371_s25 }
 0x30b   :  { %9864 = vrot.lane.b32.xlu1 %v10516_v30, %s10370_s1 }
 0x30c   :  { %9849 = vrot.lane.b32.xlu0 %v10486_v21, %s10370_s1 }
 0x310   :  { %9859 = vrot.lane.b32.xlu0 %v10506_v27, %s10370_s1 }
 0x314   :  { %1821 = vrot.lane.b32.xlu0 %v10478_v19, %s10371_s25 }
 0x315   :  { %v979_v6 = vpop.xlane.xlu1 %978 }
 0x316   :  { %v1005_v49 = vsub.f32 %v10673_v8, %v979_v6 }
 0x318   :  { %1910 = vrot.lane.b32.xlu0 %v10492_v23, %s10371_s25  ;;  %v1031_v61 = vmul.f32 1.442695, %v1005_v49  ;;  %v9827_v49 = vunpack.i.h.bf16 %v10697_v16 }
 0x319   :  { %v994_v50 = vpop.xlane.xlu0 %993  ;;  %v10801_v0 = vpop.permute.xlu1 %9844 }
 0x31a   :  { %v1010_v53 = vsub.f32 %v10681_v12, %v994_v50  ;;  %10114 = vpow2.f32 %v1031_v61 }
 0x31c   :  { %2001 = vrot.lane.b32.xlu0 %v10502_v26, %s10371_s25  ;;  %v1041_v54 = vmul.f32 1.442695, %v1010_v53 }
 0x31d   :  { %v10806_v45 = vpop.permute.xlu0 %9839 }
 0x31e   :  { %10116 = vpow2.f32 %v1041_v54 }
 0x320   :  { %2092 = vrot.lane.b32.xlu0 %v10512_v29, %s10371_s25 }
 0x324   :  { %9869 = vrot.lane.b32.xlu0 %v10538_v36, %s10370_s1  ;;  %v10791_v8 = vpop.eup %10114 }
 0x325   :  { %v1073_v12 = vsel %vm36_vm0, %v10791_v8, 0.0 }
 0x328   :  { %2274 = vrot.lane.b32.xlu0 %v10534_v35, %s10371_s25  ;;  %v10797_v9 = vpop.eup %10116 }
 0x329   :  { %v1088_v10 = vsel %vm36_vm0, %v10797_v9, 0.0 }
 0x32c   :  { %2456 = vrot.lane.b32.xlu0 %v10554_v41, %s10371_s25 }
 0x32f   :  { %1074 = vadd.xlane.f32.xlu1 %v1073_v12 }
 0x333   :  { %1089 = vadd.xlane.f32.xlu1 %v1088_v10 }
 0x34a   :  { %v991_v4 = vpop.xlane.xlu1 %990 }
 0x34b   :  { %v1009_v17 = vsub.f32 %v10683_v13, %v991_v4  ;;  %v9826_v13 = vunpack.i.l.bf16 %v10697_v16  ;;  %v9836_v4 = vunpack.i.l.bf16 %v10775_v2 }
 0x34d   :  { %v1039_v18 = vmul.f32 1.442695, %v1009_v17  ;;  %v9443_v12 = vpack.c.bf16 %v9827_v49, %v9826_v13  ;;  %v9841_v49 = vunpack.i.l.bf16 %v10806_v45 }
 0x34f   :  { %10118 = vpow2.f32 %v1039_v18 }
 0x359   :  { %v10804_v57 = vpop.eup %10118 }
 0x35a   :  { %v1085_v51 = vsel %vm36_vm0, %v10804_v57, 0.0 }
 0x35b   :  { %1086 = vadd.xlane.f32.xlu1 %v1085_v51 }
 0x35e   :  { %v1048_v58 = vpop.xlane.xlu0 %1047 }
 0x35f   :  { %10120 = vrcp.f32 %v1048_v58  ;;  %v1045_v56 = vpop.xlane.xlu1 %1044 }
 0x360   :  { %10122 = vrcp.f32 %v1045_v56 }
 0x366   :  { %v1054_v63 = vpop.xlane.xlu1 %1053 }
 0x367   :  { %10124 = vrcp.f32 %v1054_v63 }
 0x369   :  { %v10121_v59 = vpop.eup %10120 }
 0x36a   :  { %v10123_v6 = vpop.eup %10122  ;;  %v1051_v50 = vpop.xlane.xlu1 %1050  ;;  %v1108_v53 = vmul.f32 %v10121_v59, %v10701_v3  ;;  %v9837_v3 = vunpack.i.h.bf16 %v10775_v2 }
 0x36b   :  { %10126 = vrcp.f32 %v1051_v50  ;;  %v1107_v61 = vmul.f32 %v10123_v6, %v10703_v5  ;;  %v9842_v6 = vunpack.i.h.bf16 %v10806_v45 }
 0x36c   :  { %1912 = vrot.lane.b32.xlu1 %v10490_v22, %s10371_s25  ;;  %v9451_v58 = vpack.c.bf16 %v9837_v3, %v9836_v4 }
 0x36d   :  { %8887 = vmatprep.mubr.msk.f32.mxu0 %vm36_vm0, %v1107_v61  ;;  %v9455_v3 = vpack.c.bf16 %v9842_v6, %v9841_v49 }
 0x36e   :  { %v1060_v54 = vpop.xlane.xlu0 %1059  ;;  %8888 = vmatmul.mubr.msk.f32.vlgmr.msra.gmra.mrb[20].mxu0 %vm36_vm0, %v1108_v53 }
 0x36f   :  { %9438 = vmatpush3.bf16.msra.mxu0 %v10624_v44  ;;  %10128 = vrcp.f32 %v1060_v54 }
 0x370   :  { %9444 = vmatprep.subr.bf16.mxu0 %v9443_v12  ;;  %2003 = vrot.lane.b32.xlu1 %v10500_v25, %s10371_s25 }
 0x371   :  { %v10125_v10 = vpop.eup %10124 }
 0x372   :  { %v1072_v16 = vpop.xlane.xlu0 %1071  ;;  %v1110_v44 = vmul.f32 %v10125_v10, %v10711_v11  ;;  %v9846_v10 = vunpack.i.l.bf16 %v10801_v0 }
 0x374   :  { %2094 = vrot.lane.b32.xlu1 %v10510_v28, %s10371_s25 }
 0x375   :  { %v10127_v5 = vpop.eup %10126 }
 0x376   :  { %v1066_v17 = vpop.xlane.xlu1 %1065  ;;  %v1109_v18 = vmul.f32 %v10127_v5, %v10715_v43 }
 0x377   :  { %v1057_v51 = vpop.xlane.xlu0 %1056 }
 0x378   :  { %10130 = vrcp.f32 %v1057_v51  ;;  %9874 = vrot.lane.b32.xlu1 %v10558_v42, %s10370_s1  ;;  %8894 = vmatprep.mubr.msk.f32.mxu0 %vm36_vm0, %v1109_v18 }
 0x379   :  { %10132 = vrcp.f32 %v1072_v16  ;;  %8895 = vmatmul.mubr.msk.f32.vlgmr.msra.gmra.mrb[22].mxu0 %vm36_vm0, %v1110_v44  ;;  %v10129_v63 = vpop.eup %10128  ;;  %v9847_v16 = vunpack.i.h.bf16 %v10801_v0 }
 0x37a   :  { %10134 = vrcp.f32 %v1066_v17  ;;  %9446 = vmatpush3.bf16.msra.mxu0 %v9443_v12  ;;  %v1063_v2 = vpop.xlane.xlu1 %1062  ;;  %v1112_v54 = vmul.f32 %v10129_v63, %v10723_v60 }
 0x37b   :  { %v1069_v56 = vpop.xlane.xlu0 %1068  ;;  %10136 = vrcp.f32 %v1063_v2  ;;  %9452 = vmatprep.subr.bf16.mxu0 %v9451_v58  ;;  %v9459_v51 = vpack.c.bf16 %v9847_v16, %v9846_v10 }
 0x37c   :  { %10138 = vrcp.f32 %v1069_v56  ;;  %2276 = vrot.lane.b32.xlu1 %v10532_v34, %s10371_s25 }
 0x37f   :  { %v1084_v11 = vpop.xlane.xlu0 %1083  ;;  %v1081_v43 = vpop.xlane.xlu1 %1080 }
 0x380   :  { %10140 = vrcp.f32 %v1084_v11  ;;  %2458 = vrot.lane.b32.xlu1 %v10552_v40, %s10371_s25 }
 0x381   :  { %10142 = vrcp.f32 %v1081_v43 }
 0x382   :  { %v10131_v59 = vpop.eup %10130 }
 0x383   :  { %v10133_v13 = vpop.eup %10132  ;;  %v1078_v50 = vpop.xlane.xlu0 %1077  ;;  %v1111_v61 = vmul.f32 %v10131_v59, %v10736_v15 }
 0x384   :  { %v10135_v53 = vpop.eup %10134  ;;  %v1116_v0 = vmul.f32 %v10133_v13, %v10729_v1  ;;  %v9855_v44 = vpop.permute.xlu1 %9854  ;;  %10144 = vrcp.f32 %v1078_v50 }
 0x385   :  { %v10137_v12 = vpop.eup %10136  ;;  %8901 = vmatprep.mubr.msk.f32.mxu1 %vm36_vm0, %v1111_v61  ;;  %v1114_v60 = vmul.f32 %v10135_v53, %v10734_v14  ;;  %v9857_v61 = vunpack.i.h.bf16 %v9855_v44  ;;  %v9856_v53 = vunpack.i.l.bf16 %v9855_v44 }
 0x386   :  { %v10139_v5 = vpop.eup %10138  ;;  %8902 = vmatmul.mubr.msk.f32.vlgmr.msra.gmra.mrb[12].mxu1 %vm36_vm0, %v1112_v54  ;;  %v1113_v45 = vmul.f32 %v10137_v12, %v10742_v7 }
 0x387   :  { %9450 = vmatpush3.bf16.msra.mxu1 %v10744_v47  ;;  %v9850_v4 = vpop.permute.xlu0 %9849  ;;  %v1115_v15 = vmul.f32 %v10139_v5, %v10746_v48  ;;  %v9469_v16 = vpack.c.bf16 %v9857_v61, %v9856_v53 }
 0x388   :  { %v9852_v17 = vunpack.i.h.bf16 %v9850_v4  ;;  %v9851_v18 = vunpack.i.l.bf16 %v9850_v4  ;;  %9456 = vmatprep.subr.bf16.mxu1 %v9455_v3  ;;  %8908 = vmatprep.mubr.msk.f32.mxu0 %vm36_vm0, %v1113_v45  ;;  %v1820_v63 = vpop.permute.xlu1 %1819 }
 0x389   :  { %8915 = vmatprep.mubr.msk.f32.mxu1 %vm36_vm0, %v1115_v15  ;;  %8909 = vmatmul.mubr.msk.f32.vlgmr.msra.gmra.mrb[24].mxu0 %vm36_vm0, %v1114_v60 }
 0x38a   :  { %v10141_v7 = vpop.eup %10140  ;;  %v9463_v47 = vpack.c.bf16 %v9852_v17, %v9851_v18  ;;  %8916 = vmatmul.mubr.msk.f32.vlgmr.msra.gmra.mrb[14].mxu1 %vm36_vm0, %v1116_v0  ;;  %9454 = vmatpush3.bf16.msra.mxu0 %v9451_v58 }
 0x38b   :  { %v10143_v48 = vpop.eup %10142  ;;  %9458 = vmatpush3.bf16.msra.mxu1 %v9455_v3  ;;  %v9860_v14 = vpop.permute.xlu0 %9859  ;;  %9460 = vmatprep.subr.bf16.mxu0 %v9459_v51  ;;  %v1120_v1 = vmul.f32 %v10141_v7, %v10753_v52 }
 0x38c   :  { %9465 = vmatprep.subr.msk.bf16.mxu1 %vm10572_vm2, %v9463_v47  ;;  %v1119_v2 = vmul.f32 %v10143_v48, %v10755_v55  ;;  %v9862_v56 = vunpack.i.h.bf16 %v9860_v14  ;;  %v9861_v11 = vunpack.i.l.bf16 %v9860_v14  ;;  %v9865_v55 = vpop.permute.xlu1 %9864 }
 0x38d   :  { %v9867_v4 = vunpack.i.h.bf16 %v9865_v55  ;;  %v9866_v15 = vunpack.i.l.bf16 %v9865_v55 }
 0x38e   :  { %8929 = vmatprep.mubr.msk.f32.mxu1 %vm36_vm0, %v1119_v2  ;;  %v9475_v58 = vpack.c.bf16 %v9862_v56, %v9861_v11  ;;  %v10145_v49 = vpop.eup %10144 }
 0x38f   :  { %v1822_v43 = vpop.permute.xlu0 %1821  ;;  %8930 = vmatmul.mubr.msk.f32.vlgmr.msra.gmra.mrb[16].mxu1 %vm36_vm0, %v1120_v1  ;;  %v1118_v12 = vmul.f32 %v10145_v49, %v10761_v62  ;;  %v9481_v18 = vpack.c.bf16 %v9867_v4, %v9866_v15 }
 0x390   :  { %8943 = vmatprep.mubr.msk.f32.mxu1 %vm240_vm1, %v1820_v63 }
 0x393   :  { %v1911_v59 = vpop.permute.xlu0 %1910 }
 0x394   :  { %9468 = vmatpush3.bf16.xpose.msk.msra.mxu1 %vm10572_vm2, %v9463_v47 }
 0x395   :  { %9477 = vmatprep.subr.msk.bf16.mxu1 %vm10572_vm2, %v9475_v58 }
 0x397   :  { %v2002_v52 = vpop.permute.xlu0 %2001 }
 0x39b   :  { %8944 = vmatmul.mubr.msk.f32.vlgmr.msra.gmra.mrb[18].mxu1 %vm240_vm1, %v1822_v43  ;;  %v2093_v45 = vpop.permute.xlu0 %2092 }
 0x39c   :  { %9480 = vmatpush3.bf16.xpose.msk.msra.mxu1 %vm10572_vm2, %v9475_v58  ;;  %8957 = vmatprep.mubr.msk.f32.mxu1 %vm240_vm1, %v2002_v52 }
 0x39f   :  { %v9870_v0 = vpop.permute.xlu0 %9869 }
 0x3a0   :  { %v9872_v7 = vunpack.i.h.bf16 %v9870_v0  ;;  %v9871_v44 = vunpack.i.l.bf16 %v9870_v0 }
 0x3a3   :  { %v2275_v14 = vpop.permute.xlu0 %2274 }
 0x3a7   :  { %v2457_v56 = vpop.permute.xlu0 %2456 }
 0x3bc   :  { %v1075_v6 = vpop.xlane.xlu1 %1074 }
 0x3bd   :  { %10146 = vrcp.f32 %v1075_v6 }
 0x3c0   :  { %v1090_v50 = vpop.xlane.xlu1 %1089 }
 0x3c1   :  { %10148 = vrcp.f32 %v1090_v50 }
 0x3c7   :  { %v10147_v13 = vpop.eup %10146 }
 0x3c8   :  { %v1117_v54 = vmul.f32 %v10147_v13, %v10791_v8 }
 0x3ca   :  { %8922 = vmatprep.mubr.msk.f32.mxu0 %vm36_vm0, %v1117_v54 }
 0x3cb   :  { %8923 = vmatmul.mubr.msk.f32.vlgmr.msra.gmra.mrb[26].mxu0 %vm36_vm0, %v1118_v12  ;;  %v10149_v8 = vpop.eup %10148 }
 0x3cc   :  { %9462 = vmatpush3.bf16.msra.mxu0 %v9459_v51  ;;  %v1122_v17 = vmul.f32 %v10149_v8, %v10797_v9 }
 0x3cd   :  { %9471 = vmatprep.subr.msk.bf16.mxu0 %vm10572_vm2, %v9469_v16 }
 0x3e8   :  { %v1087_v10 = vpop.xlane.xlu1 %1086 }
 0x3e9   :  { %10150 = vrcp.f32 %v1087_v10 }
 0x3ec   :  { %v1913_v5 = vpop.permute.xlu1 %1912 }
 0x3f0   :  { %v2004_v3 = vpop.permute.xlu1 %2003 }
 0x3f1   :  { %8958 = vmatmul.mubr.msk.f32.vlgmr.msra.gmra.mrb[20].mxu1 %vm240_vm1, %v2004_v3 }
 0x3f3   :  { %v10151_v62 = vpop.eup %10150 }
 0x3f4   :  { %v1121_v60 = vmul.f32 %v10151_v62, %v10804_v57  ;;  %v2095_v51 = vpop.permute.xlu1 %2094  ;;  %v9493_v57 = vpack.c.bf16 %v9872_v7, %v9871_v44 }
 0x3f6   :  { %8936 = vmatprep.mubr.msk.f32.mxu0 %vm36_vm0, %v1121_v60 }
 0x3f7   :  { %8937 = vmatmul.mubr.msk.f32.vlgmr.msra.gmra.mrb[28].mxu0 %vm36_vm0, %v1122_v17 }
 0x3f8   :  { %9474 = vmatpush3.bf16.xpose.msk.msra.mxu0 %vm10572_vm2, %v9469_v16  ;;  %8950 = vmatprep.mubr.msk.f32.mxu0 %vm240_vm1, %v1911_v59  ;;  %v9875_v9 = vpop.permute.xlu1 %9874 }
 0x3f9   :  { %9483 = vmatprep.subr.msk.bf16.mxu0 %vm10572_vm2, %v9481_v18  ;;  %v9877_v47 = vunpack.i.h.bf16 %v9875_v9  ;;  %v9876_v48 = vunpack.i.l.bf16 %v9875_v9 }
 0x3fb   :  { %v9505_v1 = vpack.c.bf16 %v9877_v47, %v9876_v48 }
 0x3fc   :  { %v2277_v2 = vpop.permute.xlu1 %2276 }
 0x3ff   :  { %8951 = vmatmul.mubr.msk.f32.vlgmr.msra.gmra.mrb[30].mxu0 %vm240_vm1, %v1913_v5 }
 0x400   :  { %9486 = vmatpush3.bf16.xpose.msk.msra.mxu0 %vm10572_vm2, %v9481_v18  ;;  %8964 = vmatprep.mubr.msk.f32.mxu0 %vm240_vm1, %v2093_v45  ;;  %v2459_v11 = vpop.permute.xlu1 %2458 }
 0x401   :  { %9495 = vmatprep.subr.msk.bf16.mxu0 %vm10572_vm2, %v9493_v57 }
 0x407   :  { %8965 = vmatmul.mubr.msk.f32.vlgmr.msra.gmra.mrb[32].mxu0 %vm240_vm1, %v2095_v51 }
 0x408   :  { %9498 = vmatpush3.bf16.xpose.msk.msra.mxu0 %vm10572_vm2, %v9493_v57  ;;  %8978 = vmatprep.mubr.msk.f32.mxu0 %vm240_vm1, %v2275_v14 }
 0x409   :  { %9507 = vmatprep.subr.msk.bf16.mxu0 %vm10572_vm2, %v9505_v1 }
 0x40f   :  { %8979 = vmatmul.mubr.msk.f32.vlgmr.msra.gmra.mrb[34].mxu0 %vm240_vm1, %v2277_v2 }
 0x410   :  { %9510 = vmatpush3.bf16.xpose.msk.msra.mxu0 %vm10572_vm2, %v9505_v1  ;;  %8992 = vmatprep.mubr.msk.f32.mxu0 %vm240_vm1, %v2457_v56 }
 0x417   :  { %8993 = vmatmul.mubr.msk.f32.vlgmr.msra.gmra.mrb[36].mxu0 %vm240_vm1, %v2459_v11 }
 0x441   :  { %v10900_v43 = vpop.f32.mrb[20].mxu0 }
 0x442   :  { %v10902_v63 = vpop.f32.mrb[21].mxu0 }
 0x44c   :  { %v10904_v58 = vpop.f32.mrb[22].mxu0 }
 0x44d   :  { %v10906_v59 = vpop.f32.mrb[23].mxu0 }
 0x459   :  { %v10908_v52 = vpop.f32.mrb[12].mxu1 }
 0x45a   :  { %v10910_v55 = vpop.f32.mrb[13].mxu1 }
 0x45c   :  { %v10912_v6 = vpop.f32.mrb[24].mxu0 }
 0x45d   :  { %v10914_v49 = vpop.f32.mrb[14].mxu1  ;;  %v10916_v13 = vpop.f32.mrb[25].mxu0 }
 0x45e   :  { %v10918_v61 = vpop.f32.mrb[15].mxu1 }
 0x462   :  { %v10920_v53 = vpop.f32.mrb[16].mxu1 }
 0x463   :  { %12473 = vst [vmem:[#allocation23_spill] sm:$0xff] %v10920_v53  ;;  %v10922_v54 = vpop.f32.mrb[17].mxu1 }
 0x464   :  { %12474 = vst [vmem:[#allocation24_spill] sm:$0xff] %v10922_v54 }
 0x46e   :  { %v8945_v12 = vpop.f32.mrb[18].mxu1 }
 0x46f   :  { %v1901_v16 = vpop.f32.mrb[19].mxu1  ;;  %v2550_v50 = vsel %vm36_vm0, %v8945_v12, -inf }
 0x470   :  { %2551 = vmax.xlane.f32.xlu1 %v2550_v50  ;;  %v2547_v10 = vsel %vm36_vm0, %v1901_v16, -inf }
 0x471   :  { %2548 = vmax.xlane.f32.xlu0 %v2547_v10 }
 0x49e   :  { %v10926_v5 = vpop.f32.mrb[26].mxu0 }
 0x49f   :  { %v10928_v3 = vpop.f32.mrb[27].mxu0 }
 0x4c4   :  { %v10930_v8 = vpop.f32.mrb[20].mxu1 }
 0x4c5   :  { %v2083_v45 = vpop.f32.mrb[21].mxu1  ;;  %v2562_v44 = vsel %vm36_vm0, %v10930_v8, -inf }
 0x4c6   :  { %v2559_v62 = vsel %vm36_vm0, %v2083_v45, -inf }
 0x4c7   :  { %2560 = vmax.xlane.f32.xlu1 %v2559_v62 }
 0x4ca   :  { %v10933_v4 = vpop.f32.mrb[28].mxu0 }
 0x4cb   :  { %12475 = vst [vmem:[#allocation25_spill] sm:$0xff] %v10933_v4  ;;  %v10935_v15 = vpop.f32.mrb[29].mxu0 }
 0x4cc   :  { %12476 = vst [vmem:[#allocation26_spill] sm:$0xff] %v10935_v15 }
 0x4d2   :  { %v10937_v60 = vpop.f32.mrb[30].mxu0 }
 0x4d3   :  { %v1992_v17 = vpop.f32.mrb[31].mxu0  ;;  %v2556_v0 = vsel %vm36_vm0, %v10937_v60, -inf }
 0x4d4   :  { %v2553_v18 = vsel %vm36_vm0, %v1992_v17, -inf }
 0x4d5   :  { %2554 = vmax.xlane.f32.xlu0 %v2553_v18 }
 0x4d8   :  { %9879 = vrot.lane.b32.xlu1 %v10528_v33, %s10370_s1 }
 0x4d9   :  { %2557 = vmax.xlane.f32.xlu0 %v2556_v0 }
 0x4da   :  { %v10944_v51 = vpop.f32.mrb[32].mxu0 }
 0x4db   :  { %v10946_v7 = vpop.f32.mrb[33].mxu0  ;;  %v2568_v57 = vsel %vm36_vm0, %v10944_v51, -inf }
 0x4dc   :  { %v2565_v1 = vsel %vm36_vm0, %v10946_v7, -inf }
 0x4dd   :  { %2563 = vmax.xlane.f32.xlu0 %v2562_v44 }
 0x4e1   :  { %2569 = vmax.xlane.f32.xlu0 %v2568_v57 }
 0x4e2   :  { %v10952_v9 = vpop.f32.mrb[34].mxu0 }
 0x4e3   :  { %v10954_v47 = vpop.f32.mrb[35].mxu0 }
 0x4ea   :  { %v10956_v48 = vpop.f32.mrb[36].mxu0 }
 0x4eb   :  { %v10958_v14 = vpop.f32.mrb[37].mxu0 }
 0x4f7   :  { %2183 = vrot.lane.b32.xlu0 %v10522_v32, %s10371_s25 }
 0x4fc   :  { %2566 = vmax.xlane.f32.xlu1 %v2565_v1 }
 0x4fd   :  { %v2552_v2 = vpop.xlane.xlu1 %2551 }
 0x4fe   :  { %v2596_v56 = vsub.f32 %v8945_v12, %v2552_v2  ;;  %v2549_v12 = vpop.xlane.xlu0 %2548 }
 0x4ff   :  { %v2595_v62 = vsub.f32 %v1901_v16, %v2549_v12 }
 0x500   :  { %v2613_v11 = vmul.f32 1.442695, %v2596_v56 }
 0x501   :  { %v2611_v18 = vmul.f32 1.442695, %v2595_v62 }
 0x502   :  { %10152 = vpow2.f32 %v2613_v11 }
 0x503   :  { %10154 = vpow2.f32 %v2611_v18 }
 0x50c   :  { %v10968_v50 = vpop.eup %10152 }
 0x50d   :  { %9884 = vrot.lane.b32.xlu1 %v10548_v39, %s10370_s1  ;;  %v2646_v10 = vsel %vm36_vm0, %v10968_v50, 0.0  ;;  %v10980_v0 = vpop.eup %10154 }
 0x50e   :  { %v2643_v44 = vsel %vm36_vm0, %v10980_v0, 0.0 }
 0x511   :  { %2185 = vrot.lane.b32.xlu1 %v10520_v31, %s10371_s25 }
 0x515   :  { %9889 = vrot.lane.b32.xlu1 %v10486_v21, %s10372_s26 }
 0x516   :  { %2647 = vadd.xlane.f32.xlu0 %v2646_v10 }
 0x519   :  { %2365 = vrot.lane.b32.xlu1 %v10544_v38, %s10371_s25 }
 0x51d   :  { %2367 = vrot.lane.b32.xlu1 %v10540_v37, %s10371_s25 }
 0x521   :  { %9894 = vrot.lane.b32.xlu1 %v10496_v24, %s10372_s26 }
 0x545   :  { %2644 = vadd.xlane.f32.xlu1 %v2643_v44 }
 0x554   :  { %v2561_v57 = vpop.xlane.xlu1 %2560 }
 0x555   :  { %v2599_v18 = vsub.f32 %v2083_v45, %v2561_v57 }
 0x557   :  { %v2619_v15 = vmul.f32 1.442695, %v2599_v18 }
 0x558   :  { %v9880_v1 = vpop.permute.xlu1 %9879 }
 0x559   :  { %v9882_v2 = vunpack.i.h.bf16 %v9880_v1  ;;  %v9881_v56 = vunpack.i.l.bf16 %v9880_v1 }
 0x55b   :  { %v9487_v11 = vpack.c.bf16 %v9882_v2, %v9881_v56 }
 0x55d   :  { %9489 = vmatprep.subr.msk.bf16.mxu1 %vm10572_vm2, %v9487_v11 }
 0x55e   :  { %9492 = vmatpush3.bf16.xpose.msk.msra.mxu1 %vm10572_vm2, %v9487_v11 }
 0x562   :  { %v2555_v16 = vpop.xlane.xlu0 %2554 }
 0x563   :  { %v2597_v10 = vsub.f32 %v1992_v17, %v2555_v16 }
 0x565   :  { %v2615_v12 = vmul.f32 1.442695, %v2597_v10 }
 0x566   :  { %v2558_v62 = vpop.xlane.xlu0 %2557 }
 0x567   :  { %10156 = vpow2.f32 %v2615_v12  ;;  %v2598_v53 = vsub.f32 %v10937_v60, %v2558_v62 }
 0x569   :  { %v2617_v54 = vmul.f32 1.442695, %v2598_v53 }
 0x56a   :  { %v2564_v4 = vpop.xlane.xlu0 %2563 }
 0x56b   :  { %v2600_v44 = vsub.f32 %v10930_v8, %v2564_v4 }
 0x56d   :  { %v2621_v1 = vmul.f32 1.442695, %v2600_v44 }
 0x56e   :  { %v2570_v2 = vpop.xlane.xlu0 %2569 }
 0x56f   :  { %10158 = vpow2.f32 %v2621_v1  ;;  %v2602_v11 = vsub.f32 %v10944_v51, %v2570_v2 }
 0x570   :  { %10160 = vpow2.f32 %v2619_v15 }
 0x571   :  { %v10990_v56 = vpop.eup %10156  ;;  %10162 = vpow2.f32 %v2617_v54  ;;  %v2625_v8 = vmul.f32 1.442695, %v2602_v11 }
 0x572   :  { %v2184_v17 = vpop.permute.xlu0 %2183  ;;  %v2649_v16 = vsel %vm36_vm0, %v10990_v56, 0.0 }
 0x573   :  { %8971 = vmatprep.mubr.msk.f32.mxu1 %vm240_vm1, %v2184_v17  ;;  %2650 = vadd.xlane.f32.xlu1 %v2649_v16  ;;  %10164 = vpow2.f32 %v2625_v8 }
 0x579   :  { %v10996_v45 = vpop.eup %10158 }
 0x57a   :  { %v2658_v4 = vsel %vm36_vm0, %v10996_v45, 0.0  ;;  %v11000_v60 = vpop.eup %10160 }
 0x57b   :  { %2659 = vadd.xlane.f32.xlu0 %v2658_v4  ;;  %v2655_v53 = vsel %vm36_vm0, %v11000_v60, 0.0  ;;  %v11004_v15 = vpop.eup %10162 }
 0x57c   :  { %v2652_v51 = vsel %vm36_vm0, %v11004_v15, 0.0 }
 0x57d   :  { %v11008_v54 = vpop.eup %10164 }
 0x57e   :  { %v2664_v57 = vsel %vm36_vm0, %v11008_v54, 0.0 }
 0x57f   :  { %2656 = vadd.xlane.f32.xlu0 %v2655_v53 }
 0x583   :  { %2653 = vadd.xlane.f32.xlu0 %v2652_v51 }
 0x584   :  { %9904 = vrot.lane.b32.xlu1 %v10516_v30, %s10372_s26 }
 0x587   :  { %2665 = vadd.xlane.f32.xlu0 %v2664_v57 }
 0x589   :  { %v2567_v10 = vpop.xlane.xlu1 %2566 }
 0x58a   :  { %v2601_v12 = vsub.f32 %v10946_v7, %v2567_v10 }
 0x58c   :  { %v2623_v62 = vmul.f32 1.442695, %v2601_v12 }
 0x58d   :  { %v9885_v18 = vpop.permute.xlu1 %9884 }
 0x58e   :  { %10166 = vpow2.f32 %v2623_v62  ;;  %v9887_v44 = vunpack.i.h.bf16 %v9885_v18  ;;  %v9886_v1 = vunpack.i.l.bf16 %v9885_v18 }
 0x590   :  { %v9499_v2 = vpack.c.bf16 %v9887_v44, %v9886_v1  ;;  %v2580_v44 = vsel %vm36_vm0, %v10952_v9, -inf  ;;  %v2577_v1 = vsel %vm36_vm0, %v10954_v47, -inf }
 0x591   :  { %v2186_v11 = vpop.permute.xlu1 %2185 }
 0x592   :  { %8972 = vmatmul.mubr.msk.f32.vlgmr.msra.gmra.mrb[22].mxu1 %vm240_vm1, %v2186_v11  ;;  %9501 = vmatprep.subr.msk.bf16.mxu1 %vm10572_vm2, %v9499_v2 }
 0x593   :  { %9504 = vmatpush3.bf16.xpose.msk.msra.mxu1 %vm10572_vm2, %v9499_v2 }
 0x595   :  { %v9890_v17 = vpop.permute.xlu1 %9889 }
 0x596   :  { %v9892_v16 = vunpack.i.h.bf16 %v9890_v17  ;;  %v9891_v8 = vunpack.i.l.bf16 %v9890_v17  ;;  %v2589_v17 = vsel %vm36_vm0, %v10958_v14, -inf }
 0x598   :  { %v11020_v4 = vpop.eup %10166  ;;  %v9511_v7 = vpack.c.bf16 %v9892_v16, %v9891_v8  ;;  %v2592_v16 = vsel %vm36_vm0, %v10956_v48, -inf }
 0x599   :  { %v2366_v53 = vpop.permute.xlu1 %2365  ;;  %v2661_v51 = vsel %vm36_vm0, %v11020_v4, 0.0 }
 0x59a   :  { %2662 = vadd.xlane.f32.xlu0 %v2661_v51  ;;  %8985 = vmatprep.mubr.msk.f32.mxu1 %vm240_vm1, %v2366_v53 }
 0x59b   :  { %9512 = vmatprep.subr.bf16.mxu1 %v9511_v7 }
 0x59d   :  { %v2368_v57 = vpop.permute.xlu1 %2367 }
 0x59e   :  { %8986 = vmatmul.mubr.msk.f32.vlgmr.msra.gmra.mrb[24].mxu1 %vm240_vm1, %v2368_v57 }
 0x59f   :  { %9514 = vmatpush3.bf16.msra.mxu1 %v9511_v7 }
 0x5a1   :  { %v9895_v10 = vpop.permute.xlu1 %9894 }
 0x5a2   :  { %v9897_v12 = vunpack.i.h.bf16 %v9895_v10  ;;  %v9896_v62 = vunpack.i.l.bf16 %v9895_v10 }
 0x5a3   :  { %v2648_v2 = vpop.xlane.xlu0 %2647 }
 0x5a4   :  { %v9515_v18 = vpack.c.bf16 %v9897_v12, %v9896_v62  ;;  %10168 = vrcp.f32 %v2648_v2 }
 0x5a6   :  { %9516 = vmatprep.subr.bf16.mxu0 %v9515_v18 }
 0x5a7   :  { %9518 = vmatpush3.bf16.msra.mxu0 %v9515_v18 }
 0x5a8   :  { %2581 = vmax.xlane.f32.xlu1 %v2580_v44 }
 0x5ae   :  { %v10169_v8 = vpop.eup %10168 }
 0x5af   :  { %v2708_v51 = vmul.f32 %v10169_v8, %v10968_v50 }
 0x5b0   :  { %9899 = vrot.lane.b32.xlu0 %v10506_v27, %s10372_s26 }
 0x5b9   :  { %9909 = vrot.lane.b32.xlu1 %v10538_v36, %s10372_s26 }
 0x5bd   :  { %9919 = vrot.lane.b32.xlu1 %v10486_v21, %s10373_s27 }
 0x5c1   :  { %9924 = vrot.lane.b32.xlu1 %v10496_v24, %s10373_s27 }
 0x5c5   :  { %3807 = vrot.lane.b32.xlu1 %v10478_v19, %s10374_s28 }
 0x5c9   :  { %3896 = vrot.lane.b32.xlu1 %v10492_v23, %s10374_s28 }
 0x5cd   :  { %9934 = vrot.lane.b32.xlu1 %v10516_v30, %s10373_s27 }
 0x5cf   :  { %2578 = vmax.xlane.f32.xlu0 %v2577_v1 }
 0x5d1   :  { %3989 = vrot.lane.b32.xlu1 %v10500_v25, %s10374_s28 }
 0x5d2   :  { %v2645_v11 = vpop.xlane.xlu1 %2644 }
 0x5d3   :  { %10170 = vrcp.f32 %v2645_v11  ;;  %2590 = vmax.xlane.f32.xlu0 %v2589_v17 }
 0x5d5   :  { %4078 = vrot.lane.b32.xlu1 %v10512_v29, %s10374_s28 }
 0x5d7   :  { %2593 = vmax.xlane.f32.xlu0 %v2592_v16 }
 0x5d9   :  { %9944 = vrot.lane.b32.xlu1 %v10538_v36, %s10373_s27 }
 0x5dd   :  { %v10171_v7 = vpop.eup %10170 }
 0x5de   :  { %v2707_v53 = vmul.f32 %v10171_v7, %v10980_v0 }
 0x5e0   :  { %8999 = vmatprep.mubr.msk.f32.mxu1 %vm36_vm0, %v2707_v53 }
 0x5e1   :  { %9000 = vmatmul.mubr.msk.f32.vlgmr.msra.gmra.mrb[26].mxu1 %vm36_vm0, %v2708_v51 }
 0x5ed   :  { %9914 = vrot.lane.b32.xlu0 %v10558_v42, %s10372_s26 }
 0x5f1   :  { %3805 = vrot.lane.b32.xlu0 %v10480_v20, %s10374_s28 }
 0x5f5   :  { %9929 = vrot.lane.b32.xlu0 %v10506_v27, %s10373_s27 }
 0x5f9   :  { %3898 = vrot.lane.b32.xlu0 %v10490_v22, %s10374_s28 }
 0x5fd   :  { %3987 = vrot.lane.b32.xlu0 %v10502_v26, %s10374_s28 }
 0x600   :  { %v2651_v50 = vpop.xlane.xlu1 %2650 }
 0x601   :  { %10172 = vrcp.f32 %v2651_v50  ;;  %9939 = vrot.lane.b32.xlu0 %v10528_v33, %s10373_s27 }
 0x604   :  { %v9905_v0 = vpop.permute.xlu1 %9904 }
 0x605   :  { %v9907_v57 = vunpack.i.h.bf16 %v9905_v0  ;;  %v9906_v10 = vunpack.i.l.bf16 %v9905_v0  ;;  %4080 = vrot.lane.b32.xlu0 %v10510_v28, %s10374_s28 }
 0x607   :  { %v9523_v12 = vpack.c.bf16 %v9907_v57, %v9906_v10 }
 0x608   :  { %v2660_v62 = vpop.xlane.xlu0 %2659 }
 0x609   :  { %9524 = vmatprep.subr.bf16.mxu0 %v9523_v12 }
 0x60b   :  { %v10173_v18 = vpop.eup %10172 }
 0x60c   :  { %v2657_v44 = vpop.xlane.xlu0 %2656  ;;  %v2709_v1 = vmul.f32 %v10173_v18, %v10990_v56 }
 0x60d   :  { %10174 = vrcp.f32 %v2657_v44 }
 0x60e   :  { %9006 = vmatprep.mubr.msk.f32.mxu0 %vm36_vm0, %v2709_v1 }
 0x610   :  { %v2654_v2 = vpop.xlane.xlu0 %2653 }
 0x611   :  { %10176 = vrcp.f32 %v2654_v2 }
 0x612   :  { %10178 = vrcp.f32 %v2660_v62 }
 0x614   :  { %v2666_v7 = vpop.xlane.xlu0 %2665 }
 0x615   :  { %10180 = vrcp.f32 %v2666_v7 }
 0x617   :  { %v10175_v11 = vpop.eup %10174 }
 0x618   :  { %v2711_v17 = vmul.f32 %v10175_v11, %v11000_v60 }
 0x61a   :  { %9013 = vmatprep.mubr.msk.f32.mxu1 %vm36_vm0, %v2711_v17 }
 0x61b   :  { %v10177_v16 = vpop.eup %10176 }
 0x61c   :  { %v2710_v8 = vmul.f32 %v10177_v16, %v11004_v15  ;;  %v10179_v57 = vpop.eup %10178 }
 0x61d   :  { %v2712_v18 = vmul.f32 %v10179_v57, %v10996_v45 }
 0x61e   :  { %9007 = vmatmul.mubr.msk.f32.vlgmr.msra.gmra.mrb[38].mxu0 %vm36_vm0, %v2710_v8 }
 0x61f   :  { %9526 = vmatpush3.bf16.msra.mxu0 %v9523_v12  ;;  %v10181_v60 = vpop.eup %10180 }
 0x620   :  { %v2714_v12 = vmul.f32 %v10181_v60, %v11008_v54 }
 0x627   :  { %v2663_v56 = vpop.xlane.xlu0 %2662 }
 0x628   :  { %10182 = vrcp.f32 %v2663_v56 }
 0x62b   :  { %v9900_v53 = vpop.permute.xlu0 %9899 }
 0x62c   :  { %v9902_v51 = vunpack.i.h.bf16 %v9900_v53  ;;  %v9901_v50 = vunpack.i.l.bf16 %v9900_v53 }
 0x62e   :  { %v9519_v0 = vpack.c.bf16 %v9902_v51, %v9901_v50 }
 0x630   :  { %9520 = vmatprep.subr.bf16.mxu1 %v9519_v0 }
 0x631   :  { %9522 = vmatpush3.bf16.msra.mxu1 %v9519_v0 }
 0x632   :  { %v10183_v10 = vpop.eup %10182 }
 0x633   :  { %v2713_v15 = vmul.f32 %v10183_v10, %v11020_v4 }
 0x634   :  { %9014 = vmatmul.mubr.msk.f32.vlgmr.msra.gmra.mrb[28].mxu1 %vm36_vm0, %v2712_v18 }
 0x635   :  { %v2582_v62 = vpop.xlane.xlu1 %2581  ;;  %9020 = vmatprep.mubr.msk.f32.mxu0 %vm36_vm0, %v2713_v15 }
 0x636   :  { %v2606_v44 = vsub.f32 %v10952_v9, %v2582_v62  ;;  %9021 = vmatmul.mubr.msk.f32.vlgmr.msra.gmra.mrb[40].mxu0 %vm36_vm0, %v2714_v12 }
 0x638   :  { %v2633_v1 = vmul.f32 1.442695, %v2606_v44 }
 0x639   :  { %v9910_v2 = vpop.permute.xlu1 %9909 }
 0x63a   :  { %10184 = vpow2.f32 %v2633_v1  ;;  %v9912_v11 = vunpack.i.h.bf16 %v9910_v2  ;;  %v9911_v17 = vunpack.i.l.bf16 %v9910_v2 }
 0x63c   :  { %v9531_v16 = vpack.c.bf16 %v9912_v11, %v9911_v17 }
 0x63e   :  { %9532 = vmatprep.subr.bf16.mxu0 %v9531_v16 }
 0x63f   :  { %9534 = vmatpush3.bf16.msra.mxu0 %v9531_v16 }
 0x644   :  { %v11085_v45 = vpop.eup %10184 }
 0x645   :  { %v2676_v54 = vsel %vm36_vm0, %v11085_v45, 0.0 }
 0x646   :  { %2677 = vadd.xlane.f32.xlu0 %v2676_v54 }
 0x65c   :  { %v2579_v4 = vpop.xlane.xlu0 %2578 }
 0x65d   :  { %v2605_v8 = vsub.f32 %v10954_v47, %v2579_v4 }
 0x65f   :  { %v2631_v9 = vmul.f32 1.442695, %v2605_v8 }
 0x660   :  { %v2591_v7 = vpop.xlane.xlu0 %2590 }
 0x661   :  { %10186 = vpow2.f32 %v2631_v9  ;;  %v2609_v1 = vsub.f32 %v10958_v14, %v2591_v7  ;;  %v11132_v14 = vpop.permute.xlu1 %9919 }
 0x662   :  { %v9922_v22 = vunpack.i.h.bf16 %v11132_v14 }
 0x663   :  { %v2639_v2 = vmul.f32 1.442695, %v2609_v1 }
 0x664   :  { %v2594_v56 = vpop.xlane.xlu0 %2593 }
 0x665   :  { %v2610_v53 = vsub.f32 %v10956_v48, %v2594_v56  ;;  %v11091_v51 = vpop.f32.mrb[22].mxu1  ;;  %v11134_v9 = vpop.permute.xlu1 %9924 }
 0x666   :  { %v11093_v50 = vpop.f32.mrb[23].mxu1  ;;  %v2574_v16 = vsel %vm36_vm0, %v11091_v51, -inf }
 0x667   :  { %v2641_v0 = vmul.f32 1.442695, %v2610_v53  ;;  %v2571_v54 = vsel %vm36_vm0, %v11093_v50, -inf }
 0x668   :  { %v9915_v57 = vpop.permute.xlu0 %9914 }
 0x669   :  { %10188 = vpow2.f32 %v2641_v0  ;;  %v9917_v60 = vunpack.i.h.bf16 %v9915_v57  ;;  %v9916_v10 = vunpack.i.l.bf16 %v9915_v57  ;;  %v11138_v56 = vpop.permute.xlu1 %3807 }
 0x66a   :  { %10190 = vpow2.f32 %v2639_v2 }
 0x66b   :  { %v10187_v18 = vpop.eup %10186  ;;  %v11095_v15 = vpack.c.bf16 %v9917_v60, %v9916_v10 }
 0x66c   :  { %v2673_v47 = vsel %vm36_vm0, %v10187_v18, 0.0  ;;  %v11136_v7 = vpop.permute.xlu0 %3805 }
 0x66d   :  { %2674 = vadd.xlane.f32.xlu1 %v2673_v47  ;;  %9540 = vmatprep.subr.bf16.mxu0 %v11095_v15  ;;  %v11142_v0 = vpop.permute.xlu1 %3896 }
 0x670   :  { %v11140_v53 = vpop.permute.xlu0 %9929 }
 0x671   :  { %v11099_v12 = vpop.f32.mrb[24].mxu1  ;;  %v11150_v47 = vpop.permute.xlu1 %9934 }
 0x672   :  { %v11101_v48 = vpop.f32.mrb[25].mxu1  ;;  %v2586_v10 = vsel %vm36_vm0, %v11099_v12, -inf }
 0x673   :  { %v11103_v62 = vpop.eup %10188  ;;  %v2583_v57 = vsel %vm36_vm0, %v11101_v48, -inf }
 0x674   :  { %v2688_v44 = vsel %vm36_vm0, %v11103_v62, 0.0  ;;  %v11114_v11 = vpop.eup %10190  ;;  %v11146_v60 = vpop.permute.xlu0 %3898 }
 0x675   :  { %2689 = vadd.xlane.f32.xlu0 %v2688_v44  ;;  %v2685_v17 = vsel %vm36_vm0, %v11114_v11, 0.0  ;;  %v11154_v1 = vpop.permute.xlu1 %3989 }
 0x678   :  { %v11152_v44 = vpop.permute.xlu0 %3987 }
 0x67c   :  { %v11156_v2 = vpop.permute.xlu0 %9939 }
 0x67e   :  { %4171 = vrot.lane.b32.xlu1 %v10520_v31, %s10374_s28 }
 0x682   :  { %9949 = vrot.lane.b32.xlu1 %v10548_v39, %s10373_s27 }
 0x68b   :  { %4169 = vrot.lane.b32.xlu0 %v10522_v32, %s10374_s28 }
 0x6a6   :  { %2686 = vadd.xlane.f32.xlu1 %v2685_v17  ;;  %v11158_v17 = vpop.permute.xlu1 %4078 }
 0x6aa   :  { %2575 = vmax.xlane.f32.xlu1 %v2574_v16  ;;  %2572 = vmax.xlane.f32.xlu0 %v2571_v54 }
 0x6b4   :  { %v11122_v4 = vpop.f32.mrb[26].mxu1 }
 0x6b5   :  { %v11124_v8 = vpop.f32.mrb[27].mxu1 }
 0x6bb   :  { %4262 = vrot.lane.b32.xlu1 %v10532_v34, %s10374_s28 }
 0x6bf   :  { %9954 = vrot.lane.b32.xlu1 %v10558_v42, %s10373_s27 }
 0x6c0   :  { %4260 = vrot.lane.b32.xlu0 %v10534_v35, %s10374_s28 }
 0x6df   :  { %2584 = vmax.xlane.f32.xlu0 %v2583_v57  ;;  %v11162_v57 = vpop.permute.xlu0 %4080 }
 0x6e3   :  { %2587 = vmax.xlane.f32.xlu1 %v2586_v10  ;;  %v11168_v10 = vpop.permute.xlu1 %9944  ;;  %v2678_v34 = vpop.xlane.xlu0 %2677 }
 0x6e4   :  { %10192 = vrcp.f32 %v2678_v34 }
 0x6ee   :  { %v10193_v28 = vpop.eup %10192 }
 0x6f1   :  { %v11160_v16 = vpop.f32.mrb[38].mxu0 }
 0x6f2   :  { %v2888_v54 = vpop.f32.mrb[39].mxu0 }
 0x6f4   :  { %4353 = vrot.lane.b32.xlu1 %v10540_v37, %s10374_s28  ;;  %v2718_v37 = vmul.f32 %v10193_v28, %v11085_v45 }
 0x6f5   :  { %4351 = vrot.lane.b32.xlu0 %v10544_v38, %s10374_s28  ;;  %v11179_v38 = vld [vmem:[%s12430_s2 + $0x8] sm:$0xff] }
 0x6f9   :  { %4442 = vrot.lane.b32.xlu0 %v10554_v41, %s10374_s28 }
 0x6fa   :  { %v2675_v32 = vpop.xlane.xlu1 %2674 }
 0x6fb   :  { %10194 = vrcp.f32 %v2675_v32 }
 0x6fd   :  { %4444 = vrot.lane.b32.xlu0 %v10552_v40, %s10374_s28 }
 0x705   :  { %v10195_v25 = vpop.eup %10194 }
 0x706   :  { %v2717_v23 = vmul.f32 %v10195_v25, %v10187_v18  ;;  %v11184_v25 = vpop.permute.xlu1 %4171  ;;  %v2690_v18 = vpop.xlane.xlu0 %2689 }
 0x707   :  { %v9015_v19 = vpop.f32.mrb[28].mxu1  ;;  %10196 = vrcp.f32 %v2690_v18  ;;  %v9921_v18 = vunpack.i.l.bf16 %v11132_v14 }
 0x708   :  { %v2975_v42 = vpop.f32.mrb[29].mxu1  ;;  %9034 = vmatprep.mubr.msk.f32.mxu0 %vm36_vm0, %v2717_v23 }
 0x709   :  { %v9022_v34 = vpop.f32.mrb[40].mxu0  ;;  %9035 = vmatmul.mubr.msk.f32.vlgmr.msra.gmra.mrb[42].mxu0 %vm36_vm0, %v2718_v37  ;;  %v9543_v30 = vpack.c.bf16 %v9922_v22, %v9921_v18 }
 0x70a   :  { %9542 = vmatpush3.bf16.msra.mxu0 %v11095_v15  ;;  %v3062_v32 = vpop.f32.mrb[41].mxu0  ;;  %v11186_v28 = vpop.permute.xlu1 %9949 }
 0x70b   :  { %9051 = vmatprep.subr.mxu0 %v11179_v38  ;;  %v11188_v23 = vpop.permute.xlu0 %4169 }
 0x711   :  { %v10197_v29 = vpop.eup %10196 }
 0x733   :  { %v2687_v45 = vpop.xlane.xlu1 %2686 }
 0x734   :  { %10198 = vrcp.f32 %v2687_v45  ;;  %v2722_v45 = vmul.f32 %v10197_v29, %v11103_v62  ;;  %v9942_v62 = vunpack.i.h.bf16 %v11156_v2 }
 0x737   :  { %v2576_v40 = vpop.xlane.xlu1 %2575  ;;  %v2573_v41 = vpop.xlane.xlu0 %2572 }
 0x738   :  { %v2604_v35 = vsub.f32 %v11091_v51, %v2576_v40  ;;  %v2603_v37 = vsub.f32 %v11093_v50, %v2573_v41  ;;  %v9932_v41 = vunpack.i.h.bf16 %v11140_v53  ;;  %v9931_v51 = vunpack.i.l.bf16 %v11140_v53 }
 0x73a   :  { %v2629_v15 = vmul.f32 1.442695, %v2604_v35  ;;  %v2627_v31 = vmul.f32 1.442695, %v2603_v37  ;;  %v9926_v35 = vunpack.i.l.bf16 %v11134_v9 }
 0x73b   :  { %v4261_v14 = vpop.permute.xlu0 %4260 }
 0x73c   :  { %10200 = vpow2.f32 %v2629_v15 }
 0x73d   :  { %10202 = vpow2.f32 %v2627_v31  ;;  %v9927_v31 = vunpack.i.h.bf16 %v11134_v9  ;;  %v9947_v9 = vunpack.i.h.bf16 %v11168_v10 }
 0x73e   :  { %v10199_v26 = vpop.eup %10198 }
 0x73f   :  { %v2721_v20 = vmul.f32 %v10199_v26, %v11114_v11  ;;  %v9549_v40 = vpack.c.bf16 %v9927_v31, %v9926_v35  ;;  %v9941_v11 = vunpack.i.l.bf16 %v11156_v2  ;;  %v9951_v2 = vunpack.i.l.bf16 %v11186_v28 }
 0x741   :  { %9048 = vmatprep.mubr.msk.f32.mxu0 %vm36_vm0, %v2721_v20 }
 0x742   :  { %9049 = vmatmul.mubr.msk.f32.vlgmr.msra.gmra.mrb[44].mxu0 %vm36_vm0, %v2722_v45 }
 0x743   :  { %9052 = vmatpush3.msra.mxu0 %v11179_v38  ;;  %9053 = vmatprep.mubr.msk.f32.mxu0 %vm240_vm1, %v11124_v8  ;;  %v9567_v8 = vpack.c.bf16 %v9942_v62, %v9941_v11 }
 0x744   :  { %9545 = vmatprep.subr.msk.bf16.mxu0 %vm10572_vm2, %v9543_v30 }
 0x746   :  { %v11205_v26 = vpop.eup %10200  ;;  %9054 = vmatmul.mubr.msk.f32.vlgmr.msra.gmra.mrb[46].mxu0 %vm240_vm1, %v11122_v4  ;;  %v4263_v4 = vpop.permute.xlu1 %4262 }
 0x747   :  { %v11209_v20 = vpop.eup %10202  ;;  %9056 = vmatprep.mubr.msk.f32.mxu0 %vm240_vm1, %v2888_v54  ;;  %v2670_v22 = vsel %vm36_vm0, %v11205_v26, 0.0 }
 0x748   :  { %2671 = vadd.xlane.f32.xlu1 %v2670_v22  ;;  %v2667_v29 = vsel %vm36_vm0, %v11209_v20, 0.0 }
 0x749   :  { %2668 = vadd.xlane.f32.xlu0 %v2667_v29 }
 0x74a   :  { %9548 = vmatpush3.bf16.xpose.msk.msra.mxu0 %vm10572_vm2, %v9543_v30  ;;  %v9555_v30 = vpack.c.bf16 %v9932_v41, %v9931_v51 }
 0x74b   :  { %9057 = vmatmul.mubr.msk.f32.gmra.mrb[48].mxu0 %vm240_vm1, %v11160_v16  ;;  %9551 = vmatprep.subr.msk.bf16.mxu0 %vm10572_vm2, %v9549_v40 }
 0x74c   :  { %9059 = vmatprep.mubr.msk.f32.mxu0 %vm240_vm1, %v2975_v42  ;;  %v9936_v42 = vunpack.i.l.bf16 %v11150_v47 }
 0x74f   :  { %9060 = vmatmul.mubr.msk.f32.gmra.mrb[50].mxu0 %vm240_vm1, %v9015_v19  ;;  %v9937_v19 = vunpack.i.h.bf16 %v11150_v47 }
 0x750   :  { %9062 = vmatprep.mubr.msk.f32.mxu0 %vm240_vm1, %v3062_v32 }
 0x751   :  { %v9561_v50 = vpack.c.bf16 %v9937_v19, %v9936_v42 }
 0x753   :  { %9063 = vmatmul.mubr.msk.f32.gmra.mrb[52].mxu0 %vm240_vm1, %v9022_v34 }
 0x754   :  { %9107 = vmatprep.mubr.msk.f32.mxu0 %vm240_vm1, %v11136_v7  ;;  %v9946_v7 = vunpack.i.l.bf16 %v11168_v10 }
 0x757   :  { %9108 = vmatmul.mubr.msk.f32.vlgmr.msra.gmra.mrb[54].mxu0 %vm240_vm1, %v11138_v56  ;;  %v9955_v56 = vpop.permute.xlu1 %9954 }
 0x758   :  { %9554 = vmatpush3.bf16.xpose.msk.msra.mxu0 %vm10572_vm2, %v9549_v40  ;;  %9114 = vmatprep.mubr.msk.f32.mxu0 %vm240_vm1, %v11142_v0 }
 0x759   :  { %9557 = vmatprep.subr.msk.bf16.mxu0 %vm10572_vm2, %v9555_v30  ;;  %9959 = vrot.lane.b32.xlu1 %v10528_v33, %s10372_s26 }
 0x75d   :  { %9969 = vrot.lane.b32.xlu1 %v10486_v21, %s10375_s5 }
 0x75f   :  { %9115 = vmatmul.mubr.msk.f32.vlgmr.msra.gmra.mrb[56].mxu0 %vm240_vm1, %v11146_v60  ;;  %v9573_v60 = vpack.c.bf16 %v9947_v9, %v9946_v7 }
 0x760   :  { %9560 = vmatpush3.bf16.xpose.msk.msra.mxu0 %vm10572_vm2, %v9555_v30  ;;  %9121 = vmatprep.mubr.msk.f32.mxu0 %vm240_vm1, %v11152_v44 }
 0x761   :  { %9563 = vmatprep.subr.msk.bf16.mxu0 %vm10572_vm2, %v9561_v50 }
 0x767   :  { %9122 = vmatmul.mubr.msk.f32.vlgmr.msra.gmra.mrb[58].mxu0 %vm240_vm1, %v11154_v1 }
 0x768   :  { %9566 = vmatpush3.bf16.xpose.msk.msra.mxu0 %vm10572_vm2, %v9561_v50  ;;  %9128 = vmatprep.mubr.msk.f32.mxu0 %vm240_vm1, %v11158_v17 }
 0x769   :  { %9569 = vmatprep.subr.msk.bf16.mxu0 %vm10572_vm2, %v9567_v8 }
 0x76c   :  { %v2585_v53 = vpop.xlane.xlu0 %2584 }
 0x76d   :  { %v2607_v0 = vsub.f32 %v11101_v48, %v2585_v53  ;;  %v9952_v48 = vunpack.i.h.bf16 %v11186_v28 }
 0x76f   :  { %v2635_v47 = vmul.f32 1.442695, %v2607_v0  ;;  %9129 = vmatmul.mubr.msk.f32.vlgmr.msra.gmra.mrb[60].mxu0 %vm240_vm1, %v11162_v57  ;;  %v9579_v16 = vpack.c.bf16 %v9952_v48, %v9951_v2  ;;  %v9956_v57 = vunpack.i.l.bf16 %v9955_v56 }
 0x770   :  { %9572 = vmatpush3.bf16.xpose.msk.msra.mxu0 %vm10572_vm2, %v9567_v8  ;;  %9135 = vmatprep.mubr.msk.f32.mxu0 %vm240_vm1, %v11188_v23  ;;  %v2588_v44 = vpop.xlane.xlu1 %2587  ;;  %v4352_v28 = vpop.permute.xlu0 %4351 }
 0x771   :  { %10204 = vpow2.f32 %v2635_v47  ;;  %9575 = vmatprep.subr.msk.bf16.mxu0 %vm10572_vm2, %v9573_v60  ;;  %v2608_v1 = vsub.f32 %v11099_v12, %v2588_v44  ;;  %v9957_v12 = vunpack.i.h.bf16 %v9955_v56 }
 0x773   :  { %v2637_v17 = vmul.f32 1.442695, %v2608_v1  ;;  %v9585_v32 = vpack.c.bf16 %v9957_v12, %v9956_v57 }
 0x774   :  { %v4354_v23 = vpop.permute.xlu1 %4353  ;;  %v4443_v37 = vpop.permute.xlu0 %4442 }
 0x775   :  { %10206 = vpow2.f32 %v2637_v17 }
 0x777   :  { %9136 = vmatmul.mubr.msk.f32.vlgmr.msra.gmra.mrb[62].mxu0 %vm240_vm1, %v11184_v25 }
 0x778   :  { %9578 = vmatpush3.bf16.xpose.msk.msra.mxu0 %vm10572_vm2, %v9573_v60  ;;  %9142 = vmatprep.mubr.msk.f32.mxu0 %vm240_vm1, %v4261_v14  ;;  %v4445_v15 = vpop.permute.xlu0 %4444 }
 0x779   :  { %9581 = vmatprep.subr.msk.bf16.mxu0 %vm10572_vm2, %v9579_v16 }
 0x77b   :  { %v10205_v54 = vpop.eup %10204 }
 0x77c   :  { %v2679_v10 = vsel %vm36_vm0, %v10205_v54, 0.0 }
 0x77d   :  { %2680 = vadd.xlane.f32.xlu0 %v2679_v10 }
 0x77f   :  { %v10207_v34 = vpop.eup %10206  ;;  %9143 = vmatmul.mubr.msk.f32.vlgmr.msra.gmra.mrb[64].mxu0 %vm240_vm1, %v4263_v4 }
 0x780   :  { %9584 = vmatpush3.bf16.xpose.msk.msra.mxu0 %vm10572_vm2, %v9579_v16  ;;  %9149 = vmatprep.mubr.msk.f32.mxu0 %vm240_vm1, %v4352_v28  ;;  %v2682_v25 = vsel %vm36_vm0, %v10207_v34, 0.0 }
 0x781   :  { %9587 = vmatprep.subr.msk.bf16.mxu0 %vm10572_vm2, %v9585_v32  ;;  %2683 = vadd.xlane.f32.xlu0 %v2682_v25 }
 0x787   :  { %9150 = vmatmul.mubr.msk.f32.vlgmr.msra.gmra.mrb[66].mxu0 %vm240_vm1, %v4354_v23 }
 0x788   :  { %9590 = vmatpush3.bf16.xpose.msk.msra.mxu0 %vm10572_vm2, %v9585_v32  ;;  %9156 = vmatprep.mubr.msk.f32.mxu0 %vm240_vm1, %v4443_v37  ;;  %v230_v37 = vld [vmem:[%s12430_s2] sm:$0xff] }
 0x78f   :  { %9157 = vmatmul.mubr.msk.f32.vlgmr.msra.gmra.mrb[68].mxu0 %vm240_vm1, %v4445_v15 }
 0x797   :  { %9964 = vrot.lane.b32.xlu0 %v10548_v39, %s10372_s26 }
 0x7d5   :  { %v2672_v18 = vpop.xlane.xlu1 %2671 }
 0x7d6   :  { %10208 = vrcp.f32 %v2672_v18  ;;  %v2669_v45 = vpop.xlane.xlu0 %2668 }
 0x7d7   :  { %10210 = vrcp.f32 %v2669_v45 }
 0x7d9   :  { %v9960_v31 = vpop.permute.xlu1 %9959 }
 0x7da   :  { %v9962_v35 = vunpack.i.h.bf16 %v9960_v31  ;;  %v9961_v22 = vunpack.i.l.bf16 %v9960_v31 }
 0x7dc   :  { %v11298_v29 = vpop.f32.mrb[42].mxu0  ;;  %v9527_v40 = vpack.c.bf16 %v9962_v35, %v9961_v22 }
 0x7dd   :  { %v11300_v41 = vpop.f32.mrb[43].mxu0 }
 0x7de   :  { %9528 = vmatprep.subr.bf16.mxu1 %v9527_v40 }
 0x7df   :  { %9530 = vmatpush3.bf16.msra.mxu1 %v9527_v40 }
 0x7e0   :  { %v10209_v51 = vpop.eup %10208 }
 0x7e1   :  { %v10211_v30 = vpop.eup %10210  ;;  %v2716_v19 = vmul.f32 %v10209_v51, %v11205_v26 }
 0x7e2   :  { %v2715_v42 = vmul.f32 %v10211_v30, %v11209_v20 }
 0x7e4   :  { %9027 = vmatprep.mubr.msk.f32.mxu1 %vm36_vm0, %v2715_v42 }
 0x7e5   :  { %9028 = vmatmul.mubr.msk.f32.vlgmr.msra.gmra.mrb[30].mxu1 %vm36_vm0, %v2716_v19 }
 0x80a   :  { %v2681_v50 = vpop.xlane.xlu0 %2680 }
 0x80b   :  { %10212 = vrcp.f32 %v2681_v50 }
 0x80e   :  { %v2684_v62 = vpop.xlane.xlu0 %2683 }
 0x80f   :  { %10214 = vrcp.f32 %v2684_v62 }
 0x812   :  { %v9965_v11 = vpop.permute.xlu0 %9964 }
 0x813   :  { %v9967_v4 = vunpack.i.h.bf16 %v9965_v11  ;;  %v9966_v8 = vunpack.i.l.bf16 %v9965_v11 }
 0x815   :  { %v10213_v14 = vpop.eup %10212  ;;  %v11306_v9 = vpop.f32.mrb[44].mxu0  ;;  %v9535_v7 = vpack.c.bf16 %v9967_v4, %v9966_v8 }
 0x816   :  { %v11308_v56 = vpop.f32.mrb[45].mxu0  ;;  %v2719_v26 = vmul.f32 %v10213_v14, %v10205_v54 }
 0x817   :  { %9536 = vmatprep.subr.bf16.mxu1 %v9535_v7 }
 0x818   :  { %9538 = vmatpush3.bf16.msra.mxu1 %v9535_v7  ;;  %9041 = vmatprep.mubr.msk.f32.mxu1 %vm36_vm0, %v2719_v26 }
 0x819   :  { %v10215_v20 = vpop.eup %10214  ;;  %v11311_v53 = vpop.f32.mrb[46].mxu0  ;;  %9703 = vmatprep.subr.mxu1 %v11179_v38 }
 0x81a   :  { %v11314_v0 = vpop.f32.mrb[47].mxu0  ;;  %v2720_v60 = vmul.f32 %v10215_v20, %v10207_v34 }
 0x81c   :  { %9042 = vmatmul.mubr.msk.f32.vlgmr.msra.gmra.mrb[32].mxu1 %vm36_vm0, %v2720_v60 }
 0x81d   :  { %9704 = vmatpush3.msra.mxu1 %v11179_v38 }
 0x81e   :  { %v11318_v47 = vpop.f32.mrb[48].mxu0  ;;  %9077 = vmatprep.subr.mxu1 %v230_v37 }
 0x81f   :  { %v11320_v44 = vpop.f32.mrb[49].mxu0 }
 0x822   :  { %v11322_v1 = vpop.f32.mrb[50].mxu0 }
 0x823   :  { %v11324_v48 = vpop.f32.mrb[51].mxu0 }
 0x826   :  { %v11326_v2 = vpop.f32.mrb[52].mxu0 }
 0x827   :  { %v11328_v17 = vpop.f32.mrb[53].mxu0 }
 0x82a   :  { %v11330_v16 = vpop.f32.mrb[54].mxu0 }
 0x82b   :  { %v11332_v54 = vpop.f32.mrb[55].mxu0  ;;  %v4536_v12 = vsel %vm36_vm0, %v11330_v16, -inf }
 0x82c   :  { %4537 = vmax.xlane.f32.xlu0 %v4536_v12  ;;  %v4533_v38 = vsel %vm36_vm0, %v11332_v54, -inf  ;;  %v9970_v12 = vpop.permute.xlu1 %9969 }
 0x82d   :  { %4534 = vmax.xlane.f32.xlu1 %v4533_v38  ;;  %v9972_v38 = vunpack.i.h.bf16 %v9970_v12 }
 0x832   :  { %v11338_v57 = vpop.f32.mrb[56].mxu0 }
 0x833   :  { %v11340_v10 = vpop.f32.mrb[57].mxu0  ;;  %v4542_v34 = vsel %vm36_vm0, %v11338_v57, -inf }
 0x834   :  { %4543 = vmax.xlane.f32.xlu0 %v4542_v34  ;;  %v4539_v32 = vsel %vm36_vm0, %v11340_v10, -inf  ;;  %v9971_v34 = vunpack.i.l.bf16 %v9970_v12 }
 0x835   :  { %4540 = vmax.xlane.f32.xlu1 %v4539_v32 }
 0x83a   :  { %v11346_v28 = vpop.f32.mrb[58].mxu0 }
 0x83b   :  { %v11348_v25 = vpop.f32.mrb[59].mxu0  ;;  %v4548_v23 = vsel %vm36_vm0, %v11346_v28, -inf }
 0x83c   :  { %4549 = vmax.xlane.f32.xlu0 %v4548_v23  ;;  %v4545_v15 = vsel %vm36_vm0, %v11348_v25, -inf }
 0x83d   :  { %4546 = vmax.xlane.f32.xlu1 %v4545_v15 }
 0x842   :  { %v11357_v18 = vpop.f32.mrb[60].mxu0 }
 0x843   :  { %v11359_v45 = vpop.f32.mrb[61].mxu0  ;;  %v4554_v31 = vsel %vm36_vm0, %v11357_v18, -inf }
 0x844   :  { %4555 = vmax.xlane.f32.xlu0 %v4554_v31  ;;  %v4551_v35 = vsel %vm36_vm0, %v11359_v45, -inf }
 0x845   :  { %4552 = vmax.xlane.f32.xlu1 %v4551_v35 }
 0x84a   :  { %v11365_v22 = vpop.f32.mrb[62].mxu0 }
 0x84b   :  { %v11367_v40 = vpop.f32.mrb[63].mxu0  ;;  %v4560_v51 = vsel %vm36_vm0, %v11365_v22, -inf }
 0x84c   :  { %4561 = vmax.xlane.f32.xlu0 %v4560_v51  ;;  %v4557_v30 = vsel %vm36_vm0, %v11367_v40, -inf }
 0x84d   :  { %4558 = vmax.xlane.f32.xlu1 %v4557_v30  ;;  %v11405_v30 = vpack.c.bf16 %v9972_v38, %v9971_v34 }
 0x852   :  { %v11373_v19 = vpop.f32.mrb[64].mxu0 }
 0x853   :  { %v11375_v42 = vpop.f32.mrb[65].mxu0  ;;  %v4566_v50 = vsel %vm36_vm0, %v11373_v19, -inf }
 0x854   :  { %4567 = vmax.xlane.f32.xlu0 %v4566_v50  ;;  %v4563_v62 = vsel %vm36_vm0, %v11375_v42, -inf }
 0x855   :  { %4564 = vmax.xlane.f32.xlu1 %v4563_v62 }
 0x85a   :  { %v11381_v11 = vpop.f32.mrb[66].mxu0 }
 0x85b   :  { %v11383_v4 = vpop.f32.mrb[67].mxu0  ;;  %v4572_v8 = vsel %vm36_vm0, %v11381_v11, -inf }
 0x85c   :  { %4573 = vmax.xlane.f32.xlu0 %v4572_v8  ;;  %v4569_v14 = vsel %vm36_vm0, %v11383_v4, -inf }
 0x85d   :  { %4570 = vmax.xlane.f32.xlu1 %v4569_v14 }
 0x862   :  { %v11389_v7 = vpop.f32.mrb[68].mxu0 }
 0x863   :  { %v11391_v26 = vpop.f32.mrb[69].mxu0  ;;  %v4578_v20 = vsel %vm36_vm0, %v11389_v7, -inf }
 0x864   :  { %4579 = vmax.xlane.f32.xlu0 %v4578_v20  ;;  %v4575_v60 = vsel %vm36_vm0, %v11391_v26, -inf }
 0x86e   :  { %9979 = vrot.lane.b32.xlu1 %v10506_v27, %s10375_s5 }
 0x87a   :  { %9974 = vrot.lane.b32.xlu0 %v10496_v24, %s10375_s5 }
 0x892   :  { %4576 = vmax.xlane.f32.xlu1 %v4575_v60 }
 0x8b8   :  { %v9029_v32 = vpop.f32.mrb[30].mxu1 }
 0x8b9   :  { %v3149_v23 = vpop.f32.mrb[31].mxu1  ;;  %v4538_v15 = vpop.xlane.xlu0 %4537 }
 0x8ba   :  { %v4582_v31 = vsub.f32 %v11330_v16, %v4538_v15  ;;  %9065 = vmatprep.mubr.msk.f32.mxu1 %vm240_vm1, %v3149_v23  ;;  %v4535_v35 = vpop.xlane.xlu1 %4534 }
 0x8bb   :  { %v4581_v51 = vsub.f32 %v11332_v54, %v4535_v35  ;;  %9066 = vmatmul.mubr.msk.f32.vlgmr.msra.gmra.mrb[34].mxu1 %vm240_vm1, %v9029_v32 }
 0x8bc   :  { %v4599_v50 = vmul.f32 1.442695, %v4582_v31  ;;  %9078 = vmatpush3.msra.mxu1 %v230_v37  ;;  %9068 = vmatprep.mubr.msk.f32.mxu1 %vm240_vm1, %v11300_v41 }
 0x8bd   :  { %v4597_v62 = vmul.f32 1.442695, %v4581_v51  ;;  %9592 = vmatprep.subr.bf16.mxu1 %v11405_v30 }
 0x8be   :  { %10216 = vpow2.f32 %v4599_v50 }
 0x8bf   :  { %10218 = vpow2.f32 %v4597_v62  ;;  %9069 = vmatmul.mubr.msk.f32.gmra.mrb[36].mxu1 %vm240_vm1, %v11298_v29 }
 0x8c1   :  { %v4544_v16 = vpop.xlane.xlu0 %4543 }
 0x8c2   :  { %v4584_v54 = vsub.f32 %v11338_v57, %v4544_v16  ;;  %v4541_v8 = vpop.xlane.xlu1 %4540 }
 0x8c3   :  { %v4583_v14 = vsub.f32 %v11340_v10, %v4541_v8 }
 0x8c4   :  { %v4603_v20 = vmul.f32 1.442695, %v4584_v54 }
 0x8c5   :  { %v4601_v60 = vmul.f32 1.442695, %v4583_v14 }
 0x8c6   :  { %10220 = vpow2.f32 %v4603_v20 }
 0x8c7   :  { %10222 = vpow2.f32 %v4601_v60 }
 0x8c8   :  { %v11414_v37 = vpop.eup %10216 }
 0x8c9   :  { %v11416_v41 = vpop.eup %10218  ;;  %v4550_v12 = vpop.xlane.xlu0 %4549  ;;  %v4632_v38 = vsel %vm36_vm0, %v11414_v37, 0.0 }
 0x8ca   :  { %v4586_v29 = vsub.f32 %v11346_v28, %v4550_v12  ;;  %v4547_v34 = vpop.xlane.xlu1 %4546  ;;  %4633 = vadd.xlane.f32.xlu0 %v4632_v38  ;;  %v4629_v57 = vsel %vm36_vm0, %v11416_v41, 0.0 }
 0x8cb   :  { %v4585_v10 = vsub.f32 %v11348_v25, %v4547_v34  ;;  %4630 = vadd.xlane.f32.xlu1 %v4629_v57 }
 0x8cc   :  { %v4607_v32 = vmul.f32 1.442695, %v4586_v29 }
 0x8cd   :  { %v4605_v23 = vmul.f32 1.442695, %v4585_v10 }
 0x8ce   :  { %10224 = vpow2.f32 %v4607_v32 }
 0x8cf   :  { %10226 = vpow2.f32 %v4605_v23 }
 0x8d0   :  { %v11424_v15 = vpop.eup %10220 }
 0x8d1   :  { %v11426_v31 = vpop.eup %10222  ;;  %v4556_v35 = vpop.xlane.xlu0 %4555  ;;  %v4638_v28 = vsel %vm36_vm0, %v11424_v15, 0.0 }
 0x8d2   :  { %v4588_v51 = vsub.f32 %v11357_v18, %v4556_v35  ;;  %v4553_v50 = vpop.xlane.xlu1 %4552  ;;  %4639 = vadd.xlane.f32.xlu0 %v4638_v28  ;;  %v4635_v25 = vsel %vm36_vm0, %v11426_v31, 0.0 }
 0x8d3   :  { %v4587_v62 = vsub.f32 %v11359_v45, %v4553_v50  ;;  %4636 = vadd.xlane.f32.xlu1 %v4635_v25 }
 0x8d4   :  { %v4611_v16 = vmul.f32 1.442695, %v4588_v51 }
 0x8d5   :  { %v4609_v54 = vmul.f32 1.442695, %v4587_v62 }
 0x8d6   :  { %10228 = vpow2.f32 %v4611_v16 }
 0x8d7   :  { %10230 = vpow2.f32 %v4609_v54 }
 0x8d8   :  { %v11434_v8 = vpop.eup %10224 }
 0x8d9   :  { %v11436_v14 = vpop.eup %10226  ;;  %v4562_v20 = vpop.xlane.xlu0 %4561  ;;  %v4644_v18 = vsel %vm36_vm0, %v11434_v8, 0.0 }
 0x8da   :  { %v4590_v60 = vsub.f32 %v11365_v22, %v4562_v20  ;;  %v4559_v12 = vpop.xlane.xlu1 %4558  ;;  %4645 = vadd.xlane.f32.xlu0 %v4644_v18  ;;  %v4641_v45 = vsel %vm36_vm0, %v11436_v14, 0.0 }
 0x8db   :  { %v4589_v38 = vsub.f32 %v11367_v40, %v4559_v12  ;;  %4642 = vadd.xlane.f32.xlu1 %v4641_v45 }
 0x8dc   :  { %v4615_v29 = vmul.f32 1.442695, %v4590_v60 }
 0x8dd   :  { %v4613_v34 = vmul.f32 1.442695, %v4589_v38 }
 0x8de   :  { %10232 = vpow2.f32 %v4615_v29 }
 0x8df   :  { %10234 = vpow2.f32 %v4613_v34 }
 0x8e0   :  { %v11444_v57 = vpop.eup %10228 }
 0x8e1   :  { %v11446_v10 = vpop.eup %10230  ;;  %v4568_v32 = vpop.xlane.xlu0 %4567  ;;  %v4650_v22 = vsel %vm36_vm0, %v11444_v57, 0.0 }
 0x8e2   :  { %v4592_v23 = vsub.f32 %v11373_v19, %v4568_v32  ;;  %v4565_v35 = vpop.xlane.xlu1 %4564  ;;  %4651 = vadd.xlane.f32.xlu0 %v4650_v22  ;;  %v4647_v40 = vsel %vm36_vm0, %v11446_v10, 0.0 }
 0x8e3   :  { %v4591_v28 = vsub.f32 %v11375_v42, %v4565_v35  ;;  %4648 = vadd.xlane.f32.xlu1 %v4647_v40 }
 0x8e4   :  { %v4619_v51 = vmul.f32 1.442695, %v4592_v23 }
 0x8e5   :  { %v4617_v50 = vmul.f32 1.442695, %v4591_v28 }
 0x8e6   :  { %10236 = vpow2.f32 %v4619_v51 }
 0x8e7   :  { %10238 = vpow2.f32 %v4617_v50 }
 0x8e8   :  { %v11454_v25 = vpop.eup %10232 }
 0x8e9   :  { %v11456_v62 = vpop.eup %10234  ;;  %v4574_v16 = vpop.xlane.xlu0 %4573  ;;  %v4656_v19 = vsel %vm36_vm0, %v11454_v25, 0.0 }
 0x8ea   :  { %v4594_v54 = vsub.f32 %v11381_v11, %v4574_v16  ;;  %v4571_v20 = vpop.xlane.xlu1 %4570  ;;  %4657 = vadd.xlane.f32.xlu0 %v4656_v19  ;;  %v4653_v42 = vsel %vm36_vm0, %v11456_v62, 0.0 }
 0x8eb   :  { %v4593_v18 = vsub.f32 %v11383_v4, %v4571_v20  ;;  %4654 = vadd.xlane.f32.xlu1 %v4653_v42 }
 0x8ec   :  { %v4623_v60 = vmul.f32 1.442695, %v4594_v54 }
 0x8ed   :  { %v4621_v12 = vmul.f32 1.442695, %v4593_v18  ;;  %v12485_v18 = vld [vmem:[#allocation12_spill] sm:$0xff] }
 0x8ee   :  { %10240 = vpow2.f32 %v4623_v60  ;;  %v9980_v23 = vpop.permute.xlu1 %9979  ;;  %v12486_v60 = vld [vmem:[#allocation14_spill] sm:$0xff] }
 0x8ef   :  { %v9043_v45 = vpop.f32.mrb[32].mxu1  ;;  %10242 = vpow2.f32 %v4621_v12  ;;  %v9981_v50 = vunpack.i.l.bf16 %v9980_v23  ;;  %v12487_v12 = vld [vmem:[#allocation17_spill] sm:$0xff] }
 0x8f0   :  { %v11464_v38 = vpop.eup %10236  ;;  %v3323_v29 = vpop.f32.mrb[33].mxu1 }
 0x8f1   :  { %v11466_v34 = vpop.eup %10238  ;;  %v4580_v32 = vpop.xlane.xlu0 %4579  ;;  %v4662_v11 = vsel %vm36_vm0, %v11464_v38, 0.0  ;;  %9071 = vmatprep.mubr.msk.f32.mxu1 %vm240_vm1, %v3323_v29  ;;  %v12489_v29 = vld [vmem:[#allocation19_spill] sm:$0xff] }
 0x8f2   :  { %v4596_v22 = vsub.f32 %v11389_v7, %v4580_v32  ;;  %4663 = vadd.xlane.f32.xlu0 %v4662_v11  ;;  %v4659_v4 = vsel %vm36_vm0, %v11466_v34, 0.0  ;;  %9072 = vmatmul.mubr.msk.f32.gmra.mrb[38].mxu1 %vm240_vm1, %v9043_v45  ;;  %v9982_v7 = vunpack.i.h.bf16 %v9980_v23  ;;  %v12488_v45 = vld [vmem:[#allocation22_spill] sm:$0xff]  ;;  %v12490_v32 = vld [vmem:[#allocation21_spill] sm:$0xff] }
 0x8f3   :  { %4660 = vadd.xlane.f32.xlu1 %v4659_v4  ;;  %9074 = vmatprep.mubr.msk.f32.mxu1 %vm240_vm1, %v11308_v56  ;;  %v12491_v11 = vld [vmem:[#allocation5_spill] sm:$0xff] }
 0x8f4   :  { %v4627_v35 = vmul.f32 1.442695, %v4596_v22  ;;  %v12492_v22 = vld [vmem:[#allocation8_spill] sm:$0xff]  ;;  %v12493_v4 = vld [vmem:[#allocation9_spill] sm:$0xff] }
 0x8f5   :  { %v9975_v40 = vpop.permute.xlu0 %9974 }
 0x8f6   :  { %10244 = vpow2.f32 %v4627_v35  ;;  %v9977_v28 = vunpack.i.h.bf16 %v9975_v40  ;;  %v9976_v51 = vunpack.i.l.bf16 %v9975_v40  ;;  %9075 = vmatmul.mubr.msk.f32.gmra.mrb[40].mxu1 %vm240_vm1, %v11306_v9  ;;  %v11489_v9 = vpack.c.bf16 %v9982_v7, %v9981_v50  ;;  %v12494_v40 = vld [vmem:[#allocation11_spill] sm:$0xff] }
 0x8f7   :  { %9079 = vmatprep.mubr.msk.f32.mxu1 %vm240_vm1, %v10902_v63  ;;  %v12495_v7 = vld [vmem:[#allocation15_spill] sm:$0xff] }
 0x8f8   :  { %v11481_v16 = vpop.eup %10240  ;;  %v9595_v19 = vpack.c.bf16 %v9977_v28, %v9976_v51 }
 0x8f9   :  { %v4668_v56 = vsel %vm36_vm0, %v11481_v16, 0.0  ;;  %v11485_v54 = vpop.eup %10242 }
 0x8fa   :  { %4669 = vadd.xlane.f32.xlu0 %v4668_v56  ;;  %9596 = vmatprep.subr.bf16.mxu0 %v9595_v19  ;;  %v4665_v63 = vsel %vm36_vm0, %v11485_v54, 0.0 }
 0x8fb   :  { %9598 = vmatpush3.bf16.msra.mxu0 %v9595_v19  ;;  %9080 = vmatmul.mubr.msk.f32.vlgmr.msra.gmra.mrb[42].mxu1 %vm240_vm1, %v10900_v43 }
 0x8fc   :  { %9594 = vmatpush3.bf16.msra.mxu1 %v11405_v30  ;;  %9082 = vmatprep.mubr.msk.f32.mxu1 %vm240_vm1, %v10906_v59  ;;  %v12478_v59 = vld [vmem:[#allocation23_spill] sm:$0xff]  ;;  %v12484_v30 = vld [vmem:[#allocation10_spill] sm:$0xff] }
 0x8fd   :  { %9600 = vmatprep.subr.bf16.mxu1 %v11489_v9 }
 0x8fe   :  { %4666 = vadd.xlane.f32.xlu0 %v4665_v63 }
 0x8ff   :  { %9083 = vmatmul.mubr.msk.f32.gmra.mrb[44].mxu1 %vm240_vm1, %v10904_v58  ;;  %v12477_v58 = vld [vmem:[#allocation24_spill] sm:$0xff] }
 0x900   :  { %v11499_v20 = vpop.eup %10244  ;;  %9085 = vmatprep.mubr.msk.f32.mxu1 %vm240_vm1, %v10910_v55  ;;  %v12480_v55 = vld [vmem:[#allocation25_spill] sm:$0xff] }
 0x901   :  { %v4674_v43 = vsel %vm36_vm0, %v11499_v20, 0.0 }
 0x902   :  { %4675 = vadd.xlane.f32.xlu0 %v4674_v43 }
 0x903   :  { %9086 = vmatmul.mubr.msk.f32.gmra.mrb[46].mxu1 %vm240_vm1, %v10908_v52  ;;  %v12479_v52 = vld [vmem:[#allocation26_spill] sm:$0xff] }
 0x904   :  { %9989 = vrot.lane.b32.xlu1 %v10528_v33, %s10375_s5  ;;  %9088 = vmatprep.mubr.msk.f32.mxu1 %vm240_vm1, %v10916_v13 }
 0x907   :  { %9089 = vmatmul.mubr.msk.f32.gmra.mrb[48].mxu1 %vm240_vm1, %v10912_v6  ;;  %v12481_v6 = vld [vmem:[#allocation13_spill] sm:$0xff] }
 0x908   :  { %9994 = vrot.lane.b32.xlu1 %v10538_v36, %s10375_s5  ;;  %9091 = vmatprep.mubr.msk.f32.mxu1 %vm240_vm1, %v10918_v61  ;;  %v12482_v61 = vld [vmem:[#allocation6_spill] sm:$0xff] }
 0x90b   :  { %9092 = vmatmul.mubr.msk.f32.gmra.mrb[34].mxu1 %vm240_vm1, %v10914_v49 }
 0x90c   :  { %9999 = vrot.lane.b32.xlu1 %v10548_v39, %s10375_s5  ;;  %9094 = vmatprep.mubr.msk.f32.mxu1 %vm240_vm1, %v10928_v3  ;;  %v12483_v3 = vld [vmem:[#allocation7_spill] sm:$0xff] }
 0x90f   :  { %9095 = vmatmul.mubr.msk.f32.gmra.mrb[36].mxu1 %vm240_vm1, %v10926_v5 }
 0x910   :  { %9097 = vmatprep.mubr.msk.f32.mxu1 %vm240_vm1, %v12477_v58 }
 0x913   :  { %9098 = vmatmul.mubr.msk.f32.gmra.mrb[38].mxu1 %vm240_vm1, %v12478_v59  ;;  %v12496_v59 = vld [vmem:[#allocation16_spill] sm:$0xff] }
 0x914   :  { %9100 = vmatprep.mubr.msk.f32.mxu1 %vm240_vm1, %v12479_v52 }
 0x917   :  { %9101 = vmatmul.mubr.msk.f32.gmra.mrb[40].mxu1 %vm240_vm1, %v12480_v55 }
 0x918   :  { %9984 = vrot.lane.b32.xlu0 %v12481_v6, %s10375_s5 }
 0x91c   :  { %10009 = vrot.lane.b32.xlu0 %v10486_v21, %s10376_s8 }
 0x91f   :  { %v4577_v49 = vpop.xlane.xlu1 %4576 }
 0x920   :  { %v4595_v13 = vsub.f32 %v11391_v26, %v4577_v49  ;;  %5614 = vrot.lane.b32.xlu0 %v12482_v61, %s10377_s9  ;;  %v12497_v49 = vld [vmem:[#allocation18_spill] sm:$0xff] }
 0x922   :  { %v4625_v5 = vmul.f32 1.442695, %v4595_v13 }
 0x924   :  { %10246 = vpow2.f32 %v4625_v5  ;;  %10019 = vrot.lane.b32.xlu0 %v10506_v27, %s10376_s8 }
 0x928   :  { %5707 = vrot.lane.b32.xlu0 %v12483_v3, %s10377_s9 }
 0x92c   :  { %5796 = vrot.lane.b32.xlu0 %v12484_v30, %s10377_s9 }
 0x92e   :  { %v11546_v42 = vpop.eup %10246 }
 0x92f   :  { %v4671_v26 = vsel %vm36_vm0, %v11546_v42, 0.0 }
 0x930   :  { %10029 = vrot.lane.b32.xlu0 %v10528_v33, %s10376_s8  ;;  %4672 = vadd.xlane.f32.xlu1 %v4671_v26 }
 0x934   :  { %5887 = vrot.lane.b32.xlu0 %v12485_v18, %s10377_s9 }
 0x938   :  { %10039 = vrot.lane.b32.xlu0 %v10548_v39, %s10376_s8 }
 0x93c   :  { %5980 = vrot.lane.b32.xlu0 %v12486_v60, %s10377_s9 }
 0x940   :  { %6069 = vrot.lane.b32.xlu0 %v12487_v12, %s10377_s9 }
 0x941   :  { %10004 = vrot.lane.b32.xlu1 %v12488_v45, %s10375_s5 }
 0x944   :  { %6160 = vrot.lane.b32.xlu0 %v12489_v29, %s10377_s9 }
 0x945   :  { %10014 = vrot.lane.b32.xlu1 %v10496_v24, %s10376_s8 }
 0x948   :  { %6251 = vrot.lane.b32.xlu0 %v12490_v32, %s10377_s9 }
 0x949   :  { %5616 = vrot.lane.b32.xlu1 %v12491_v11, %s10377_s9 }
 0x94d   :  { %5705 = vrot.lane.b32.xlu1 %v12492_v22, %s10377_s9 }
 0x951   :  { %10024 = vrot.lane.b32.xlu1 %v12481_v6, %s10376_s8 }
 0x955   :  { %5798 = vrot.lane.b32.xlu1 %v12493_v4, %s10377_s9 }
 0x957   :  { %v4634_v23 = vpop.xlane.xlu0 %4633 }
 0x958   :  { %10248 = vrcp.f32 %v4634_v23  ;;  %v4631_v35 = vpop.xlane.xlu1 %4630 }
 0x959   :  { %10034 = vrot.lane.b32.xlu1 %v10538_v36, %s10376_s8  ;;  %10250 = vrcp.f32 %v4631_v35 }
 0x95d   :  { %5889 = vrot.lane.b32.xlu1 %v12494_v40, %s10377_s9 }
 0x95f   :  { %v4640_v28 = vpop.xlane.xlu0 %4639 }
 0x960   :  { %10252 = vrcp.f32 %v4640_v28  ;;  %v4637_v51 = vpop.xlane.xlu1 %4636 }
 0x961   :  { %10254 = vrcp.f32 %v4637_v51  ;;  %5978 = vrot.lane.b32.xlu1 %v12495_v7, %s10377_s9 }
 0x962   :  { %v10249_v50 = vpop.eup %10248 }
 0x963   :  { %v10251_v19 = vpop.eup %10250  ;;  %v4694_v63 = vmul.f32 %v10249_v50, %v11414_v37 }
 0x964   :  { %v4693_v56 = vmul.f32 %v10251_v19, %v11416_v41 }
 0x965   :  { %10044 = vrot.lane.b32.xlu1 %v12488_v45, %s10376_s8 }
 0x966   :  { %9163 = vmatprep.mubr.msk.f32.mxu1 %vm36_vm0, %v4693_v56  ;;  %v232_v56 = vld [vmem:[%s12430_s2 + $0x10] sm:$0xff] }
 0x967   :  { %v4646_v43 = vpop.xlane.xlu0 %4645  ;;  %9164 = vmatmul.mubr.msk.f32.vlgmr.msra.gmra.mrb[50].mxu1 %vm36_vm0, %v4694_v63 }
 0x968   :  { %10256 = vrcp.f32 %v4646_v43  ;;  %9602 = vmatpush3.bf16.msra.mxu1 %v11489_v9  ;;  %v4643_v58 = vpop.xlane.xlu1 %4642  ;;  %v12498_v9 = vld [vmem:[#allocation20_spill] sm:$0xff] }
 0x969   :  { %10258 = vrcp.f32 %v4643_v58  ;;  %6071 = vrot.lane.b32.xlu1 %v12496_v59, %s10377_s9 }
 0x96a   :  { %v10253_v52 = vpop.eup %10252 }
 0x96b   :  { %v10255_v41 = vpop.eup %10254  ;;  %v4696_v55 = vmul.f32 %v10253_v52, %v11424_v15 }
 0x96c   :  { %v4695_v37 = vmul.f32 %v10255_v41, %v11426_v31 }
 0x96d   :  { %6162 = vrot.lane.b32.xlu1 %v12497_v49, %s10377_s9 }
 0x96e   :  { %9170 = vmatprep.mubr.msk.f32.mxu0 %vm36_vm0, %v4695_v37 }
 0x96f   :  { %9171 = vmatmul.mubr.msk.f32.vlgmr.msra.gmra.mrb[70].mxu0 %vm36_vm0, %v4696_v55  ;;  %v4652_v15 = vpop.xlane.xlu0 %4651 }
 0x970   :  { %v4649_v13 = vpop.xlane.xlu1 %4648 }
 0x971   :  { %10260 = vrcp.f32 %v4649_v13  ;;  %6253 = vrot.lane.b32.xlu1 %v12498_v9, %s10377_s9 }
 0x972   :  { %v10257_v61 = vpop.eup %10256 }
 0x973   :  { %v10259_v5 = vpop.eup %10258  ;;  %v4698_v31 = vmul.f32 %v10257_v61, %v11434_v8 }
 0x974   :  { %v4697_v3 = vmul.f32 %v10259_v5, %v11436_v14 }
 0x976   :  { %9177 = vmatprep.mubr.msk.f32.mxu1 %vm36_vm0, %v4697_v3 }
 0x977   :  { %9178 = vmatmul.mubr.msk.f32.vlgmr.msra.gmra.mrb[52].mxu1 %vm36_vm0, %v4698_v31  ;;  %v4658_v18 = vpop.xlane.xlu0 %4657 }
 0x978   :  { %v4655_v30 = vpop.xlane.xlu1 %4654 }
 0x979   :  { %10262 = vrcp.f32 %v4655_v30 }
 0x97a   :  { %10264 = vrcp.f32 %v4658_v18 }
 0x97b   :  { %v10261_v26 = vpop.eup %10260 }
 0x97c   :  { %v4699_v60 = vmul.f32 %v10261_v26, %v11446_v10 }
 0x97e   :  { %9184 = vmatprep.mubr.msk.f32.mxu0 %vm36_vm0, %v4699_v60 }
 0x97f   :  { %v4664_v32 = vpop.xlane.xlu0 %4663 }
 0x980   :  { %v4661_v12 = vpop.xlane.xlu1 %4660 }
 0x983   :  { %v10263_v29 = vpop.eup %10262 }
 0x984   :  { %v9990_v14 = vpop.permute.xlu1 %9989  ;;  %v4701_v8 = vmul.f32 %v10263_v29, %v11456_v62  ;;  %v10265_v35 = vpop.eup %10264 }
 0x985   :  { %v9992_v11 = vunpack.i.h.bf16 %v9990_v14  ;;  %v9991_v22 = vunpack.i.l.bf16 %v9990_v14  ;;  %v4702_v10 = vmul.f32 %v10265_v35, %v11454_v25 }
 0x986   :  { %9191 = vmatprep.mubr.msk.f32.mxu1 %vm36_vm0, %v4701_v8 }
 0x987   :  { %v9607_v4 = vpack.c.bf16 %v9992_v11, %v9991_v22  ;;  %v4670_v23 = vpop.xlane.xlu0 %4669 }
 0x988   :  { %v9995_v40 = vpop.permute.xlu1 %9994  ;;  %10266 = vrcp.f32 %v4670_v23 }
 0x989   :  { %9608 = vmatprep.subr.bf16.mxu1 %v9607_v4  ;;  %v9997_v63 = vunpack.i.h.bf16 %v9995_v40  ;;  %v9996_v43 = vunpack.i.l.bf16 %v9995_v40 }
 0x98a   :  { %9610 = vmatpush3.bf16.msra.mxu1 %v9607_v4 }
 0x98b   :  { %v4667_v28 = vpop.xlane.xlu0 %4666  ;;  %v9611_v5 = vpack.c.bf16 %v9997_v63, %v9996_v43 }
 0x98c   :  { %10268 = vrcp.f32 %v4667_v28  ;;  %v10000_v51 = vpop.permute.xlu1 %9999 }
 0x98d   :  { %10270 = vrcp.f32 %v4652_v15  ;;  %v10002_v7 = vunpack.i.h.bf16 %v10000_v51  ;;  %v10001_v50 = vunpack.i.l.bf16 %v10000_v51  ;;  %9192 = vmatmul.mubr.msk.f32.vlgmr.msra.gmra.mrb[54].mxu1 %vm36_vm0, %v4702_v10 }
 0x98e   :  { %10272 = vrcp.f32 %v4661_v12 }
 0x98f   :  { %v9615_v62 = vpack.c.bf16 %v10002_v7, %v10001_v50  ;;  %v4676_v19 = vpop.xlane.xlu0 %4675  ;;  %10274 = vrcp.f32 %v4664_v32 }
 0x990   :  { %10276 = vrcp.f32 %v4676_v19 }
 0x991   :  { %9616 = vmatprep.subr.bf16.mxu1 %v9615_v62 }
 0x992   :  { %9618 = vmatpush3.bf16.msra.mxu1 %v9615_v62  ;;  %v10267_v52 = vpop.eup %10266 }
 0x993   :  { %v9985_v25 = vpop.permute.xlu0 %9984  ;;  %9215 = vmatprep.subr.mxu1 %v232_v56  ;;  %v4706_v61 = vmul.f32 %v10267_v52, %v11481_v16 }
 0x994   :  { %v9987_v58 = vunpack.i.h.bf16 %v9985_v25  ;;  %v9986_v59 = vunpack.i.l.bf16 %v9985_v25 }
 0x996   :  { %v10269_v41 = vpop.eup %10268  ;;  %v9603_v37 = vpack.c.bf16 %v9987_v58, %v9986_v59 }
 0x997   :  { %v10271_v55 = vpop.eup %10270  ;;  %v10010_v49 = vpop.permute.xlu0 %10009  ;;  %v4705_v13 = vmul.f32 %v10269_v41, %v11485_v54 }
 0x998   :  { %v10273_v9 = vpop.eup %10272  ;;  %9604 = vmatprep.subr.bf16.mxu0 %v9603_v37  ;;  %v4700_v3 = vmul.f32 %v10271_v55, %v11444_v57  ;;  %v10012_v14 = vunpack.i.h.bf16 %v10010_v49 }
 0x999   :  { %9606 = vmatpush3.bf16.msra.mxu0 %v9603_v37  ;;  %9205 = vmatprep.mubr.msk.f32.mxu1 %vm36_vm0, %v4705_v13  ;;  %v10275_v31 = vpop.eup %10274  ;;  %v4703_v30 = vmul.f32 %v10273_v9, %v11466_v34 }
 0x99a   :  { %9612 = vmatprep.subr.bf16.mxu0 %v9611_v5  ;;  %9206 = vmatmul.mubr.msk.f32.vlgmr.msra.gmra.mrb[56].mxu1 %vm36_vm0, %v4706_v61  ;;  %v4704_v16 = vmul.f32 %v10275_v31, %v11464_v38  ;;  %v10011_v38 = vunpack.i.l.bf16 %v10010_v49  ;;  %v10277_v35 = vpop.eup %10276 }
 0x99b   :  { %v5615_v15 = vpop.permute.xlu0 %5614  ;;  %9216 = vmatpush3.msra.mxu1 %v232_v56  ;;  %v4708_v51 = vmul.f32 %v10277_v35, %v11499_v20 }
 0x99c   :  { %9185 = vmatmul.mubr.msk.f32.vlgmr.msra.gmra.mrb[72].mxu0 %vm36_vm0, %v4700_v3  ;;  %v9623_v23 = vpack.c.bf16 %v10012_v14, %v10011_v38 }
 0x99d   :  { %9614 = vmatpush3.bf16.msra.mxu0 %v9611_v5  ;;  %9198 = vmatprep.mubr.msk.f32.mxu0 %vm36_vm0, %v4703_v30 }
 0x99f   :  { %v10020_v54 = vpop.permute.xlu0 %10019 }
 0x9a0   :  { %9199 = vmatmul.mubr.msk.f32.vlgmr.msra.gmra.mrb[74].mxu0 %vm36_vm0, %v4704_v16  ;;  %v10021_v25 = vunpack.i.l.bf16 %v10020_v54 }
 0x9a3   :  { %v5708_v26 = vpop.permute.xlu0 %5707 }
 0x9a7   :  { %v5797_v57 = vpop.permute.xlu0 %5796 }
 0x9ab   :  { %v10030_v18 = vpop.permute.xlu0 %10029 }
 0x9ac   :  { %v10032_v60 = vunpack.i.h.bf16 %v10030_v18  ;;  %v10031_v12 = vunpack.i.l.bf16 %v10030_v18 }
 0x9ae   :  { %v11622_v29 = vpack.c.bf16 %v10032_v60, %v10031_v12 }
 0x9af   :  { %v5888_v43 = vpop.permute.xlu0 %5887 }
 0x9b0   :  { %9649 = vmatprep.subr.msk.bf16.mxu1 %vm10572_vm2, %v11622_v29 }
 0x9b3   :  { %v10040_v37 = vpop.permute.xlu0 %10039 }
 0x9b4   :  { %v10042_v12 = vunpack.i.h.bf16 %v10040_v37 }
 0x9b7   :  { %v5981_v61 = vpop.permute.xlu0 %5980 }
 0x9bb   :  { %v6070_v31 = vpop.permute.xlu0 %6069 }
 0x9bd   :  { %v4673_v34 = vpop.xlane.xlu1 %4672 }
 0x9be   :  { %10278 = vrcp.f32 %v4673_v34  ;;  %v10041_v34 = vunpack.i.l.bf16 %v10040_v37 }
 0x9c0   :  { %v9659_v38 = vpack.c.bf16 %v10042_v12, %v10041_v34 }
 0x9c1   :  { %v10005_v32 = vpop.permute.xlu1 %10004 }
 0x9c2   :  { %v10007_v8 = vunpack.i.h.bf16 %v10005_v32  ;;  %v10006_v11 = vunpack.i.l.bf16 %v10005_v32 }
 0x9c4   :  { %v9619_v22 = vpack.c.bf16 %v10007_v8, %v10006_v11 }
 0x9c5   :  { %v10015_v4 = vpop.permute.xlu1 %10014 }
 0x9c6   :  { %9620 = vmatprep.subr.bf16.mxu0 %v9619_v22  ;;  %v10017_v7 = vunpack.i.h.bf16 %v10015_v4  ;;  %v10016_v50 = vunpack.i.l.bf16 %v10015_v4 }
 0x9c7   :  { %9622 = vmatpush3.bf16.msra.mxu0 %v9619_v22 }
 0x9c8   :  { %v10279_v40 = vpop.eup %10278  ;;  %9625 = vmatprep.subr.msk.bf16.mxu0 %vm10572_vm2, %v9623_v23  ;;  %v9629_v19 = vpack.c.bf16 %v10017_v7, %v10016_v50 }
 0x9c9   :  { %v5617_v10 = vpop.permute.xlu1 %5616  ;;  %v4707_v28 = vmul.f32 %v10279_v40, %v11546_v42  ;;  %v10022_v42 = vunpack.i.h.bf16 %v10020_v54  ;;  %v6161_v54 = vpop.permute.xlu0 %6160 }
 0x9cb   :  { %9212 = vmatprep.mubr.msk.f32.mxu0 %vm36_vm0, %v4707_v28  ;;  %v9635_v63 = vpack.c.bf16 %v10022_v42, %v10021_v25 }
 0x9cc   :  { %9213 = vmatmul.mubr.msk.f32.vlgmr.msra.gmra.mrb[76].mxu0 %vm36_vm0, %v4708_v51 }
 0x9cd   :  { %v5706_v62 = vpop.permute.xlu1 %5705  ;;  %9245 = vmatprep.mubr.msk.f32.mxu0 %vm240_vm1, %v5615_v15 }
 0x9d0   :  { %9628 = vmatpush3.bf16.xpose.msk.msra.mxu0 %vm10572_vm2, %v9623_v23 }
 0x9d1   :  { %v10025_v56 = vpop.permute.xlu1 %10024  ;;  %9631 = vmatprep.subr.msk.bf16.mxu0 %vm10572_vm2, %v9629_v19 }
 0x9d2   :  { %v10027_v59 = vunpack.i.h.bf16 %v10025_v56  ;;  %v10026_v52 = vunpack.i.l.bf16 %v10025_v56 }
 0x9d4   :  { %v9641_v55 = vpack.c.bf16 %v10027_v59, %v10026_v52 }
 0x9d5   :  { %v5799_v20 = vpop.permute.xlu1 %5798 }
 0x9d7   :  { %9246 = vmatmul.mubr.msk.f32.vlgmr.msra.gmra.mrb[78].mxu0 %vm240_vm1, %v5617_v10 }
 0x9d8   :  { %9634 = vmatpush3.bf16.xpose.msk.msra.mxu0 %vm10572_vm2, %v9629_v19  ;;  %9252 = vmatprep.mubr.msk.f32.mxu0 %vm240_vm1, %v5706_v62 }
 0x9d9   :  { %v10035_v58 = vpop.permute.xlu1 %10034  ;;  %9637 = vmatprep.subr.msk.bf16.mxu0 %vm10572_vm2, %v9635_v63 }
 0x9da   :  { %v10037_v13 = vunpack.i.h.bf16 %v10035_v58  ;;  %v10036_v9 = vunpack.i.l.bf16 %v10035_v58 }
 0x9dc   :  { %v9653_v5 = vpack.c.bf16 %v10037_v13, %v10036_v9 }
 0x9dd   :  { %v5890_v41 = vpop.permute.xlu1 %5889 }
 0x9df   :  { %9253 = vmatmul.mubr.msk.f32.vlgmr.msra.gmra.mrb[80].mxu0 %vm240_vm1, %v5708_v26 }
 0x9e0   :  { %9640 = vmatpush3.bf16.xpose.msk.msra.mxu0 %vm10572_vm2, %v9635_v63  ;;  %9259 = vmatprep.mubr.msk.f32.mxu0 %vm240_vm1, %v5797_v57  ;;  %v6252_v57 = vpop.permute.xlu0 %6251 }
 0x9e1   :  { %9643 = vmatprep.subr.msk.bf16.mxu0 %vm10572_vm2, %v9641_v55  ;;  %v11650_v49 = vpop.permute.xlu1 %5978 }
 0x9e5   :  { %v10045_v3 = vpop.permute.xlu1 %10044 }
 0x9e6   :  { %v10047_v15 = vunpack.i.h.bf16 %v10045_v3  ;;  %v10046_v30 = vunpack.i.l.bf16 %v10045_v3 }
 0x9e7   :  { %9260 = vmatmul.mubr.msk.f32.vlgmr.msra.gmra.mrb[82].mxu0 %vm240_vm1, %v5799_v20 }
 0x9e8   :  { %9646 = vmatpush3.bf16.xpose.msk.msra.mxu0 %vm10572_vm2, %v9641_v55  ;;  %9266 = vmatprep.mubr.msk.f32.mxu0 %vm240_vm1, %v5888_v43  ;;  %v9665_v16 = vpack.c.bf16 %v10047_v15, %v10046_v30 }
 0x9e9   :  { %9655 = vmatprep.subr.msk.bf16.mxu0 %vm10572_vm2, %v9653_v5  ;;  %v6072_v26 = vpop.permute.xlu1 %6071 }
 0x9ed   :  { %v6163_v18 = vpop.permute.xlu1 %6162 }
 0x9ef   :  { %9267 = vmatmul.mubr.msk.f32.vlgmr.msra.gmra.mrb[84].mxu0 %vm240_vm1, %v5890_v41 }
 0x9f0   :  { %9658 = vmatpush3.bf16.xpose.msk.msra.mxu0 %vm10572_vm2, %v9653_v5  ;;  %9280 = vmatprep.mubr.msk.f32.mxu0 %vm240_vm1, %v6070_v31 }
 0x9f1   :  { %9667 = vmatprep.subr.msk.bf16.mxu0 %vm10572_vm2, %v9665_v16  ;;  %v6254_v60 = vpop.permute.xlu1 %6253 }
 0x9f7   :  { %9281 = vmatmul.mubr.msk.f32.vlgmr.msra.gmra.mrb[86].mxu0 %vm240_vm1, %v6072_v26 }
 0x9f8   :  { %9670 = vmatpush3.bf16.xpose.msk.msra.mxu0 %vm10572_vm2, %v9665_v16  ;;  %9294 = vmatprep.mubr.msk.f32.mxu0 %vm240_vm1, %v6252_v57 }
 0x9ff   :  { %9295 = vmatmul.mubr.msk.f32.vlgmr.msra.gmra.mrb[88].mxu0 %vm240_vm1, %v6254_v60 }
 0xa3a   :  { %v9165_v32 = vpop.f32.mrb[50].mxu1 }
 0xa3b   :  { %v4787_v14 = vpop.f32.mrb[51].mxu1 }
 0xa3c   :  { %9217 = vmatprep.mubr.msk.f32.mxu1 %vm240_vm1, %v4787_v14 }
 0xa3d   :  { %9218 = vmatmul.mubr.msk.f32.vlgmr.msra.gmra.mrb[42].mxu1 %vm240_vm1, %v9165_v32 }
 0xa3e   :  { %9652 = vmatpush3.bf16.xpose.msk.msra.mxu1 %vm10572_vm2, %v11622_v29 }
 0xa3f   :  { %9661 = vmatprep.subr.msk.bf16.mxu1 %vm10572_vm2, %v9659_v38 }
 0xa42   :  { %v9172_v8 = vpop.f32.mrb[70].mxu0 }
 0xa43   :  { %v4874_v11 = vpop.f32.mrb[71].mxu0 }
 0xa44   :  { %9220 = vmatprep.mubr.msk.f32.mxu1 %vm240_vm1, %v4874_v11 }
 0xa45   :  { %9221 = vmatmul.mubr.msk.f32.gmra.mrb[44].mxu1 %vm240_vm1, %v9172_v8 }
 0xa4a   :  { %v9179_v22 = vpop.f32.mrb[52].mxu1 }
 0xa4b   :  { %v4961_v4 = vpop.f32.mrb[53].mxu1 }
 0xa4c   :  { %9223 = vmatprep.mubr.msk.f32.mxu1 %vm240_vm1, %v4961_v4 }
 0xa4d   :  { %9224 = vmatmul.mubr.msk.f32.gmra.mrb[46].mxu1 %vm240_vm1, %v9179_v22 }
 0xa60   :  { %v9193_v23 = vpop.f32.mrb[54].mxu1 }
 0xa61   :  { %v5135_v35 = vpop.f32.mrb[55].mxu1 }
 0xa6d   :  { %v9207_v40 = vpop.f32.mrb[56].mxu1 }
 0xa6e   :  { %v5309_v10 = vpop.f32.mrb[57].mxu1 }
 0xa6f   :  { %v9186_v29 = vpop.f32.mrb[72].mxu0 }
 0xa70   :  { %v5048_v28 = vpop.f32.mrb[73].mxu0 }
 0xa71   :  { %9226 = vmatprep.mubr.msk.f32.mxu1 %vm240_vm1, %v5048_v28 }
 0xa72   :  { %9227 = vmatmul.mubr.msk.f32.gmra.mrb[48].mxu1 %vm240_vm1, %v9186_v29 }
 0xa73   :  { %v9200_v51 = vpop.f32.mrb[74].mxu0  ;;  %9229 = vmatprep.mubr.msk.f32.mxu1 %vm240_vm1, %v5135_v35 }
 0xa74   :  { %v5222_v7 = vpop.f32.mrb[75].mxu0 }
 0xa76   :  { %9230 = vmatmul.mubr.msk.f32.gmra.mrb[34].mxu1 %vm240_vm1, %v9193_v23 }
 0xa77   :  { %9232 = vmatprep.mubr.msk.f32.mxu1 %vm240_vm1, %v5222_v7 }
 0xa7a   :  { %9233 = vmatmul.mubr.msk.f32.gmra.mrb[36].mxu1 %vm240_vm1, %v9200_v51 }
 0xa7b   :  { %9235 = vmatprep.mubr.msk.f32.mxu1 %vm240_vm1, %v5309_v10 }
 0xa7e   :  { %9236 = vmatmul.mubr.msk.f32.gmra.mrb[38].mxu1 %vm240_vm1, %v9207_v40 }
 0xa9f   :  { %v9214_v50 = vpop.f32.mrb[76].mxu0 }
 0xaa0   :  { %v5396_v62 = vpop.f32.mrb[77].mxu0 }
 0xaa1   :  { %9238 = vmatprep.mubr.msk.f32.mxu1 %vm240_vm1, %v5396_v62 }
 0xaa2   :  { %9239 = vmatmul.mubr.msk.f32.gmra.mrb[40].mxu1 %vm240_vm1, %v9214_v50 }
 0xaa3   :  { %9273 = vmatprep.mubr.msk.f32.mxu1 %vm240_vm1, %v11650_v49 }
 0xaa6   :  { %9274 = vmatmul.mubr.msk.f32.vlgmr.msra.gmra.mrb[58].mxu1 %vm240_vm1, %v5981_v61 }
 0xaa7   :  { %9664 = vmatpush3.bf16.xpose.msk.msra.mxu1 %vm10572_vm2, %v9659_v38  ;;  %9287 = vmatprep.mubr.msk.f32.mxu1 %vm240_vm1, %v6161_v54 }
 0xaaa   :  { %v9247_v19 = vpop.f32.mrb[78].mxu0 }
 0xaab   :  { %v5696_v56 = vpop.f32.mrb[79].mxu0  ;;  %v6345_v42 = vsel %vm36_vm0, %v9247_v19, -inf }
 0xaac   :  { %6346 = vmax.xlane.f32.xlu1 %v6345_v42  ;;  %v6342_v25 = vsel %vm36_vm0, %v5696_v56, -inf }
 0xaad   :  { %6343 = vmax.xlane.f32.xlu0 %v6342_v25 }
 0xaae   :  { %9288 = vmatmul.mubr.msk.f32.vlgmr.msra.gmra.mrb[60].mxu1 %vm240_vm1, %v6163_v18 }
 0xab2   :  { %v9254_v20 = vpop.f32.mrb[80].mxu0 }
 0xab3   :  { %v5787_v63 = vpop.f32.mrb[81].mxu0  ;;  %v6351_v43 = vsel %vm36_vm0, %v9254_v20, -inf }
 0xab4   :  { %6352 = vmax.xlane.f32.xlu0 %v6351_v43  ;;  %v6348_v46 = vsel %vm36_vm0, %v5787_v63, -inf }
 0xab8   :  { %6349 = vmax.xlane.f32.xlu0 %v6348_v46 }
 0xaba   :  { %v9261_v58 = vpop.f32.mrb[82].mxu0 }
 0xabb   :  { %v5878_v59 = vpop.f32.mrb[83].mxu0  ;;  %v6357_v52 = vsel %vm36_vm0, %v9261_v58, -inf }
 0xabc   :  { %6358 = vmax.xlane.f32.xlu0 %v6357_v52  ;;  %v6354_v41 = vsel %vm36_vm0, %v5878_v59, -inf }
 0xabd   :  { %6355 = vmax.xlane.f32.xlu1 %v6354_v41 }
 0xac2   :  { %v11703_v37 = vpop.f32.mrb[84].mxu0 }
 0xac3   :  { %v5969_v55 = vpop.f32.mrb[85].mxu0  ;;  %v6363_v49 = vsel %vm36_vm0, %v11703_v37, -inf }
 0xac4   :  { %6364 = vmax.xlane.f32.xlu0 %v6363_v49  ;;  %v6360_v13 = vsel %vm36_vm0, %v5969_v55, -inf }
 0xac5   :  { %6361 = vmax.xlane.f32.xlu1 %v6360_v13 }
 0xaca   :  { %v11708_v9 = vpop.f32.mrb[86].mxu0 }
 0xacb   :  { %v6151_v61 = vpop.f32.mrb[87].mxu0  ;;  %v6375_v5 = vsel %vm36_vm0, %v11708_v9, -inf }
 0xacc   :  { %6376 = vmax.xlane.f32.xlu0 %v6375_v5  ;;  %v6372_v3 = vsel %vm36_vm0, %v6151_v61, -inf }
 0xacd   :  { %6373 = vmax.xlane.f32.xlu1 %v6372_v3 }
 0xad2   :  { %v11713_v31 = vpop.f32.mrb[88].mxu0 }
 0xad3   :  { %v11715_v15 = vpop.f32.mrb[89].mxu0  ;;  %v6387_v30 = vsel %vm36_vm0, %v11713_v31, -inf }
 0xad4   :  { %6388 = vmax.xlane.f32.xlu0 %v6387_v30  ;;  %v6384_v16 = vsel %vm36_vm0, %v11715_v15, -inf }
 0xad5   :  { %6385 = vmax.xlane.f32.xlu1 %v6384_v16 }
 0xb39   :  { %v6347_v54 = vpop.xlane.xlu1 %6346 }
 0xb3a   :  { %v6391_v26 = vsub.f32 %v9247_v19, %v6347_v54  ;;  %v6344_v57 = vpop.xlane.xlu0 %6343 }
 0xb3b   :  { %v6390_v18 = vsub.f32 %v5696_v56, %v6344_v57 }
 0xb3c   :  { %v6408_v60 = vmul.f32 1.442695, %v6391_v26 }
 0xb3d   :  { %v6406_v12 = vmul.f32 1.442695, %v6390_v18 }
 0xb3e   :  { %10280 = vpow2.f32 %v6408_v60 }
 0xb3f   :  { %10282 = vpow2.f32 %v6406_v12 }
 0xb41   :  { %v6353_v34 = vpop.xlane.xlu0 %6352 }
 0xb42   :  { %v6393_v32 = vsub.f32 %v9254_v20, %v6353_v34 }
 0xb44   :  { %v6412_v14 = vmul.f32 1.442695, %v6393_v32 }
 0xb45   :  { %v6350_v38 = vpop.xlane.xlu0 %6349 }
 0xb46   :  { %10284 = vpow2.f32 %v6412_v14  ;;  %v6392_v8 = vsub.f32 %v5787_v63, %v6350_v38 }
 0xb48   :  { %v11721_v11 = vpop.eup %10280  ;;  %v6410_v22 = vmul.f32 1.442695, %v6392_v8 }
 0xb49   :  { %v11723_v4 = vpop.eup %10282  ;;  %v6359_v23 = vpop.xlane.xlu0 %6358  ;;  %v6441_v35 = vsel %vm36_vm0, %v11721_v11, 0.0 }
 0xb4a   :  { %10286 = vpow2.f32 %v6410_v22  ;;  %v6395_v40 = vsub.f32 %v9261_v58, %v6359_v23  ;;  %v6356_v10 = vpop.xlane.xlu1 %6355  ;;  %6442 = vadd.xlane.f32.xlu0 %v6441_v35  ;;  %v6438_v29 = vsel %vm36_vm0, %v11723_v4, 0.0 }
 0xb4b   :  { %v6394_v28 = vsub.f32 %v5878_v59, %v6356_v10  ;;  %6439 = vadd.xlane.f32.xlu1 %v6438_v29 }
 0xb4c   :  { %v6416_v51 = vmul.f32 1.442695, %v6395_v40 }
 0xb4d   :  { %v6414_v7 = vmul.f32 1.442695, %v6394_v28 }
 0xb4e   :  { %10288 = vpow2.f32 %v6416_v51 }
 0xb4f   :  { %10290 = vpow2.f32 %v6414_v7 }
 0xb50   :  { %v11729_v50 = vpop.eup %10284 }
 0xb51   :  { %v6447_v62 = vsel %vm36_vm0, %v11729_v50, 0.0  ;;  %v6365_v13 = vpop.xlane.xlu0 %6364 }
 0xb52   :  { %v6362_v19 = vpop.xlane.xlu1 %6361  ;;  %6448 = vadd.xlane.f32.xlu0 %v6447_v62  ;;  %v6397_v3 = vsub.f32 %v11703_v37, %v6365_v13 }
 0xb53   :  { %v6396_v56 = vsub.f32 %v5969_v55, %v6362_v19 }
 0xb54   :  { %v11733_v42 = vpop.eup %10286  ;;  %v6420_v16 = vmul.f32 1.442695, %v6397_v3 }
 0xb55   :  { %v6418_v25 = vmul.f32 1.442695, %v6396_v56  ;;  %v6444_v20 = vsel %vm36_vm0, %v11733_v42, 0.0 }
 0xb56   :  { %6445 = vadd.xlane.f32.xlu1 %v6444_v20 }
 0xb57   :  { %10292 = vpow2.f32 %v6418_v25 }
 0xb58   :  { %v11737_v63 = vpop.eup %10288 }
 0xb59   :  { %v11739_v43 = vpop.eup %10290  ;;  %v6453_v46 = vsel %vm36_vm0, %v11737_v63, 0.0 }
 0xb5a   :  { %v6374_v58 = vpop.xlane.xlu1 %6373  ;;  %6454 = vadd.xlane.f32.xlu0 %v6453_v46  ;;  %v6450_v59 = vsel %vm36_vm0, %v11739_v43, 0.0 }
 0xb5b   :  { %v6400_v52 = vsub.f32 %v6151_v61, %v6374_v58  ;;  %6451 = vadd.xlane.f32.xlu1 %v6450_v59  ;;  %v6377_v61 = vpop.xlane.xlu0 %6376 }
 0xb5c   :  { %v6401_v54 = vsub.f32 %v11708_v9, %v6377_v61 }
 0xb5d   :  { %v6426_v41 = vmul.f32 1.442695, %v6400_v52 }
 0xb5e   :  { %v6428_v26 = vmul.f32 1.442695, %v6401_v54 }
 0xb5f   :  { %10294 = vpow2.f32 %v6426_v41 }
 0xb60   :  { %10296 = vpow2.f32 %v6420_v16 }
 0xb61   :  { %v11745_v55 = vpop.eup %10292  ;;  %10298 = vpow2.f32 %v6428_v26  ;;  %v6389_v35 = vpop.xlane.xlu0 %6388 }
 0xb62   :  { %v6456_v49 = vsel %vm36_vm0, %v11745_v55, 0.0  ;;  %v6386_v23 = vpop.xlane.xlu1 %6385  ;;  %v6405_v10 = vsub.f32 %v11713_v31, %v6389_v35 }
 0xb63   :  { %6457 = vadd.xlane.f32.xlu1 %v6456_v49  ;;  %v6404_v40 = vsub.f32 %v11715_v15, %v6386_v23 }
 0xb64   :  { %v6436_v28 = vmul.f32 1.442695, %v6405_v10 }
 0xb65   :  { %v6434_v29 = vmul.f32 1.442695, %v6404_v40 }
 0xb67   :  { %10300 = vpow2.f32 %v6434_v29 }
 0xb68   :  { %10302 = vpow2.f32 %v6436_v28 }
 0xb69   :  { %v11749_v5 = vpop.eup %10294 }
 0xb6a   :  { %v6468_v30 = vsel %vm36_vm0, %v11749_v5, 0.0  ;;  %v11756_v12 = vpop.eup %10296 }
 0xb6b   :  { %6469 = vadd.xlane.f32.xlu1 %v6468_v30  ;;  %v6459_v34 = vsel %vm36_vm0, %v11756_v12, 0.0  ;;  %v11762_v38 = vpop.eup %10298 }
 0xb6c   :  { %v6471_v22 = vsel %vm36_vm0, %v11762_v38, 0.0 }
 0xb71   :  { %v11773_v51 = vpop.eup %10300 }
 0xb72   :  { %v11775_v7 = vpop.eup %10302 }
 0xb79   :  { %v9275_v57 = vpop.f32.mrb[58].mxu1 }
 0xb7a   :  { %v6060_v18 = vpop.f32.mrb[59].mxu1  ;;  %v6369_v60 = vsel %vm36_vm0, %v9275_v57, -inf }
 0xb7b   :  { %6370 = vmax.xlane.f32.xlu0 %v6369_v60  ;;  %v6366_v37 = vsel %vm36_vm0, %v6060_v18, -inf }
 0xb7c   :  { %6367 = vmax.xlane.f32.xlu1 %v6366_v37 }
 0xb7f   :  { %6460 = vadd.xlane.f32.xlu0 %v6459_v34 }
 0xb81   :  { %v9289_v32 = vpop.f32.mrb[60].mxu1 }
 0xb82   :  { %v6242_v14 = vpop.f32.mrb[61].mxu1  ;;  %v6381_v9 = vsel %vm36_vm0, %v9289_v32, -inf }
 0xb83   :  { %6382 = vmax.xlane.f32.xlu0 %v6381_v9  ;;  %v6378_v8 = vsel %vm36_vm0, %v6242_v14, -inf }
 0xb84   :  { %6379 = vmax.xlane.f32.xlu1 %v6378_v8 }
 0xb87   :  { %6472 = vadd.xlane.f32.xlu0 %v6471_v22 }
 0xb95   :  { %10049 = vrot.lane.b32.xlu1 %v10486_v21, %s10378_s12  ;;  %v6480_v21 = vsel %vm36_vm0, %v11773_v51, 0.0 }
 0xb9d   :  { %10054 = vrot.lane.b32.xlu0 %v10496_v24, %s10378_s12  ;;  %v6483_v24 = vsel %vm36_vm0, %v11775_v7, 0.0 }
 0xbb9   :  { %6481 = vadd.xlane.f32.xlu1 %v6480_v21 }
 0xbbc   :  { %6484 = vadd.xlane.f32.xlu0 %v6483_v24 }
 0xbca   :  { %10059 = vrot.lane.b32.xlu1 %v10506_v27, %s10378_s12 }
 0xbd7   :  { %v6443_v46 = vpop.xlane.xlu0 %6442 }
 0xbd8   :  { %v6440_v31 = vpop.xlane.xlu1 %6439 }
 0xbd9   :  { %10304 = vrcp.f32 %v6440_v31 }
 0xbdf   :  { %v6449_v58 = vpop.xlane.xlu0 %6448 }
 0xbe3   :  { %v10305_v15 = vpop.eup %10304  ;;  %v6446_v62 = vpop.xlane.xlu1 %6445 }
 0xbe4   :  { %v6502_v19 = vmul.f32 %v10305_v15, %v11723_v4 }
 0xbe6   :  { %9301 = vmatprep.mubr.msk.f32.mxu1 %vm36_vm0, %v6502_v19 }
 0xbe7   :  { %v11787_v52 = vpop.xlane.xlu0 %6454 }
 0xbe8   :  { %v6452_v56 = vpop.xlane.xlu1 %6451 }
 0xbe9   :  { %10306 = vrcp.f32 %v6452_v56 }
 0xbf0   :  { %v6458_v59 = vpop.xlane.xlu1 %6457 }
 0xbf3   :  { %v10307_v25 = vpop.eup %10306 }
 0xbf4   :  { %v6506_v20 = vmul.f32 %v10307_v25, %v11739_v43 }
 0xbf6   :  { %9315 = vmatprep.mubr.msk.f32.mxu0 %vm36_vm0, %v6506_v20 }
 0xbf8   :  { %v11789_v27 = vpop.xlane.xlu1 %6469 }
 0xc08   :  { %v6371_v41 = vpop.xlane.xlu0 %6370 }
 0xc09   :  { %v6399_v49 = vsub.f32 %v9275_v57, %v6371_v41  ;;  %v6368_v13 = vpop.xlane.xlu1 %6367 }
 0xc0a   :  { %v6398_v4 = vsub.f32 %v6060_v18, %v6368_v13 }
 0xc0b   :  { %v6424_v3 = vmul.f32 1.442695, %v6399_v49 }
 0xc0c   :  { %v6422_v30 = vmul.f32 1.442695, %v6398_v4  ;;  %v11791_v16 = vpop.xlane.xlu0 %6460 }
 0xc0d   :  { %10308 = vpow2.f32 %v6424_v3 }
 0xc0e   :  { %10310 = vpow2.f32 %v6422_v30 }
 0xc0f   :  { %10312 = vrcp.f32 %v6443_v46 }
 0xc10   :  { %10314 = vrcp.f32 %v6446_v62  ;;  %v6383_v43 = vpop.xlane.xlu0 %6382 }
 0xc11   :  { %v6403_v61 = vsub.f32 %v9289_v32, %v6383_v43  ;;  %v6380_v54 = vpop.xlane.xlu1 %6379  ;;  %10316 = vrcp.f32 %v6449_v58 }
 0xc12   :  { %v6402_v26 = vsub.f32 %v6242_v14, %v6380_v54  ;;  %10318 = vrcp.f32 %v6458_v59 }
 0xc13   :  { %v6432_v60 = vmul.f32 1.442695, %v6403_v61 }
 0xc14   :  { %v6430_v37 = vmul.f32 1.442695, %v6402_v26  ;;  %v11793_v34 = vpop.xlane.xlu0 %6472 }
 0xc15   :  { %10320 = vpow2.f32 %v6432_v60  ;;  %v10050_v57 = vpop.permute.xlu1 %10049 }
 0xc16   :  { %v10052_v18 = vunpack.i.h.bf16 %v10050_v57  ;;  %v10051_v9 = vunpack.i.l.bf16 %v10050_v57  ;;  %10322 = vpow2.f32 %v6430_v37 }
 0xc17   :  { %v11795_v8 = vpop.eup %10308  ;;  %10324 = vrcp.f32 %v11787_v52 }
 0xc18   :  { %v11797_v22 = vpop.eup %10310  ;;  %v9671_v23 = vpack.c.bf16 %v10052_v18, %v10051_v9  ;;  %v10055_v35 = vpop.permute.xlu0 %10054  ;;  %v6465_v32 = vsel %vm36_vm0, %v11795_v8, 0.0 }
 0xc19   :  { %v10313_v14 = vpop.eup %10312  ;;  %v10057_v40 = vunpack.i.h.bf16 %v10055_v35  ;;  %v10056_v10 = vunpack.i.l.bf16 %v10055_v35  ;;  %6466 = vadd.xlane.f32.xlu0 %v6465_v32  ;;  %v6462_v29 = vsel %vm36_vm0, %v11797_v22, 0.0 }
 0xc1a   :  { %v10315_v28 = vpop.eup %10314  ;;  %9672 = vmatprep.subr.bf16.mxu1 %v9671_v23  ;;  %6463 = vadd.xlane.f32.xlu1 %v6462_v29  ;;  %v6503_v24 = vmul.f32 %v10313_v14, %v11721_v11 }
 0xc1b   :  { %v9675_v21 = vpack.c.bf16 %v10057_v40, %v10056_v10  ;;  %9674 = vmatpush3.bf16.msra.mxu1 %v9671_v23  ;;  %v10317_v31 = vpop.eup %10316  ;;  %v6504_v15 = vmul.f32 %v10315_v28, %v11733_v42 }
 0xc1c   :  { %v10319_v62 = vpop.eup %10318  ;;  %v6505_v56 = vmul.f32 %v10317_v31, %v11729_v50 }
 0xc1d   :  { %9676 = vmatprep.subr.bf16.mxu1 %v9675_v21  ;;  %v6508_v11 = vmul.f32 %v10319_v62, %v11745_v55 }
 0xc1e   :  { %9302 = vmatmul.mubr.msk.f32.vlgmr.msra.gmra.mrb[62].mxu1 %vm36_vm0, %v6503_v24 }
 0xc1f   :  { %v11806_v19 = vpop.eup %10320  ;;  %9678 = vmatpush3.bf16.msra.mxu1 %v9675_v21  ;;  %9308 = vmatprep.mubr.msk.f32.mxu1 %vm36_vm0, %v6504_v15 }
 0xc20   :  { %v6477_v25 = vsel %vm36_vm0, %v11806_v19, 0.0  ;;  %v11812_v20 = vpop.eup %10322 }
 0xc21   :  { %6478 = vadd.xlane.f32.xlu0 %v6477_v25  ;;  %v6474_v42 = vsel %vm36_vm0, %v11812_v20, 0.0 }
 0xc22   :  { %9309 = vmatmul.mubr.msk.f32.vlgmr.msra.gmra.mrb[64].mxu1 %vm36_vm0, %v6505_v56 }
 0xc23   :  { %9322 = vmatprep.mubr.msk.f32.mxu1 %vm36_vm0, %v6508_v11 }
 0xc25   :  { %6475 = vadd.xlane.f32.xlu0 %v6474_v42 }
 0xc2b   :  { %10069 = vrot.lane.b32.xlu1 %v10528_v33, %s10378_s12  ;;  %v10325_v33 = vpop.eup %10324 }
 0xc2f   :  { %10074 = vrot.lane.b32.xlu1 %v10538_v36, %s10378_s12  ;;  %v6507_v36 = vmul.f32 %v10325_v33, %v11737_v63 }
 0xc33   :  { %10079 = vrot.lane.b32.xlu1 %v10548_v39, %s10378_s12 }
 0xc37   :  { %10084 = vrot.lane.b32.xlu1 %v12488_v45, %s10378_s12 }
 0xc3b   :  { %10064 = vrot.lane.b32.xlu0 %v12481_v6, %s10378_s12 }
 0xc46   :  { %v6482_v50 = vpop.xlane.xlu1 %6481 }
 0xc49   :  { %v6485_v39 = vpop.xlane.xlu0 %6484 }
 0xc4a   :  { %v10060_v55 = vpop.permute.xlu1 %10059 }
 0xc4b   :  { %v10062_v46 = vunpack.i.h.bf16 %v10060_v55  ;;  %v10061_v58 = vunpack.i.l.bf16 %v10060_v55 }
 0xc4d   :  { %v9679_v59 = vpack.c.bf16 %v10062_v46, %v10061_v58 }
 0xc4f   :  { %9680 = vmatprep.subr.bf16.mxu0 %v9679_v59 }
 0xc50   :  { %9682 = vmatpush3.bf16.msra.mxu0 %v9679_v59 }
 0xc53   :  { %9316 = vmatmul.mubr.msk.f32.vlgmr.msra.gmra.mrb[90].mxu0 %vm36_vm0, %v6507_v36 }
 0xca6   :  { %v6467_v41 = vpop.xlane.xlu0 %6466 }
 0xca7   :  { %10326 = vrcp.f32 %v6467_v41  ;;  %v6464_v45 = vpop.xlane.xlu1 %6463 }
 0xca8   :  { %10328 = vrcp.f32 %v6464_v45 }
 0xca9   :  { %10330 = vrcp.f32 %v11791_v16 }
 0xcaa   :  { %10332 = vrcp.f32 %v11789_v27 }
 0xcab   :  { %v10070_v6 = vpop.permute.xlu1 %10069 }
 0xcac   :  { %v10072_v49 = vunpack.i.h.bf16 %v10070_v6  ;;  %v10071_v52 = vunpack.i.l.bf16 %v10070_v6 }
 0xcae   :  { %v9687_v13 = vpack.c.bf16 %v10072_v49, %v10071_v52  ;;  %v6479_v4 = vpop.xlane.xlu0 %6478  ;;  %v7478_v49 = vlaneseq }
 0xcaf   :  { %v10075_v3 = vpop.permute.xlu1 %10074  ;;  %10334 = vrcp.f32 %v6479_v4  ;;  %v11875_v4 = vld [vmem:[%s12431_s3] ss:$0 sm:$0xff]  ;;  %s10379_s3 = smov 32  }
 0xcb0   :  { %9688 = vmatprep.subr.bf16.mxu0 %v9687_v13  ;;  %v10077_v27 = vunpack.i.h.bf16 %v10075_v3  ;;  %v10076_v18 = vunpack.i.l.bf16 %v10075_v3  ;;  %v7479_v52 = vshrl.u32 %v7478_v49, 7 }
 0xcb1   :  { %v10327_v30 = vpop.eup %10326  ;;  %9690 = vmatpush3.bf16.msra.mxu0 %v9687_v13 }
 0xcb2   :  { %v10329_v63 = vpop.eup %10328  ;;  %v6476_v43 = vpop.xlane.xlu0 %6475  ;;  %v6511_v26 = vmul.f32 %v10327_v30, %v11795_v8  ;;  %v9691_v32 = vpack.c.bf16 %v10077_v27, %v10076_v18 }
 0xcb3   :  { %10336 = vrcp.f32 %v6476_v43  ;;  %v10080_v61 = vpop.permute.xlu1 %10079  ;;  %v6510_v54 = vmul.f32 %v10329_v63, %v11797_v22  ;;  %v11878_v63 = vsub.s32 0, %v7479_v52  ;;  %v11880_v43 = vsub.s32 1, %v7479_v52 }
 0xcb4   :  { %10338 = vrcp.f32 %v11793_v34  ;;  %v10082_v60 = vunpack.i.h.bf16 %v10080_v61  ;;  %v10081_v37 = vunpack.i.l.bf16 %v10080_v61  ;;  %v10331_v34 = vpop.eup %10330  ;;  %v11882_v61 = vsub.s32 2, %v7479_v52 }
 0xcb5   :  { %10340 = vrcp.f32 %v6482_v50  ;;  %9329 = vmatprep.mubr.msk.f32.mxu0 %vm36_vm0, %v6510_v54  ;;  %v10333_v8 = vpop.eup %10332  ;;  %v6509_v28 = vmul.f32 %v10331_v34, %v11756_v12 }
 0xcb6   :  { %v9695_v16 = vpack.c.bf16 %v10082_v60, %v10081_v37  ;;  %v10065_v57 = vpop.permute.xlu0 %10064  ;;  %9330 = vmatmul.mubr.msk.f32.vlgmr.msra.gmra.mrb[92].mxu0 %vm36_vm0, %v6511_v26  ;;  %10342 = vrcp.f32 %v6485_v39  ;;  %v6512_v24 = vmul.f32 %v10333_v8, %v11749_v5  ;;  %v11888_v60 = vsub.s32 3, %v7479_v52 }
 0xcb7   :  { %v10067_v9 = vunpack.i.h.bf16 %v10065_v57  ;;  %v10066_v23 = vunpack.i.l.bf16 %v10065_v57  ;;  %v10085_v35 = vpop.permute.xlu1 %10084 }
 0xcb8   :  { %9696 = vmatprep.subr.bf16.mxu0 %v9695_v16  ;;  %v10087_v14 = vunpack.i.h.bf16 %v10085_v35  ;;  %v10086_v40 = vunpack.i.l.bf16 %v10085_v35 }
 0xcb9   :  { %v9683_v22 = vpack.c.bf16 %v10067_v9, %v10066_v23  ;;  %9698 = vmatpush3.bf16.msra.mxu0 %v9695_v16  ;;  %v10335_v10 = vpop.eup %10334 }
 0xcba   :  { %v9699_v62 = vpack.c.bf16 %v10087_v14, %v10086_v40  ;;  %v6515_v56 = vmul.f32 %v10335_v10, %v11806_v19 }
 0xcbb   :  { %9684 = vmatprep.subr.bf16.mxu1 %v9683_v22 }
 0xcbc   :  { %9686 = vmatpush3.bf16.msra.mxu1 %v9683_v22 }
 0xcbd   :  { %v10337_v29 = vpop.eup %10336  ;;  %9692 = vmatprep.subr.bf16.mxu1 %v9691_v32 }
 0xcbe   :  { %v10339_v21 = vpop.eup %10338  ;;  %v6514_v31 = vmul.f32 %v10337_v29, %v11812_v20  ;;  %v233_v20 = vld [vmem:[%s12430_s2 + $0x18] sm:$0xff] }
 0xcbf   :  { %v10341_v15 = vpop.eup %10340  ;;  %9323 = vmatmul.mubr.msk.f32.vlgmr.msra.gmra.mrb[66].mxu1 %vm36_vm0, %v6509_v28  ;;  %v6513_v25 = vmul.f32 %v10339_v21, %v11762_v38 }
 0xcc0   :  { %9694 = vmatpush3.bf16.msra.mxu1 %v9691_v32  ;;  %9336 = vmatprep.mubr.msk.f32.mxu1 %vm36_vm0, %v6512_v24  ;;  %v10343_v12 = vpop.eup %10342  ;;  %v6516_v5 = vmul.f32 %v10341_v15, %v11773_v51 }
 0xcc1   :  { %9343 = vmatprep.mubr.msk.f32.mxu0 %vm36_vm0, %v6514_v31  ;;  %9700 = vmatprep.subr.bf16.mxu1 %v9699_v62  ;;  %v6517_v19 = vmul.f32 %v10343_v12, %v11775_v7 }
 0xcc2   :  { %9344 = vmatmul.mubr.msk.f32.vlgmr.msra.gmra.mrb[94].mxu0 %vm36_vm0, %v6515_v56 }
 0xcc3   :  { %9337 = vmatmul.mubr.msk.f32.vlgmr.msra.gmra.mrb[68].mxu1 %vm36_vm0, %v6513_v25 }
 0xcc4   :  { %9702 = vmatpush3.bf16.msra.mxu1 %v9699_v62  ;;  %9350 = vmatprep.mubr.msk.f32.mxu1 %vm36_vm0, %v6516_v5 }
 0xcc5   :  { %9353 = vmatprep.subr.mxu1 %v233_v20 }
 0xcc7   :  { %9351 = vmatmul.mubr.msk.f32.vlgmr.msra.gmra.mrb[70].mxu1 %vm36_vm0, %v6517_v19 }
 0xcc8   :  { %9354 = vmatpush3.msra.mxu1 %v233_v20 }
 0xcf1   :  { %v9303_v38 = vpop.f32.mrb[62].mxu1 }
 0xcf2   :  { %v6596_v11 = vpop.f32.mrb[63].mxu1 }
 0xcf3   :  { %9355 = vmatprep.mubr.msk.f32.mxu1 %vm240_vm1, %v6596_v11 }
 0xcf4   :  { %9356 = vmatmul.mubr.msk.f32.vlgmr.msra.gmra.mrb[42].mxu1 %vm240_vm1, %v9303_v38 }
 0xcf5   :  { %v9310_v51 = vpop.f32.mrb[64].mxu1 }
 0xcf6   :  { %v6683_v42 = vpop.f32.mrb[65].mxu1 }
 0xcf7   :  { %9358 = vmatprep.mubr.msk.f32.mxu1 %vm240_vm1, %v6683_v42 }
 0xcf8   :  { %9359 = vmatmul.mubr.msk.f32.gmra.mrb[44].mxu1 %vm240_vm1, %v9310_v51 }
 0xd26   :  { %v9317_v50 = vpop.f32.mrb[90].mxu0 }
 0xd27   :  { %v6770_v55 = vpop.f32.mrb[91].mxu0 }
 0xd28   :  { %9361 = vmatprep.mubr.msk.f32.mxu1 %vm240_vm1, %v6770_v55 }
 0xd29   :  { %9362 = vmatmul.mubr.msk.f32.gmra.mrb[46].mxu1 %vm240_vm1, %v9317_v50 }
 0xd89   :  { %v9331_v7 = vpop.f32.mrb[92].mxu0 }
 0xd8a   :  { %v6944_v46 = vpop.f32.mrb[93].mxu0 }
 0xd92   :  { %v9324_v58 = vpop.f32.mrb[66].mxu1 }
 0xd93   :  { %v6857_v59 = vpop.f32.mrb[67].mxu1 }
 0xd94   :  { %9364 = vmatprep.mubr.msk.f32.mxu1 %vm240_vm1, %v6857_v59 }
 0xd95   :  { %v9345_v33 = vpop.f32.mrb[94].mxu0  ;;  %9365 = vmatmul.mubr.msk.f32.gmra.mrb[48].mxu1 %vm240_vm1, %v9324_v58 }
 0xd96   :  { %v7118_v36 = vpop.f32.mrb[95].mxu0  ;;  %v9338_v39 = vpop.f32.mrb[68].mxu1  ;;  %9367 = vmatprep.mubr.msk.f32.mxu1 %vm240_vm1, %v6944_v46 }
 0xd97   :  { %v7031_v41 = vpop.f32.mrb[69].mxu1 }
 0xd99   :  { %9368 = vmatmul.mubr.msk.f32.gmra.mrb[34].mxu1 %vm240_vm1, %v9331_v7 }
 0xd9a   :  { %v9352_v45 = vpop.f32.mrb[70].mxu1  ;;  %9370 = vmatprep.mubr.msk.f32.mxu1 %vm240_vm1, %v7031_v41 }
 0xd9b   :  { %v7205_v6 = vpop.f32.mrb[71].mxu1 }
 0xd9d   :  { %9371 = vmatmul.mubr.msk.f32.gmra.mrb[36].mxu1 %vm240_vm1, %v9338_v39 }
 0xd9e   :  { %9373 = vmatprep.mubr.msk.f32.mxu1 %vm240_vm1, %v7118_v36 }
 0xda1   :  { %9374 = vmatmul.mubr.msk.f32.gmra.mrb[38].mxu1 %vm240_vm1, %v9345_v33 }
 0xda2   :  { %9376 = vmatprep.mubr.msk.f32.mxu1 %vm240_vm1, %v7205_v6 }
 0xda5   :  { %9377 = vmatmul.mubr.msk.f32.gmra.mrb[40].mxu1 %vm240_vm1, %v9352_v45 }
 0xdc7   :  { %v9357_v13 = vpop.f32.mrb[42].mxu1 }
 0xdc8   :  { %v9705_v3 = vadd.f32 %v9357_v13, %v11311_v53  ;;  %v7328_v30 = vpop.f32.mrb[43].mxu1 }
 0xdc9   :  { %v9706_v54 = vadd.f32 %v7328_v30, %v11314_v0 }
 0xdca   :  { %v11886_v26 = vadd.f32 %v9705_v3, %v11875_v4 }
 0xdcb   :  { %v11891_v37 = vadd.f32 %v9706_v54, %v11875_v4  ;;  %v9360_v16 = vpop.f32.mrb[44].mxu1 }
 0xdcc   :  { %v11895_v53 = vcombine.high %v11886_v26, %v11886_v26  ;;  %v7338_v57 = vpop.f32.mrb[45].mxu1  ;;  %v7489_v0 = vrot.slane %v11886_v26, %v11878_v63  ;;  %v7656_v27 = vrot.slane %v11886_v26, %v11880_v43  ;;  %v7824_v18 = vrot.slane %v11886_v26, %v11882_v61 }
 0xdcd   :  { %v7462_v9 = vcombine.high %v11891_v37, %v11891_v37  ;;  %v7992_v23 = vrot.slane %v11886_v26, %v11888_v60  ;;  %v7481_v35 = vrot.slane %v11891_v37, %v11878_v63  ;;  %v9707_v22 = vadd.f32 %v9360_v16, %v11318_v47 }
 0xdce   :  { %v9708_v34 = vadd.f32 %v7338_v57, %v11320_v44  ;;  %v7648_v8 = vrot.slane %v11891_v37, %v11880_v43  ;;  %v7816_v32 = vrot.slane %v11891_v37, %v11882_v61  ;;  %v7984_v10 = vrot.slane %v11891_v37, %v11888_v60 }
 0xdcf   :  { %v7652_v14 = vrot.slane %v7462_v9, %v11880_v43  ;;  %v7820_v40 = vrot.slane %v7462_v9, %v11882_v61  ;;  %v7433_v29 = vadd.f32 %v9707_v22, %v11875_v4  ;;  %v7660_v47 = vrot.slane %v11895_v53, %v11880_v43 }
 0xdd0   :  { %v7432_v28 = vadd.f32 %v9708_v34, %v11875_v4  ;;  %v7828_v21 = vrot.slane %v11895_v53, %v11882_v61  ;;  %v7988_v24 = vrot.slane %v7462_v9, %v11888_v60  ;;  %v7996_v31 = vrot.slane %v11895_v53, %v11888_v60 }
 0xdd1   :  { %v7773_v44 = vsel %vm7606_vm3, %v7652_v14, %v7648_v8  ;;  %v7465_v15 = vcombine.high %v7433_v29, %v7433_v29  ;;  %v7941_v25 = vsel %vm7606_vm3, %v7820_v40, %v7816_v32  ;;  %v7485_v20 = vrot.slane %v7462_v9, %v11878_v63 }
 0xdd2   :  { %v7464_v62 = vcombine.high %v7432_v28, %v7432_v28  ;;  %v7664_v56 = vrot.slane %v7432_v28, %v11880_v43  ;;  %v7774_v12 = vsel %vm7608_vm4, %v7656_v27, %v7773_v44  ;;  %v7832_v5 = vrot.slane %v7432_v28, %v11882_v61 }
 0xdd3   :  { %v7493_v19 = vrot.slane %v11895_v53, %v11878_v63  ;;  %v7497_v38 = vrot.slane %v7432_v28, %v11878_v63  ;;  %v7775_v51 = vsel %vm7610_vm5, %v7660_v47, %v7774_v12  ;;  %v7672_v50 = vrot.slane %v7433_v29, %v11880_v43 }
 0xdd4   :  { %v7668_v11 = vrot.slane %v7464_v62, %v11880_v43  ;;  %v7836_v42 = vrot.slane %v7464_v62, %v11882_v61  ;;  %v7776_v55 = vsel %vm7612_vm6, %v7664_v56, %v7775_v51  ;;  %v7840_v7 = vrot.slane %v7433_v29, %v11882_v61 }
 0xdd5   :  { %v7942_v46 = vsel %vm7608_vm4, %v7824_v18, %v7941_v25  ;;  %v7676_v58 = vrot.slane %v7465_v15, %v11880_v43  ;;  %v8000_v36 = vrot.slane %v7432_v28, %v11888_v60  ;;  %v8004_v45 = vrot.slane %v7464_v62, %v11888_v60 }
 0xdd6   :  { %v7777_v59 = vsel %vm7614_vm7, %v7668_v11, %v7776_v55  ;;  %v7943_v33 = vsel %vm7610_vm5, %v7828_v21, %v7942_v46  ;;  %v8109_v6 = vsel %vm7606_vm3, %v7988_v24, %v7984_v10  ;;  %v7844_v52 = vrot.slane %v7465_v15, %v11882_v61 }
 0xdd7   :  { %v7778_v39 = vsel %vm7616_vm8, %v7672_v50, %v7777_v59  ;;  %v7944_v41 = vsel %vm7612_vm6, %v7832_v5, %v7943_v33  ;;  %v8110_v3 = vsel %vm7608_vm4, %v7992_v23, %v8109_v6  ;;  %v8008_v54 = vrot.slane %v7433_v29, %v11888_v60 }
 0xdd8   :  { %v7779_v49 = vsel %vm7618_vm9, %v7676_v58, %v7778_v39  ;;  %v7945_v13 = vsel %vm7614_vm7, %v7836_v42, %v7944_v41  ;;  %v8111_v26 = vsel %vm7610_vm5, %v7996_v31, %v8110_v3  ;;  %v7607_v37 = vsel %vm7606_vm3, %v7485_v20, %v7481_v35 }
 0xdd9   :  { %7801 = vrot.lane.b32.xlu0 %v7779_v49, %s10379_s3  ;;  %v7946_v30 = vsel %vm7616_vm8, %v7840_v7, %v7945_v13  ;;  %v8112_v53 = vsel %vm7612_vm6, %v8000_v36, %v8111_v26  ;;  %v7609_v57 = vsel %vm7608_vm4, %v7489_v0, %v7607_v37  ;;  %v7501_v27 = vrot.slane %v7464_v62, %v11878_v63 }
 0xdda   :  { %v7947_v16 = vsel %vm7618_vm9, %v7844_v52, %v7946_v30  ;;  %v8012_v18 = vrot.slane %v7465_v15, %v11888_v60  ;;  %v8113_v9 = vsel %vm7614_vm7, %v8004_v45, %v8112_v53  ;;  %v7611_v23 = vsel %vm7610_vm5, %v7493_v19, %v7609_v57 }
 0xddb   :  { %v8114_v22 = vsel %vm7616_vm8, %v8008_v54, %v8113_v9  ;;  %v7505_v34 = vrot.slane %v7433_v29, %v11878_v63  ;;  %v7613_v35 = vsel %vm7612_vm6, %v7497_v38, %v7611_v23  ;;  %v7509_v0 = vrot.slane %v7465_v15, %v11878_v63 }
 0xddc   :  { %v8115_v8 = vsel %vm7618_vm9, %v8012_v18, %v8114_v22  ;;  %v7615_v32 = vsel %vm7614_vm7, %v7501_v27, %v7613_v35 }
 0xddd   :  { %7969 = vrot.lane.b32.xlu0 %v7947_v16, %s10369_s0  ;;  %v7617_v14 = vsel %vm7616_vm8, %v7505_v34, %v7615_v32 }
 0xdde   :  { %v7619_v40 = vsel %vm7618_vm9, %v7509_v0, %v7617_v14 }
 0xde1   :  { %8137 = vrot.lane.b32.xlu0 %v8115_v8, %s10368_s24 }
 0xdfc   :  { %v9363_v10 = vpop.f32.mrb[46].mxu1 }
 0xdfd   :  { %v9709_v28 = vadd.f32 %v9363_v10, %v11322_v1  ;;  %v7348_v29 = vpop.f32.mrb[47].mxu1 }
 0xdfe   :  { %v9710_v47 = vadd.f32 %v7348_v29, %v11324_v48 }
 0xdff   :  { %v7435_v44 = vadd.f32 %v9709_v28, %v11875_v4 }
 0xe00   :  { %v7434_v21 = vadd.f32 %v9710_v47, %v11875_v4 }
 0xe01   :  { %v7467_v24 = vcombine.high %v7435_v44, %v7435_v44  ;;  %v7521_v31 = vrot.slane %v7435_v44, %v11878_v63  ;;  %v7688_v15 = vrot.slane %v7435_v44, %v11880_v43  ;;  %v7856_v62 = vrot.slane %v7435_v44, %v11882_v61 }
 0xe02   :  { %v7466_v56 = vcombine.high %v7434_v21, %v7434_v21  ;;  %v8024_v25 = vrot.slane %v7435_v44, %v11888_v60  ;;  %v7513_v12 = vrot.slane %v7434_v21, %v11878_v63  ;;  %v7680_v1 = vrot.slane %v7434_v21, %v11880_v43 }
 0xe03   :  { %v7848_v48 = vrot.slane %v7434_v21, %v11882_v61  ;;  %v8016_v5 = vrot.slane %v7434_v21, %v11888_v60  ;;  %v7692_v11 = vrot.slane %v7467_v24, %v11880_v43  ;;  %v7860_v51 = vrot.slane %v7467_v24, %v11882_v61 }
 0xe04   :  { %v7684_v20 = vrot.slane %v7466_v56, %v11880_v43  ;;  %v7852_v19 = vrot.slane %v7466_v56, %v11882_v61  ;;  %v8020_v38 = vrot.slane %v7466_v56, %v11888_v60  ;;  %v8028_v42 = vrot.slane %v7467_v24, %v11888_v60 }
 0xe05   :  { %v7517_v50 = vrot.slane %v7466_v56, %v11878_v63  ;;  %v7525_v58 = vrot.slane %v7467_v24, %v11878_v63 }
 0xe06   :  { %v7780_v55 = vsel %vm7606_vm3, %v7684_v20, %v7680_v1  ;;  %v7948_v7 = vsel %vm7606_vm3, %v7852_v19, %v7848_v48  ;;  %v8116_v46 = vsel %vm7606_vm3, %v8020_v38, %v8016_v5 }
 0xe07   :  { %v7781_v59 = vsel %vm7608_vm4, %v7688_v15, %v7780_v55  ;;  %v7949_v33 = vsel %vm7608_vm4, %v7856_v62, %v7948_v7  ;;  %v8117_v36 = vsel %vm7608_vm4, %v8024_v25, %v8116_v46  ;;  %v7620_v39 = vsel %vm7606_vm3, %v7517_v50, %v7513_v12 }
 0xe08   :  { %v7782_v41 = vsel %vm7610_vm5, %v7692_v11, %v7781_v59  ;;  %v12007_v45 = vsel %vm7610_vm5, %v7860_v51, %v7949_v33  ;;  %v12010_v6 = vsel %vm7610_vm5, %v8028_v42, %v8117_v36  ;;  %v7621_v49 = vsel %vm7608_vm4, %v7521_v31, %v7620_v39 }
 0xe09   :  { %v12014_v52 = vsel %vm7610_vm5, %v7525_v58, %v7621_v49 }
 0xe4b   :  { %v7802_v13 = vpop.permute.xlu0 %7801 }
 0xe4c   :  { %v8150_v30 = vsel %vm8149_vm10, %v7619_v40, %v7802_v13 }
 0xe4f   :  { %v7970_v3 = vpop.permute.xlu0 %7969 }
 0xe50   :  { %v8155_v54 = vsel %vm8154_vm11, %v8150_v30, %v7970_v3 }
 0xe53   :  { %v8138_v26 = vpop.permute.xlu0 %8137 }
 0xe54   :  { %v8160_v37 = vsel %vm8159_vm12, %v8155_v54, %v8138_v26 }
 0xe55   :  { %8164 = vst [vmem:[#allocation2] sm:$0xff] %v8160_v37 }
 0xe68   :  { %v9366_v16 = vpop.f32.mrb[48].mxu1 }
 0xe69   :  { %v9711_v53 = vadd.f32 %v9366_v16, %v11326_v2  ;;  %v7358_v57 = vpop.f32.mrb[49].mxu1 }
 0xe6a   :  { %v9712_v27 = vadd.f32 %v7358_v57, %v11328_v17 }
 0xe6b   :  { %v12022_v18 = vadd.f32 %v9711_v53, %v11875_v4 }
 0xe6c   :  { %v12025_v9 = vadd.f32 %v9712_v27, %v11875_v4  ;;  %v9369_v23 = vpop.f32.mrb[34].mxu1 }
 0xe6d   :  { %v12028_v22 = vadd.f32 %v9369_v23, %v11875_v4  ;;  %v7368_v34 = vpop.f32.mrb[35].mxu1  ;;  %v12032_v35 = vcombine.high %v12022_v18, %v12022_v18  ;;  %v7704_v8 = vrot.slane %v12022_v18, %v11880_v43  ;;  %v7872_v40 = vrot.slane %v12022_v18, %v11882_v61 }
 0xe6e   :  { %v12036_v2 = vcombine.high %v12025_v9, %v12025_v9  ;;  %v12039_v17 = vadd.f32 %v11875_v4, %v7368_v34  ;;  %v7529_v0 = vrot.slane %v12025_v9, %v11878_v63  ;;  %v7696_v14 = vrot.slane %v12025_v9, %v11880_v43 }
 0xe6f   :  { %v12047_v32 = vcombine.high %v12028_v22, %v12028_v22  ;;  %v7720_v28 = vrot.slane %v12028_v22, %v11880_v43  ;;  %v7888_v29 = vrot.slane %v12028_v22, %v11882_v61  ;;  %v8056_v21 = vrot.slane %v12028_v22, %v11888_v60 }
 0xe70   :  { %v12061_v47 = vcombine.high %v12039_v17, %v12039_v17  ;;  %v9372_v44 = vpop.f32.mrb[36].mxu1  ;;  %v7545_v24 = vrot.slane %v12039_v17, %v11878_v63  ;;  %v7700_v62 = vrot.slane %v12036_v2, %v11880_v43  ;;  %v7712_v25 = vrot.slane %v12039_v17, %v11880_v43 }
 0xe71   :  { %v12068_v31 = vadd.f32 %v9372_v44, %v11875_v4  ;;  %v7378_v15 = vpop.f32.mrb[37].mxu1  ;;  %v7880_v12 = vrot.slane %v12039_v17, %v11882_v61  ;;  %v8048_v1 = vrot.slane %v12039_v17, %v11888_v60  ;;  %v7783_v19 = vsel %vm7612_vm6, %v7696_v14, %v7782_v41 }
 0xe72   :  { %v7716_v48 = vrot.slane %v12061_v47, %v11880_v43  ;;  %v7884_v5 = vrot.slane %v12061_v47, %v11882_v61  ;;  %v12085_v20 = vadd.f32 %v11875_v4, %v7378_v15  ;;  %v8052_v38 = vrot.slane %v12061_v47, %v11888_v60 }
 0xe73   :  { %v12092_v11 = vcombine.high %v12068_v31, %v12068_v31  ;;  %v7784_v42 = vsel %vm7614_vm7, %v7700_v62, %v7783_v19  ;;  %v7864_v50 = vrot.slane %v12025_v9, %v11882_v61  ;;  %v7708_v7 = vrot.slane %v12032_v35, %v11880_v43 }
 0xe74   :  { %v9375_v51 = vpop.f32.mrb[38].mxu1  ;;  %v12099_v55 = vcombine.high %v12085_v20, %v12085_v20  ;;  %v7868_v58 = vrot.slane %v12036_v2, %v11882_v61  ;;  %v7876_v59 = vrot.slane %v12032_v35, %v11882_v61  ;;  %v7785_v39 = vsel %vm7616_vm8, %v7704_v8, %v7784_v42 }
 0xe75   :  { %v7388_v46 = vpop.f32.mrb[39].mxu1  ;;  %v12110_v36 = vadd.f32 %v9375_v51, %v11875_v4  ;;  %v7728_v49 = vrot.slane %v12085_v20, %v11880_v43  ;;  %v7896_v13 = vrot.slane %v12085_v20, %v11882_v61  ;;  %v7786_v3 = vsel %vm7618_vm9, %v7708_v7, %v7785_v39 }
 0xe76   :  { %v12114_v41 = vadd.f32 %v11875_v4, %v7388_v46  ;;  %v7951_v30 = vsel %vm7612_vm6, %v7864_v50, %v12007_v45  ;;  %v8064_v54 = vrot.slane %v12085_v20, %v11888_v60  ;;  %7803 = vrot.lane.b32.xlu1 %v7786_v3, %s10379_s3  ;;  %v7724_v16 = vrot.slane %v12047_v32, %v11880_v43 }
 0xe77   :  { %v12127_v26 = vcombine.high %v12110_v36, %v12110_v36  ;;  %v7732_v53 = vrot.slane %v12099_v55, %v11880_v43  ;;  %v7752_v45 = vrot.slane %v12110_v36, %v11880_v43  ;;  %v7920_v27 = vrot.slane %v12110_v36, %v11882_v61 }
 0xe78   :  { %v9378_v37 = vpop.f32.mrb[40].mxu1  ;;  %v12142_v23 = vcombine.high %v12114_v41, %v12114_v41  ;;  %v8088_v8 = vrot.slane %v12110_v36, %v11888_v60  ;;  %v7952_v15 = vsel %vm7614_vm7, %v7868_v58, %v7951_v30  ;;  %v7744_v19 = vrot.slane %v12114_v41, %v11880_v43 }
 0xe79   :  { %v7398_v34 = vpop.f32.mrb[41].mxu1  ;;  %v12149_v44 = vadd.f32 %v9378_v37, %v11875_v4  ;;  %v7912_v51 = vrot.slane %v12114_v41, %v11882_v61  ;;  %v8080_v42 = vrot.slane %v12114_v41, %v11888_v60  ;;  %v7953_v46 = vsel %vm7616_vm8, %v7872_v40, %v7952_v15 }
 0xe7a   :  { %v7748_v50 = vrot.slane %v12142_v23, %v11880_v43  ;;  %v7916_v7 = vrot.slane %v12142_v23, %v11882_v61  ;;  %v12166_v58 = vadd.f32 %v11875_v4, %v7398_v34  ;;  %v8084_v39 = vrot.slane %v12142_v23, %v11888_v60 }
 0xe7b   :  { %v7954_v3 = vsel %vm7618_vm9, %v7876_v59, %v7953_v46  ;;  %v7787_v30 = vsel %vm7606_vm3, %v7716_v48, %v7712_v25  ;;  %v8032_v37 = vrot.slane %v12025_v9, %v11888_v60  ;;  %v12176_v57 = vcombine.high %v12149_v44, %v12149_v44 }
 0xe7c   :  { %7971 = vrot.lane.b32.xlu1 %v7954_v3, %s10369_s0  ;;  %v12181_v4 = vcombine.high %v12166_v58, %v12166_v58  ;;  %v7736_v40 = vrot.slane %v12068_v31, %v11880_v43  ;;  %v7740_v59 = vrot.slane %v12092_v11, %v11880_v43  ;;  %v7760_v25 = vrot.slane %v12166_v58, %v11880_v43 }
 0xe7d   :  { %v7928_v48 = vrot.slane %v12166_v58, %v11882_v61  ;;  %v7788_v34 = vsel %vm7608_vm4, %v7720_v28, %v7787_v30  ;;  %v8036_v15 = vrot.slane %v12036_v2, %v11888_v60  ;;  %v8096_v46 = vrot.slane %v12166_v58, %v11888_v60 }
 0xe7e   :  { %v7789_v3 = vsel %vm7610_vm5, %v7724_v16, %v7788_v34  ;;  %v8040_v62 = vrot.slane %v12022_v18, %v11888_v60  ;;  %v8119_v14 = vsel %vm7612_vm6, %v8032_v37, %v12010_v6  ;;  %v8044_v10 = vrot.slane %v12032_v35, %v11888_v60 }
 0xe7f   :  { %v7790_v33 = vsel %vm7612_vm6, %v7728_v49, %v7789_v3  ;;  %v8120_v28 = vsel %vm7614_vm7, %v8036_v15, %v8119_v14  ;;  %v7892_v30 = vrot.slane %v12047_v32, %v11882_v61  ;;  %v7900_v34 = vrot.slane %v12099_v55, %v11882_v61 }
 0xe80   :  { %v7791_v56 = vsel %vm7614_vm7, %v7732_v53, %v7790_v33  ;;  %v8121_v16 = vsel %vm7616_vm8, %v8040_v62, %v8120_v28  ;;  %v7955_v6 = vsel %vm7606_vm3, %v7884_v5, %v7880_v12  ;;  %v7904_v33 = vrot.slane %v12068_v31, %v11882_v61 }
 0xe81   :  { %v7792_v49 = vsel %vm7616_vm8, %v7736_v40, %v7791_v56  ;;  %v8122_v14 = vsel %vm7618_vm9, %v8044_v10, %v8121_v16  ;;  %v7956_v53 = vsel %vm7608_vm4, %v7888_v29, %v7955_v6  ;;  %v7908_v37 = vrot.slane %v12092_v11, %v11882_v61 }
 0xe82   :  { %v7793_v62 = vsel %vm7618_vm9, %v7740_v59, %v7792_v49  ;;  %8139 = vrot.lane.b32.xlu1 %v8122_v14, %s10368_s24  ;;  %v7957_v12 = vsel %vm7610_vm5, %v7892_v30, %v7956_v53  ;;  %v8060_v10 = vrot.slane %v12047_v32, %v11888_v60  ;;  %v8068_v5 = vrot.slane %v12099_v55, %v11888_v60 }
 0xe83   :  { %7805 = vrot.lane.b32.xlu0 %v7793_v62, %s10379_s3  ;;  %v7958_v56 = vsel %vm7612_vm6, %v7896_v13, %v7957_v12  ;;  %v8072_v29 = vrot.slane %v12068_v31, %v11888_v60  ;;  %v8123_v40 = vsel %vm7606_vm3, %v8052_v38, %v8048_v1  ;;  %v8076_v15 = vrot.slane %v12092_v11, %v11888_v60 }
 0xe84   :  { %v7959_v59 = vsel %vm7614_vm7, %v7900_v34, %v7958_v56  ;;  %v8124_v13 = vsel %vm7608_vm4, %v8056_v21, %v8123_v40  ;;  %v7756_v3 = vrot.slane %v12127_v26, %v11880_v43  ;;  %v7764_v1 = vrot.slane %v12181_v4, %v11880_v43 }
 0xe85   :  { %v7960_v28 = vsel %vm7616_vm8, %v7904_v33, %v7959_v59  ;;  %v8125_v30 = vsel %vm7610_vm5, %v8060_v10, %v8124_v13  ;;  %v7794_v38 = vsel %vm7606_vm3, %v7748_v50, %v7744_v19  ;;  %v7768_v21 = vrot.slane %v12149_v44, %v11880_v43 }
 0xe86   :  { %v7961_v16 = vsel %vm7618_vm9, %v7908_v37, %v7960_v28  ;;  %v8126_v34 = vsel %vm7612_vm6, %v8064_v54, %v8125_v30  ;;  %v7795_v6 = vsel %vm7608_vm4, %v7752_v45, %v7794_v38  ;;  %v7772_v19 = vrot.slane %v12176_v57, %v11880_v43 }
 0xe87   :  { %7973 = vrot.lane.b32.xlu0 %v7961_v16, %s10369_s0  ;;  %v8127_v49 = vsel %vm7614_vm7, %v8068_v5, %v8126_v34  ;;  %v7796_v50 = vsel %vm7610_vm5, %v7756_v3, %v7795_v6  ;;  %v7924_v54 = vrot.slane %v12127_v26, %v11882_v61  ;;  %v7932_v53 = vrot.slane %v12181_v4, %v11882_v61 }
 0xe88   :  { %v8128_v14 = vsel %vm7616_vm8, %v8072_v29, %v8127_v49  ;;  %v7797_v33 = vsel %vm7612_vm6, %v7760_v25, %v7796_v50  ;;  %v7962_v43 = vsel %vm7606_vm3, %v7916_v7, %v7912_v51  ;;  %v7936_v37 = vrot.slane %v12149_v44, %v11882_v61 }
 0xe89   :  { %v8129_v45 = vsel %vm7618_vm9, %v8076_v15, %v8128_v14  ;;  %v7798_v62 = vsel %vm7614_vm7, %v7764_v1, %v7797_v33  ;;  %v7963_v25 = vsel %vm7608_vm4, %v7920_v27, %v7962_v43  ;;  %v7940_v10 = vrot.slane %v12176_v57, %v11882_v61 }
 0xe8a   :  { %v7799_v12 = vsel %vm7616_vm8, %v7768_v21, %v7798_v62  ;;  %v7964_v56 = vsel %vm7610_vm5, %v7924_v54, %v7963_v25  ;;  %v8092_v51 = vrot.slane %v12127_v26, %v11888_v60  ;;  %v8100_v29 = vrot.slane %v12181_v4, %v11888_v60 }
 0xe8b   :  { %8141 = vrot.lane.b32.xlu0 %v8129_v45, %s10368_s24  ;;  %v7800_v7 = vsel %vm7618_vm9, %v7772_v19, %v7799_v12  ;;  %v7965_v5 = vsel %vm7612_vm6, %v7928_v48, %v7964_v56  ;;  %v8130_v61 = vsel %vm7606_vm3, %v8084_v39, %v8080_v42  ;;  %v8104_v40 = vrot.slane %v12149_v44, %v11888_v60 }
 0xe8c   :  { %7807 = vrot.lane.b32.xlu1 %v7800_v7, %s10379_s3  ;;  %v7966_v27 = vsel %vm7614_vm7, %v7932_v53, %v7965_v5  ;;  %v8108_v48 = vrot.slane %v12176_v57, %v11888_v60  ;;  %v8131_v59 = vsel %vm7608_vm4, %v8088_v8, %v8130_v61  ;;  %v7623_v42 = vsel %vm7612_vm6, %v7529_v0, %v12014_v52 }
 0xe8d   :  { %v7967_v15 = vsel %vm7616_vm8, %v7936_v37, %v7966_v27  ;;  %v8132_v13 = vsel %vm7610_vm5, %v8092_v51, %v8131_v59  ;;  %v7533_v39 = vrot.slane %v12036_v2, %v11878_v63  ;;  %v7537_v28 = vrot.slane %v12022_v18, %v11878_v63 }
 0xe8e   :  { %v7968_v3 = vsel %vm7618_vm9, %v7940_v10, %v7967_v15  ;;  %v8133_v8 = vsel %vm7612_vm6, %v8096_v46, %v8132_v13  ;;  %v7541_v30 = vrot.slane %v12032_v35, %v11878_v63  ;;  %v7557_v2 = vrot.slane %v12047_v32, %v11878_v63 }
 0xe8f   :  { %v8134_v9 = vsel %vm7614_vm7, %v8100_v29, %v8133_v8  ;;  %v7624_v52 = vsel %vm7614_vm7, %v7533_v39, %v7623_v42  ;;  %v12499_v60 = vrot.slane %v12061_v47, %v11878_v63  ;;  %v12500_v46 = vrot.slane %v12028_v22, %v11878_v63 }
 0xe90   :  { %7975 = vrot.lane.b32.xlu1 %v7968_v3, %s10369_s0  ;;  %v8135_v18 = vsel %vm7616_vm8, %v8104_v40, %v8134_v9  ;;  %v7625_v35 = vsel %vm7616_vm8, %v7537_v28, %v7624_v52  ;;  %v7565_v32 = vrot.slane %v12099_v55, %v11878_v63  ;;  %v7593_v17 = vrot.slane %v12166_v58, %v11878_v63 }
 0xe91   :  { %v7627_v0 = vsel %vm7606_vm3, %v12499_v60, %v7545_v24  ;;  %v8136_v47 = vsel %vm7618_vm9, %v8108_v48, %v8135_v18  ;;  %v7626_v24 = vsel %vm7618_vm9, %v7541_v30, %v7625_v35  ;;  %v7569_v16 = vrot.slane %v12068_v31, %v11878_v63 }
 0xe92   :  { %v7628_v1 = vsel %vm7608_vm4, %v12500_v46, %v7627_v0  ;;  %v12501_v22 = vrot.slane %v12085_v20, %v11878_v63  ;;  %v7589_v55 = vrot.slane %v12127_v26, %v11878_v63  ;;  %v12502_v58 = vrot.slane %v12114_v41, %v11878_v63 }
 0xe93   :  { %v7629_v38 = vsel %vm7610_vm5, %v7557_v2, %v7628_v1  ;;  %v12503_v21 = vrot.slane %v12142_v23, %v11878_v63  ;;  %v7573_v49 = vrot.slane %v12092_v11, %v11878_v63  ;;  %v12504_v20 = vrot.slane %v12110_v36, %v11878_v63 }
 0xe94   :  { %v7630_v34 = vsel %vm7612_vm6, %v12501_v22, %v7629_v38  ;;  %v7597_v26 = vrot.slane %v12181_v4, %v11878_v63  ;;  %8143 = vrot.lane.b32.xlu1 %v8136_v47, %s10368_s24  ;;  %v7601_v11 = vrot.slane %v12149_v44, %v11878_v63  ;;  %v7605_v36 = vrot.slane %v12176_v57, %v11878_v63 }
 0xe95   :  { %v7634_v6 = vsel %vm7606_vm3, %v12503_v21, %v12502_v58  ;;  %v7631_v31 = vsel %vm7614_vm7, %v7565_v32, %v7630_v34 }
 0xe96   :  { %v7635_v19 = vsel %vm7608_vm4, %v12504_v20, %v7634_v6  ;;  %v7632_v41 = vsel %vm7616_vm8, %v7569_v16, %v7631_v31 }
 0xe97   :  { %v7636_v23 = vsel %vm7610_vm5, %v7589_v55, %v7635_v19  ;;  %v7633_v50 = vsel %vm7618_vm9, %v7573_v49, %v7632_v41 }
 0xe98   :  { %v7637_v54 = vsel %vm7612_vm6, %v7593_v17, %v7636_v23 }
 0xe99   :  { %v7638_v14 = vsel %vm7614_vm7, %v7597_v26, %v7637_v54 }
 0xe9a   :  { %v7639_v4 = vsel %vm7616_vm8, %v7601_v11, %v7638_v14 }
 0xe9b   :  { %v7640_v33 = vsel %vm7618_vm9, %v7605_v36, %v7639_v4 }
 0xee8   :  { %v7804_v53 = vpop.permute.xlu1 %7803 }
 0xee9   :  { %v8151_v45 = vsel %vm8149_vm10, %v7626_v24, %v7804_v53 }
 0xeee   :  { %v7972_v43 = vpop.permute.xlu1 %7971 }
 0xeef   :  { %v8156_v62 = vsel %vm8154_vm11, %v8151_v45, %v7972_v43 }
 0xef4   :  { %v8140_v37 = vpop.permute.xlu1 %8139 }
 0xef5   :  { %v7806_v25 = vpop.permute.xlu0 %7805  ;;  %v8161_v44 = vsel %vm8159_vm12, %v8156_v62, %v8140_v37 }
 0xef6   :  { %8165 = vst [vmem:[#allocation2 + $0x8] sm:$0xff] %v8161_v44  ;;  %v8152_v63 = vsel %vm8149_vm10, %v7633_v50, %v7806_v25 }
 0xef9   :  { %v7974_v12 = vpop.permute.xlu0 %7973 }
 0xefa   :  { %v8157_v57 = vsel %vm8154_vm11, %v8152_v63, %v7974_v12 }
 0xefd   :  { %v8142_v10 = vpop.permute.xlu0 %8141 }
 0xefe   :  { %v8162_v56 = vsel %vm8159_vm12, %v8157_v57, %v8142_v10  ;;  %v7808_v51 = vpop.permute.xlu1 %7807 }
 0xeff   :  { %8166 = vst [vmem:[#allocation2 + $0x10] sm:$0xff] %v8162_v56  ;;  %v8153_v5 = vsel %vm8149_vm10, %v7640_v33, %v7808_v51 }
 0xf02   :  { %v7976_v7 = vpop.permute.xlu1 %7975 }
 0xf03   :  { %v8158_v29 = vsel %vm8154_vm11, %v8153_v5, %v7976_v7 }
 0xf06   :  { %v8144_v61 = vpop.permute.xlu1 %8143 }
 0xf07   :  { %v8163_v27 = vsel %vm8159_vm12, %v8158_v29, %v8144_v61 }
 0xf08   :  { %8167 = vst [vmem:[#allocation2 + $0x18] sm:$0xff] %v8163_v27 }
 0xf09   :  { %10355 = shalt.err (!%p10352_p4)
}
 0xf0a   :  { %s10356_s21 = scalar_lea.hbm %s12432_s4, 512 }
 0xf0b   :  { %p10357_p5 = scmp.ne.s32.totalorder %s12432_s4, %s10356_s21  ;;  %p10360_p6 = scmp.lt.u32.totalorder %s10356_s21, %s12432_s4 }
 0xf0d   :  { %p10362_p7 = pnand %p10360_p6, %p10357_p5 }
 0xf0f   :  { %10365 = shalt.err (!%p10362_p7)
}
 0xf10   :  { %s10381_s1 = smov 128   ;;  %s10382_s25 = smov 8  }
 0xf11   :  { %8179 = dma.vmem_to_hbm [thread:$0]  %s8174_s17, 512, %s12432_s4, [#allocation3], %s10381_s1, %s10381_s1, %s10382_s25  }
 0xf12   :  { %10366 = dma.done.wait [#allocation3], 512  }
 0xf13   :  { %10367 = vsyncadd [#allocation3], 4294966784 }
 0xf14   :  { %8183 = vsyncpa [#allocation3], 1 }

</bundles_post_ra>
